<compile_context>
chip_gen: v6e
topology: v6e:2x2x1
jax: 0.10.0
libtpu: 0.0.40
codegen_flags: <defaults>
</compile_context>

<pallas_src>
import numpy as np
import jax
import jax.numpy as jnp
from jax.experimental import pallas as pl
from jax.experimental.pallas import tpu as pltpu


# --------------------------------------------------------------------------------------
# Kernel
# --------------------------------------------------------------------------------------
def _layernorm(z, gamma, beta, eps=1e-5):
    mu = jnp.mean(z, axis=-1, keepdims=True)
    var = jnp.mean((z - mu) ** 2, axis=-1, keepdims=True)
    return (z - mu) * jax.lax.rsqrt(var + eps) * gamma + beta


def _make_kernel(nhead, dim, L, use_conv, compute_dtype, offsets, pad):
    C = nhead * dim
    nine = 9 * dim
    cdt = compute_dtype
    f32 = jnp.float32

    def kernel(x_ref, src_ref, srcT_ref,
               wqT_ref, wkT_ref, wvT_ref, wv_ref, wmT_ref, hm_ref,
               g1_ref, b1_ref, w1x_ref, w1m_ref, w2_ref, g2_ref, b2_ref,
               wdx_ref, wdm_ref, wup_ref,
               aq_ref, ak_ref, av_ref, bF_ref, wdt_ref, bdep_ref, mask_ref, rate_ref,
               out_ref, fpad_ref):
        x = x_ref[0]                       # [L, C]  f32
        src = src_ref[0]                   # [S, C]  f32
        srcT = srcT_ref[0]                 # [C, S]  f32
        xc = x.astype(cdt)
        sc = src.astype(cdt)

        # ---- fused full-C projections (bf16 MXU operands, f32 accumulation) ----
        q = jnp.dot(xc, wqT_ref[...], preferred_element_type=f32)                   # [L, C]
        k = jnp.dot(sc, wkT_ref[...], preferred_element_type=f32)                   # [S, C]
        vT = jnp.dot(wv_ref[...], srcT.astype(cdt), preferred_element_type=f32)     # [C, S]

        # ---- linear attention, KV-first (no [L,S] scores) ----
        Qf = jnp.where(q > 0, q + 1.0, jnp.exp(q))            # elu(q) + 1  (f32)
        Kf = jnp.where(k > 0, k + 1.0, jnp.exp(k))            # elu(k) + 1  (f32)
        hm = hm_ref[...]                                      # [C, C] 0/1 same-head mask
        # KV^T[j, i] = sum_s v[s, j] * Kf[s, i], masked to same-head blocks
        KVT = jnp.dot(vT.astype(cdt), Kf.astype(cdt), preferred_element_type=f32) * hm
        Ksum = jnp.sum(Kf, axis=0, keepdims=True)             # [1, C]
        denom = jnp.dot(Qf * Ksum, hm, preferred_element_type=f32)   # per-head denominators, [L, C]
        Z = 1.0 / (denom + 1e-6)
        # O = Qf @ KV  (trans-B form against KV^T), scaled by Z
        O = jax.lax.dot_general(Qf.astype(cdt), KVT.astype(cdt),
                                (((1,), (1,)), ((), ())),
                                preferred_element_type=f32) * Z                      # [L, C]
        merged = jnp.dot(O.astype(cdt), wmT_ref[...], preferred_element_type=f32)    # [L, C]

        # ---- norm1, mlp(cat([x, message])), norm2 ----
        message = _layernorm(merged, g1_ref[...], b1_ref[...])
        mc = message.astype(cdt)
        hidden = jnp.maximum(
            jnp.dot(xc, w1x_ref[...], preferred_element_type=f32)
            + jnp.dot(mc, w1m_ref[...], preferred_element_type=f32), 0.0)
        message = jnp.dot(hidden.astype(cdt), w2_ref[...], preferred_element_type=f32)
        message = _layernorm(message, g2_ref[...], b2_ref[...])

        # ---- adapter: relu(down(cat([x, message]))) -> up, dropout(p=0) == identity ----
        mc2 = message.astype(cdt)
        down = jnp.maximum(
            jnp.dot(xc, wdx_ref[...], preferred_element_type=f32)
            + jnp.dot(mc2, wdm_ref[...], preferred_element_type=f32), 0.0)
        up = jnp.dot(down.astype(cdt), wup_ref[...], preferred_element_type=f32)
        message = message + up * 0.1

        if use_conv:
            # token-major v is only needed by the conv branch
            v = jnp.dot(sc, wvT_ref[...], preferred_element_type=f32)                # [L, C]
            # folded 1x1 `fc` conv: F[l, d*9 + tap]  (three fused full-C matmuls)
            F = (jnp.dot(q.astype(cdt), aq_ref[...], preferred_element_type=f32)
                 + jnp.dot(k.astype(cdt), ak_ref[...], preferred_element_type=f32)
                 + jnp.dot(v.astype(cdt), av_ref[...], preferred_element_type=f32)
                 + bF_ref[...])                                                      # [L, 9*dim]
            # grouped 3x3 dep_conv: halo-padded scratch + statically shifted slices
            fpad_ref[...] = jnp.zeros((L + 2 * pad, nine), f32)
            fpad_ref[pl.ds(pad, L), :] = F
            conv = jnp.zeros((L, C), f32)
            for p in range(9):
                g = fpad_ref[pl.ds(pad + offsets[p], L), :] * mask_ref[p]            # [L, 9*dim]
                conv = conv + jnp.dot(g.astype(cdt), wdt_ref[p],
                                      preferred_element_type=f32)                    # [L, C]
            message = message + rate_ref[...] * (conv + bdep_ref[...])

        out_ref[0] = (x + message).astype(out_ref.dtype)

    return kernel


# --------------------------------------------------------------------------------------
# Parameter setup (plain-JAX / numpy glue)
# --------------------------------------------------------------------------------------
def init_params(key, d_model, nhead):
    ks = jax.random.split(key, 16)

    def rnd(k, shape, scale=0.1):
        return scale * jax.random.normal(k, shape, dtype=jnp.float32)

    return dict(
        nhead=nhead,
        wq=rnd(ks[0], (d_model, d_model)),
        wk=rnd(ks[1], (d_model, d_model)),
        wv=rnd(ks[2], (d_model, d_model)),
        wmerge=rnd(ks[3], (d_model, d_model)),
        g1=1.0 + rnd(ks[4], (d_model,)),
        b1=rnd(ks[5], (d_model,)),
        wmlp1=rnd(ks[6], (2 * d_model, 2 * d_model)),
        wmlp2=rnd(ks[7], (d_model, 2 * d_model)),
        g2=1.0 + rnd(ks[8], (d_model,)),
        b2=rnd(ks[9], (d_model,)),
        wdown=rnd(ks[10], (64, 2 * d_model)),
        wup=rnd(ks[11], (d_model, 64)),
        wfc=rnd(ks[12], (9, 3 * nhead)),       # fc: Conv2d(3*nhead, 9, k=1) weight
        bfc=rnd(ks[13], (9,)),                 # fc bias
        wdep=rnd(ks[14], (d_model, 9, 3, 3)),  # dep_conv: Conv2d(9*dim, d_model, k=3, groups=dim)
        bdep=rnd(ks[15], (d_model,)),
        rate=jnp.array(0.5, jnp.float32),
    )


_KP_ORDER = ["wqT", "wkT", "wvT", "wv", "wmT", "hm",
             "g1", "b1", "w1x", "w1m", "w2", "g2", "b2",
             "wdx", "wdm", "wup",
             "aqT", "akT", "avT", "bF", "wdt", "bdep", "masks", "rate"]


def _prepare_kernel_params(p, H, W, L, C, nhead, compute_dtype, use_conv):
    dim = C // nhead
    nine = 9 * dim
    cdt = compute_dtype

    # ---- fold the 1x1 `fc` conv into full-C channel-mixing matrices (token-major) ----
    wfc = np.asarray(p["wfc"], np.float32)     # [9, 3*nhead]
    bfc = np.asarray(p["bfc"], np.float32)     # [9]
    Aq = np.zeros((C, nine), np.float32)
    Ak = np.zeros((C, nine), np.float32)
    Av = np.zeros((C, nine), np.float32)
    for h in range(nhead):
        for d in range(dim):
            for o in range(9):
                Aq[h * dim + d, d * 9 + o] = wfc[o, 3 * h + 0]
                Ak[h * dim + d, d * 9 + o] = wfc[o, 3 * h + 1]
                Av[h * dim + d, d * 9 + o] = wfc[o, 3 * h + 2]
    bF = np.tile(bfc, dim)                     # bF[d*9 + o] = bfc[o]

    # ---- dense per-tap weights for the grouped 3x3 dep_conv ----
    wdep = np.asarray(p["wdep"], np.float32)   # [C, 9, 3, 3]
    WdT = np.zeros((9, nine, C), np.float32)
    for oc in range(C):
        g = oc // nhead
        for c in range(9):
            for ky in range(3):
                for kx in range(3):
                    WdT[ky * 3 + kx, g * 9 + c, oc] = wdep[oc, c, ky, kx]

    # ---- per-tap token shift offsets + boundary validity masks (padding=1) ----
    offsets = [0] * 9
    masks = np.zeros((9, L, 1), np.float32)
    if use_conv:
        offsets = []
        for ky in range(3):
            for kx in range(3):
                dy, dx = ky - 1, kx - 1
                offsets.append(dy * W + dx)
                for y in range(H):
                    for xx in range(W):
                        if 0 <= y + dy < H and 0 <= xx + dx < W:
                            masks[ky * 3 + kx, y * W + xx, 0] = 1.0

    # ---- same-head 0/1 block mask (for KV masking / per-head denominators) ----
    hm = np.zeros((C, C), np.float32)
    for i in range(C):
        h = i // dim
        hm[i, h * dim:(h + 1) * dim] = 1.0

    w1T = jnp.transpose(p["wmlp1"])            # [2C, 2C] (in, out)
    wdnT = jnp.transpose(p["wdown"])           # [2C, 64]

    kp = dict(
        wqT=jnp.transpose(p["wq"]).astype(cdt),
        wkT=jnp.transpose(p["wk"]).astype(cdt),
        wvT=jnp.transpose(p["wv"]).astype(cdt),
        wv=p["wv"].astype(cdt),
        wmT=jnp.transpose(p["wmerge"]).astype(cdt),
        hm=jnp.asarray(hm),
        g1=p["g1"].reshape(1, C), b1=p["b1"].reshape(1, C),
        w1x=w1T[:C].astype(cdt), w1m=w1T[C:].astype(cdt),
        w2=jnp.transpose(p["wmlp2"]).astype(cdt),
        g2=p["g2"].reshape(1, C), b2=p["b2"].reshape(1, C),
        wdx=wdnT[:C].astype(cdt), wdm=wdnT[C:].astype(cdt),
        wup=jnp.transpose(p["wup"]).astype(cdt),
        aqT=jnp.asarray(Aq).astype(cdt),
        akT=jnp.asarray(Ak).astype(cdt),
        avT=jnp.asarray(Av).astype(cdt),
        bF=jnp.asarray(bF).reshape(1, nine),
        wdt=jnp.asarray(WdT).astype(cdt),
        bdep=p["bdep"].reshape(1, C),
        masks=jnp.asarray(masks),
        rate=p["rate"].reshape(1, 1),
    )
    return kp, offsets


# --------------------------------------------------------------------------------------
# Pallas wrapper
# --------------------------------------------------------------------------------------
def loftr_encoder_layer_pallas(x, source, params, H, W, name="self",
                               compute_dtype=jnp.bfloat16):
    N, L, C = x.shape
    S = source.shape[1]
    nhead = params["nhead"]
    dim = C // nhead
    use_conv = (name == "self")
    if use_conv:
        assert L == H * W and S == L, "name='self' requires L == S == H*W"

    pad = (-(-(W + 1) // 8)) * 8 if use_conv else 8     # halo rows, rounded up to a sublane multiple
    kp, offsets = _prepare_kernel_params(params, H, W, L, C, nhead, compute_dtype, use_conv)
    kernel = _make_kernel(nhead, dim, L, use_conv, compute_dtype, offsets, pad)

    srcT = jnp.transpose(source, (0, 2, 1))             # [N, C, S] (plain-XLA glue, outside the kernel)
    ordered = [kp[k] for k in _KP_ORDER]

    def whole(arr):
        nd = arr.ndim
        return pl.BlockSpec(arr.shape, lambda b, _nd=nd: (0,) * _nd)

    in_specs = ([pl.BlockSpec((1, L, C), lambda b: (b, 0, 0)),
                 pl.BlockSpec((1, S, C), lambda b: (b, 0, 0)),
                 pl.BlockSpec((1, C, S), lambda b: (b, 0, 0))]
                + [whole(a) for a in ordered])

    return pl.pallas_call(
        kernel,
        out_shape=jax.ShapeDtypeStruct((N, L, C), jnp.float32),
        grid_spec=pltpu.PrefetchScalarGridSpec(
            num_scalar_prefetch=0,
            grid=(N,),
            in_specs=in_specs,
            out_specs=pl.BlockSpec((1, L, C), lambda b: (b, 0, 0)),
            scratch_shapes=[pltpu.VMEM((L + 2 * pad, 9 * dim), jnp.float32)],
        ),
        compiler_params=pltpu.CompilerParams(
            dimension_semantics=("parallel",),
            vmem_limit_bytes=32 * 1024 * 1024),
    )(x, source, srcT, *ordered)


# --------------------------------------------------------------------------------------
# Pure-JAX reference (mirrors the PyTorch forward, used for verification)
# --------------------------------------------------------------------------------------
def _layernorm_ref(z, g, b, eps=1e-5):
    mu = jnp.mean(z, axis=-1, keepdims=True)
    var = jnp.mean((z - mu) ** 2, axis=-1, keepdims=True)
    return (z - mu) / jnp.sqrt(var + eps) * g + b


def reference_forward(x, source, p, H, W, name="self"):
    N, L, C = x.shape
    S = source.shape[1]
    nhead = p["nhead"]
    dim = C // nhead
    q = x @ p["wq"].T
    k = source @ p["wk"].T
    v = source @ p["wv"].T
    qh = q.reshape(N, L, nhead, dim)
    kh = k.reshape(N, S, nhead, dim)
    vh = v.reshape(N, S, nhead, dim)
    if name == "self":
        f_all = jnp.concatenate([qh, kh, vh], axis=-1)                        # [N,L,nhead,3*dim]
        f_all = f_all.reshape(N, L, 3 * nhead, dim).transpose(0, 2, 1, 3)     # [N,3*nhead,L,dim]
        f_fc = jnp.einsum('oc,nclm->nolm', p["wfc"], f_all) + p["bfc"][None, :, None, None]
        f_conv = f_fc.transpose(0, 3, 1, 2).reshape(N, 9 * dim, H, W)
        out_conv = jax.lax.conv_general_dilated(
            f_conv, p["wdep"], (1, 1), ((1, 1), (1, 1)),
            dimension_numbers=('NCHW', 'OIHW', 'NCHW'),
            feature_group_count=dim) + p["bdep"][None, :, None, None]
        out_conv = out_conv.transpose(0, 2, 3, 1).reshape(N, H * W, C)
    Qf = jax.nn.elu(qh) + 1.0
    Kf = jax.nn.elu(kh) + 1.0
    vlen = vh.shape[1]
    vs = vh / vlen
    KV = jnp.einsum('nshd,nshv->nhdv', Kf, vs)
    Z = 1.0 / (jnp.einsum('nlhd,nhd->nlh', Qf, Kf.sum(axis=1)) + 1e-6)
    msg = jnp.einsum('nlhd,nhdv,nlh->nlhv', Qf, KV, Z) * vlen
    msg = msg.reshape(N, L, C) @ p["wmerge"].T
    msg = _layernorm_ref(msg, p["g1"], p["b1"])
    msg = jnp.maximum(jnp.concatenate([x, msg], axis=-1) @ p["wmlp1"].T, 0.0) @ p["wmlp2"].T
    msg = _layernorm_ref(msg, p["g2"], p["b2"])
    down = jnp.maximum(jnp.concatenate([x, msg], axis=-1) @ p["wdown"].T, 0.0)
    up = down @ p["wup"].T
    msg = msg + up * 0.1
    if name == "self":
        msg = msg + p["rate"] * out_conv
    return x + msg


# --------------------------------------------------------------------------------------
if __name__ == "__main__":
    key = jax.random.PRNGKey(0)
    d_model, nhead = 32, 4
    N, H, W = 2, 8, 8
    L = S = H * W

    kx, ks, kp = jax.random.split(key, 3)
    x = 0.5 * jax.random.normal(kx, (N, L, d_model), jnp.float32)
    source = 0.5 * jax.random.normal(ks, (N, S, d_model), jnp.float32)
    params = init_params(kp, d_model, nhead)

    ref = jax.block_until_ready(reference_forward(x, source, params, H, W, name="self"))

    # f32 MXU operands: tight numerical check against the pure-JAX reference.
    out_f32 = jax.block_until_ready(
        loftr_encoder_layer_pallas(x, source, params, H, W, name="self",
                                   compute_dtype=jnp.float32))
    assert out_f32.shape == (N, L, d_model)
    err_f32 = float(jnp.max(jnp.abs(out_f32 - ref)))
    assert err_f32 < 2e-3, f"f32 max abs err {err_f32}"

    # bf16 MXU operands (f32 accumulation): performance mode, looser tolerance.
    out_bf16 = jax.block_until_ready(
        loftr_encoder_layer_pallas(x, source, params, H, W, name="self",
                                   compute_dtype=jnp.bfloat16))
    assert out_bf16.shape == (N, L, d_model)
    err_bf16 = float(jnp.max(jnp.abs(out_bf16 - ref)))
    assert err_bf16 < 8e-2, f"bf16 max abs err {err_bf16}"

    print("KERNEL_OK")
</pallas_src>

<mosaic_0001>
module attributes {stable_mosaic.version = 11 : i64} {
  func.func @kernel(%arg0: i32, %arg1: memref<1x64x32xf32, #tpu.memory_space<vmem>>, %arg2: memref<1x64x32xf32, #tpu.memory_space<vmem>>, %arg3: memref<1x32x64xf32, #tpu.memory_space<vmem>>, %arg4: memref<32x32xf32, #tpu.memory_space<vmem>>, %arg5: memref<32x32xf32, #tpu.memory_space<vmem>>, %arg6: memref<32x32xf32, #tpu.memory_space<vmem>>, %arg7: memref<32x32xf32, #tpu.memory_space<vmem>>, %arg8: memref<32x32xf32, #tpu.memory_space<vmem>>, %arg9: memref<32x32xf32, #tpu.memory_space<vmem>>, %arg10: memref<1x32xf32, #tpu.memory_space<vmem>>, %arg11: memref<1x32xf32, #tpu.memory_space<vmem>>, %arg12: memref<32x64xf32, #tpu.memory_space<vmem>>, %arg13: memref<32x64xf32, #tpu.memory_space<vmem>>, %arg14: memref<64x32xf32, #tpu.memory_space<vmem>>, %arg15: memref<1x32xf32, #tpu.memory_space<vmem>>, %arg16: memref<1x32xf32, #tpu.memory_space<vmem>>, %arg17: memref<32x64xf32, #tpu.memory_space<vmem>>, %arg18: memref<32x64xf32, #tpu.memory_space<vmem>>, %arg19: memref<64x32xf32, #tpu.memory_space<vmem>>, %arg20: memref<32x72xf32, #tpu.memory_space<vmem>>, %arg21: memref<32x72xf32, #tpu.memory_space<vmem>>, %arg22: memref<32x72xf32, #tpu.memory_space<vmem>>, %arg23: memref<1x72xf32, #tpu.memory_space<vmem>>, %arg24: memref<9x72x32xf32, #tpu.memory_space<vmem>>, %arg25: memref<1x32xf32, #tpu.memory_space<vmem>>, %arg26: memref<9x64x1xf32, #tpu.memory_space<vmem>>, %arg27: memref<1x1xf32, #tpu.memory_space<vmem>>, %arg28: memref<1x64x32xf32, #tpu.memory_space<vmem>>, %arg29: memref<96x72xf32, #tpu.memory_space<vmem>>) attributes {dimension_semantics = [#tpu.dimension_semantics<parallel>], iteration_bounds = array<i64: 2>, scalar_prefetch = 0 : i64, scratch_operands = 1 : i64, tpu.core_type = #tpu.core_type<tc>, window_params = [{transform_indices = @transform_0, window_bounds = array<i64: 1, 64, 32>}, {transform_indices = @transform_1, window_bounds = array<i64: 1, 64, 32>}, {transform_indices = @transform_2, window_bounds = array<i64: 1, 32, 64>}, {pipeline_mode = #tpu.pipeline_mode<synchronous>, transform_indices = @transform_3, window_bounds = array<i64: 32, 32>}, {pipeline_mode = #tpu.pipeline_mode<synchronous>, transform_indices = @transform_4, window_bounds = array<i64: 32, 32>}, {pipeline_mode = #tpu.pipeline_mode<synchronous>, transform_indices = @transform_5, window_bounds = array<i64: 32, 32>}, {pipeline_mode = #tpu.pipeline_mode<synchronous>, transform_indices = @transform_6, window_bounds = array<i64: 32, 32>}, {pipeline_mode = #tpu.pipeline_mode<synchronous>, transform_indices = @transform_7, window_bounds = array<i64: 32, 32>}, {pipeline_mode = #tpu.pipeline_mode<synchronous>, transform_indices = @transform_8, window_bounds = array<i64: 32, 32>}, {pipeline_mode = #tpu.pipeline_mode<synchronous>, transform_indices = @transform_9, window_bounds = array<i64: 1, 32>}, {pipeline_mode = #tpu.pipeline_mode<synchronous>, transform_indices = @transform_10, window_bounds = array<i64: 1, 32>}, {pipeline_mode = #tpu.pipeline_mode<synchronous>, transform_indices = @transform_11, window_bounds = array<i64: 32, 64>}, {pipeline_mode = #tpu.pipeline_mode<synchronous>, transform_indices = @transform_12, window_bounds = array<i64: 32, 64>}, {pipeline_mode = #tpu.pipeline_mode<synchronous>, transform_indices = @transform_13, window_bounds = array<i64: 64, 32>}, {pipeline_mode = #tpu.pipeline_mode<synchronous>, transform_indices = @transform_14, window_bounds = array<i64: 1, 32>}, {pipeline_mode = #tpu.pipeline_mode<synchronous>, transform_indices = @transform_15, window_bounds = array<i64: 1, 32>}, {pipeline_mode = #tpu.pipeline_mode<synchronous>, transform_indices = @transform_16, window_bounds = array<i64: 32, 64>}, {pipeline_mode = #tpu.pipeline_mode<synchronous>, transform_indices = @transform_17, window_bounds = array<i64: 32, 64>}, {pipeline_mode = #tpu.pipeline_mode<synchronous>, transform_indices = @transform_18, window_bounds = array<i64: 64, 32>}, {pipeline_mode = #tpu.pipeline_mode<synchronous>, transform_indices = @transform_19, window_bounds = array<i64: 32, 72>}, {pipeline_mode = #tpu.pipeline_mode<synchronous>, transform_indices = @transform_20, window_bounds = array<i64: 32, 72>}, {pipeline_mode = #tpu.pipeline_mode<synchronous>, transform_indices = @transform_21, window_bounds = array<i64: 32, 72>}, {pipeline_mode = #tpu.pipeline_mode<synchronous>, transform_indices = @transform_22, window_bounds = array<i64: 1, 72>}, {pipeline_mode = #tpu.pipeline_mode<synchronous>, transform_indices = @transform_23, window_bounds = array<i64: 9, 72, 32>}, {pipeline_mode = #tpu.pipeline_mode<synchronous>, transform_indices = @transform_24, window_bounds = array<i64: 1, 32>}, {pipeline_mode = #tpu.pipeline_mode<synchronous>, transform_indices = @transform_25, window_bounds = array<i64: 9, 64, 1>}, {pipeline_mode = #tpu.pipeline_mode<synchronous>, transform_indices = @transform_26, window_bounds = array<i64: 1, 1>}, {transform_indices = @transform_27, window_bounds = array<i64: 1, 64, 32>}]} {
    %c0 = arith.constant 0 : index
    %c0_0 = arith.constant 0 : index
    %c0_1 = arith.constant 0 : index
    %0 = vector.load %arg1[%c0, %c0_0, %c0_1] : memref<1x64x32xf32, #tpu.memory_space<vmem>>, vector<1x64x32xf32>
    %1 = vector.shape_cast %0 : vector<1x64x32xf32> to vector<64x32xf32>
    %c0_2 = arith.constant 0 : index
    %c0_3 = arith.constant 0 : index
    %c0_4 = arith.constant 0 : index
    %2 = vector.load %arg2[%c0_2, %c0_3, %c0_4] : memref<1x64x32xf32, #tpu.memory_space<vmem>>, vector<1x64x32xf32>
    %3 = vector.shape_cast %2 : vector<1x64x32xf32> to vector<64x32xf32>
    %c0_5 = arith.constant 0 : index
    %c0_6 = arith.constant 0 : index
    %c0_7 = arith.constant 0 : index
    %4 = vector.load %arg3[%c0_5, %c0_6, %c0_7] : memref<1x32x64xf32, #tpu.memory_space<vmem>>, vector<1x32x64xf32>
    %5 = vector.shape_cast %4 : vector<1x32x64xf32> to vector<32x64xf32>
    %c0_8 = arith.constant 0 : index
    %c0_9 = arith.constant 0 : index
    %6 = vector.load %arg4[%c0_8, %c0_9] : memref<32x32xf32, #tpu.memory_space<vmem>>, vector<32x32xf32>
    %cst = arith.constant dense<0.000000e+00> : vector<64x32xf32>
    %7 = tpu.matmul %1, %6, %cst {dimension_numbers = #tpu.dot_dimension_numbers<[1], [0], [0], [1], [0, 0, 1, 1], [], []>} : vector<64x32xf32>, vector<32x32xf32>, vector<64x32xf32> -> vector<64x32xf32>
    %c0_10 = arith.constant 0 : index
    %c0_11 = arith.constant 0 : index
    %8 = vector.load %arg5[%c0_10, %c0_11] : memref<32x32xf32, #tpu.memory_space<vmem>>, vector<32x32xf32>
    %cst_12 = arith.constant dense<0.000000e+00> : vector<64x32xf32>
    %9 = tpu.matmul %3, %8, %cst_12 {dimension_numbers = #tpu.dot_dimension_numbers<[1], [0], [0], [1], [0, 0, 1, 1], [], []>} : vector<64x32xf32>, vector<32x32xf32>, vector<64x32xf32> -> vector<64x32xf32>
    %c0_13 = arith.constant 0 : index
    %c0_14 = arith.constant 0 : index
    %10 = vector.load %arg7[%c0_13, %c0_14] : memref<32x32xf32, #tpu.memory_space<vmem>>, vector<32x32xf32>
    %cst_15 = arith.constant dense<0.000000e+00> : vector<32x64xf32>
    %11 = tpu.matmul %10, %5, %cst_15 {dimension_numbers = #tpu.dot_dimension_numbers<[1], [0], [0], [1], [0, 0, 1, 1], [], []>} : vector<32x32xf32>, vector<32x64xf32>, vector<32x64xf32> -> vector<32x64xf32>
    %cst_16 = arith.constant 0.000000e+00 : f32
    %12 = vector.broadcast %cst_16 : f32 to vector<64x32xf32>
    %13 = arith.cmpf ogt, %7, %12 : vector<64x32xf32>
    %cst_17 = arith.constant 1.000000e+00 : f32
    %14 = vector.broadcast %cst_17 : f32 to vector<64x32xf32>
    %15 = arith.addf %7, %14 : vector<64x32xf32>
    %16 = math.exp %7 : vector<64x32xf32>
    %17 = arith.select %13, %15, %16 : vector<64x32xi1>, vector<64x32xf32>
    %cst_18 = arith.constant 0.000000e+00 : f32
    %18 = vector.broadcast %cst_18 : f32 to vector<64x32xf32>
    %19 = arith.cmpf ogt, %9, %18 : vector<64x32xf32>
    %cst_19 = arith.constant 1.000000e+00 : f32
    %20 = vector.broadcast %cst_19 : f32 to vector<64x32xf32>
    %21 = arith.addf %9, %20 : vector<64x32xf32>
    %22 = math.exp %9 : vector<64x32xf32>
    %23 = arith.select %19, %21, %22 : vector<64x32xi1>, vector<64x32xf32>
    %c0_20 = arith.constant 0 : index
    %c0_21 = arith.constant 0 : index
    %24 = vector.load %arg9[%c0_20, %c0_21] : memref<32x32xf32, #tpu.memory_space<vmem>>, vector<32x32xf32>
    %cst_22 = arith.constant dense<0.000000e+00> : vector<32x32xf32>
    %25 = tpu.matmul %11, %23, %cst_22 {dimension_numbers = #tpu.dot_dimension_numbers<[1], [0], [0], [1], [0, 0, 1, 1], [], []>} : vector<32x64xf32>, vector<64x32xf32>, vector<32x32xf32> -> vector<32x32xf32>
    %26 = arith.mulf %25, %24 : vector<32x32xf32>
    %cst_23 = arith.constant dense<0.000000e+00> : vector<32xf32>
    %27 = vector.multi_reduction <add>, %23, %cst_23 [0] : vector<64x32xf32> to vector<32xf32>
    %28 = vector.shape_cast %27 : vector<32xf32> to vector<1x32xf32>
    %29 = vector.broadcast %28 : vector<1x32xf32> to vector<64x32xf32>
    %30 = arith.mulf %17, %29 : vector<64x32xf32>
    %cst_24 = arith.constant dense<0.000000e+00> : vector<64x32xf32>
    %31 = tpu.matmul %30, %24, %cst_24 {dimension_numbers = #tpu.dot_dimension_numbers<[1], [0], [0], [1], [0, 0, 1, 1], [], []>} : vector<64x32xf32>, vector<32x32xf32>, vector<64x32xf32> -> vector<64x32xf32>
    %cst_25 = arith.constant 9.99999997E-7 : f32
    %32 = vector.broadcast %cst_25 : f32 to vector<64x32xf32>
    %33 = arith.addf %31, %32 : vector<64x32xf32>
    %cst_26 = arith.constant 1.000000e+00 : f32
    %34 = vector.broadcast %cst_26 : f32 to vector<64x32xf32>
    %35 = arith.divf %34, %33 : vector<64x32xf32>
    %cst_27 = arith.constant dense<0.000000e+00> : vector<64x32xf32>
    %36 = tpu.matmul %17, %26, %cst_27 {dimension_numbers = #tpu.dot_dimension_numbers<[1], [1], [0], [0], [0, 0, 1, 0], [], []>} : vector<64x32xf32>, vector<32x32xf32>, vector<64x32xf32> -> vector<64x32xf32>
    %37 = arith.mulf %36, %35 : vector<64x32xf32>
    %c0_28 = arith.constant 0 : index
    %c0_29 = arith.constant 0 : index
    %38 = vector.load %arg8[%c0_28, %c0_29] : memref<32x32xf32, #tpu.memory_space<vmem>>, vector<32x32xf32>
    %cst_30 = arith.constant dense<0.000000e+00> : vector<64x32xf32>
    %39 = tpu.matmul %37, %38, %cst_30 {dimension_numbers = #tpu.dot_dimension_numbers<[1], [0], [0], [1], [0, 0, 1, 1], [], []>} : vector<64x32xf32>, vector<32x32xf32>, vector<64x32xf32> -> vector<64x32xf32>
    %c0_31 = arith.constant 0 : index
    %c0_32 = arith.constant 0 : index
    %40 = vector.load %arg10[%c0_31, %c0_32] : memref<1x32xf32, #tpu.memory_space<vmem>>, vector<1x32xf32>
    %c0_33 = arith.constant 0 : index
    %c0_34 = arith.constant 0 : index
    %41 = vector.load %arg11[%c0_33, %c0_34] : memref<1x32xf32, #tpu.memory_space<vmem>>, vector<1x32xf32>
    %cst_35 = arith.constant dense<0.000000e+00> : vector<64xf32>
    %42 = vector.multi_reduction <add>, %39, %cst_35 [1] : vector<64x32xf32> to vector<64xf32>
    %43 = vector.shape_cast %42 : vector<64xf32> to vector<64x1xf32>
    %cst_36 = arith.constant 3.200000e+01 : f32
    %44 = vector.broadcast %cst_36 : f32 to vector<64x1xf32>
    %45 = arith.divf %43, %44 : vector<64x1xf32>
    %46 = vector.broadcast %45 : vector<64x1xf32> to vector<64x32xf32>
    %47 = arith.subf %39, %46 : vector<64x32xf32>
    %48 = arith.mulf %47, %47 : vector<64x32xf32>
    %cst_37 = arith.constant dense<0.000000e+00> : vector<64xf32>
    %49 = vector.multi_reduction <add>, %48, %cst_37 [1] : vector<64x32xf32> to vector<64xf32>
    %50 = vector.shape_cast %49 : vector<64xf32> to vector<64x1xf32>
    %cst_38 = arith.constant 3.200000e+01 : f32
    %51 = vector.broadcast %cst_38 : f32 to vector<64x1xf32>
    %52 = arith.divf %50, %51 : vector<64x1xf32>
    %53 = vector.broadcast %45 : vector<64x1xf32> to vector<64x32xf32>
    %54 = arith.subf %39, %53 : vector<64x32xf32>
    %cst_39 = arith.constant 9.99999974E-6 : f32
    %55 = vector.broadcast %cst_39 : f32 to vector<64x1xf32>
    %56 = arith.addf %52, %55 : vector<64x1xf32>
    %57 = math.rsqrt %56 : vector<64x1xf32>
    %58 = vector.broadcast %57 : vector<64x1xf32> to vector<64x32xf32>
    %59 = arith.mulf %54, %58 : vector<64x32xf32>
    %60 = vector.broadcast %40 : vector<1x32xf32> to vector<64x32xf32>
    %61 = arith.mulf %59, %60 : vector<64x32xf32>
    %62 = vector.broadcast %41 : vector<1x32xf32> to vector<64x32xf32>
    %63 = arith.addf %61, %62 : vector<64x32xf32>
    %c0_40 = arith.constant 0 : index
    %c0_41 = arith.constant 0 : index
    %64 = vector.load %arg12[%c0_40, %c0_41] : memref<32x64xf32, #tpu.memory_space<vmem>>, vector<32x64xf32>
    %cst_42 = arith.constant dense<0.000000e+00> : vector<64x64xf32>
    %65 = tpu.matmul %1, %64, %cst_42 {dimension_numbers = #tpu.dot_dimension_numbers<[1], [0], [0], [1], [0, 0, 1, 1], [], []>} : vector<64x32xf32>, vector<32x64xf32>, vector<64x64xf32> -> vector<64x64xf32>
    %c0_43 = arith.constant 0 : index
    %c0_44 = arith.constant 0 : index
    %66 = vector.load %arg13[%c0_43, %c0_44] : memref<32x64xf32, #tpu.memory_space<vmem>>, vector<32x64xf32>
    %cst_45 = arith.constant dense<0.000000e+00> : vector<64x64xf32>
    %67 = tpu.matmul %63, %66, %cst_45 {dimension_numbers = #tpu.dot_dimension_numbers<[1], [0], [0], [1], [0, 0, 1, 1], [], []>} : vector<64x32xf32>, vector<32x64xf32>, vector<64x64xf32> -> vector<64x64xf32>
    %68 = arith.addf %65, %67 : vector<64x64xf32>
    %cst_46 = arith.constant 0.000000e+00 : f32
    %69 = vector.broadcast %cst_46 : f32 to vector<64x64xf32>
    %70 = arith.maximumf %68, %69 : vector<64x64xf32>
    %c0_47 = arith.constant 0 : index
    %c0_48 = arith.constant 0 : index
    %71 = vector.load %arg14[%c0_47, %c0_48] : memref<64x32xf32, #tpu.memory_space<vmem>>, vector<64x32xf32>
    %cst_49 = arith.constant dense<0.000000e+00> : vector<64x32xf32>
    %72 = tpu.matmul %70, %71, %cst_49 {dimension_numbers = #tpu.dot_dimension_numbers<[1], [0], [0], [1], [0, 0, 1, 1], [], []>} : vector<64x64xf32>, vector<64x32xf32>, vector<64x32xf32> -> vector<64x32xf32>
    %c0_50 = arith.constant 0 : index
    %c0_51 = arith.constant 0 : index
    %73 = vector.load %arg15[%c0_50, %c0_51] : memref<1x32xf32, #tpu.memory_space<vmem>>, vector<1x32xf32>
    %c0_52 = arith.constant 0 : index
    %c0_53 = arith.constant 0 : index
    %74 = vector.load %arg16[%c0_52, %c0_53] : memref<1x32xf32, #tpu.memory_space<vmem>>, vector<1x32xf32>
    %cst_54 = arith.constant dense<0.000000e+00> : vector<64xf32>
    %75 = vector.multi_reduction <add>, %72, %cst_54 [1] : vector<64x32xf32> to vector<64xf32>
    %76 = vector.shape_cast %75 : vector<64xf32> to vector<64x1xf32>
    %cst_55 = arith.constant 3.200000e+01 : f32
    %77 = vector.broadcast %cst_55 : f32 to vector<64x1xf32>
    %78 = arith.divf %76, %77 : vector<64x1xf32>
    %79 = vector.broadcast %78 : vector<64x1xf32> to vector<64x32xf32>
    %80 = arith.subf %72, %79 : vector<64x32xf32>
    %81 = arith.mulf %80, %80 : vector<64x32xf32>
    %cst_56 = arith.constant dense<0.000000e+00> : vector<64xf32>
    %82 = vector.multi_reduction <add>, %81, %cst_56 [1] : vector<64x32xf32> to vector<64xf32>
    %83 = vector.shape_cast %82 : vector<64xf32> to vector<64x1xf32>
    %cst_57 = arith.constant 3.200000e+01 : f32
    %84 = vector.broadcast %cst_57 : f32 to vector<64x1xf32>
    %85 = arith.divf %83, %84 : vector<64x1xf32>
    %86 = vector.broadcast %78 : vector<64x1xf32> to vector<64x32xf32>
    %87 = arith.subf %72, %86 : vector<64x32xf32>
    %cst_58 = arith.constant 9.99999974E-6 : f32
    %88 = vector.broadcast %cst_58 : f32 to vector<64x1xf32>
    %89 = arith.addf %85, %88 : vector<64x1xf32>
    %90 = math.rsqrt %89 : vector<64x1xf32>
    %91 = vector.broadcast %90 : vector<64x1xf32> to vector<64x32xf32>
    %92 = arith.mulf %87, %91 : vector<64x32xf32>
    %93 = vector.broadcast %73 : vector<1x32xf32> to vector<64x32xf32>
    %94 = arith.mulf %92, %93 : vector<64x32xf32>
    %95 = vector.broadcast %74 : vector<1x32xf32> to vector<64x32xf32>
    %96 = arith.addf %94, %95 : vector<64x32xf32>
    %c0_59 = arith.constant 0 : index
    %c0_60 = arith.constant 0 : index
    %97 = vector.load %arg17[%c0_59, %c0_60] : memref<32x64xf32, #tpu.memory_space<vmem>>, vector<32x64xf32>
    %cst_61 = arith.constant dense<0.000000e+00> : vector<64x64xf32>
    %98 = tpu.matmul %1, %97, %cst_61 {dimension_numbers = #tpu.dot_dimension_numbers<[1], [0], [0], [1], [0, 0, 1, 1], [], []>} : vector<64x32xf32>, vector<32x64xf32>, vector<64x64xf32> -> vector<64x64xf32>
    %c0_62 = arith.constant 0 : index
    %c0_63 = arith.constant 0 : index
    %99 = vector.load %arg18[%c0_62, %c0_63] : memref<32x64xf32, #tpu.memory_space<vmem>>, vector<32x64xf32>
    %cst_64 = arith.constant dense<0.000000e+00> : vector<64x64xf32>
    %100 = tpu.matmul %96, %99, %cst_64 {dimension_numbers = #tpu.dot_dimension_numbers<[1], [0], [0], [1], [0, 0, 1, 1], [], []>} : vector<64x32xf32>, vector<32x64xf32>, vector<64x64xf32> -> vector<64x64xf32>
    %101 = arith.addf %98, %100 : vector<64x64xf32>
    %cst_65 = arith.constant 0.000000e+00 : f32
    %102 = vector.broadcast %cst_65 : f32 to vector<64x64xf32>
    %103 = arith.maximumf %101, %102 : vector<64x64xf32>
    %c0_66 = arith.constant 0 : index
    %c0_67 = arith.constant 0 : index
    %104 = vector.load %arg19[%c0_66, %c0_67] : memref<64x32xf32, #tpu.memory_space<vmem>>, vector<64x32xf32>
    %cst_68 = arith.constant dense<0.000000e+00> : vector<64x32xf32>
    %105 = tpu.matmul %103, %104, %cst_68 {dimension_numbers = #tpu.dot_dimension_numbers<[1], [0], [0], [1], [0, 0, 1, 1], [], []>} : vector<64x64xf32>, vector<64x32xf32>, vector<64x32xf32> -> vector<64x32xf32>
    %cst_69 = arith.constant 1.000000e-01 : f32
    %106 = vector.broadcast %cst_69 : f32 to vector<64x32xf32>
    %107 = arith.mulf %105, %106 : vector<64x32xf32>
    %108 = arith.addf %96, %107 : vector<64x32xf32>
    %c0_70 = arith.constant 0 : index
    %c0_71 = arith.constant 0 : index
    %109 = vector.load %arg6[%c0_70, %c0_71] : memref<32x32xf32, #tpu.memory_space<vmem>>, vector<32x32xf32>
    %cst_72 = arith.constant dense<0.000000e+00> : vector<64x32xf32>
    %110 = tpu.matmul %3, %109, %cst_72 {dimension_numbers = #tpu.dot_dimension_numbers<[1], [0], [0], [1], [0, 0, 1, 1], [], []>} : vector<64x32xf32>, vector<32x32xf32>, vector<64x32xf32> -> vector<64x32xf32>
    %c0_73 = arith.constant 0 : index
    %c0_74 = arith.constant 0 : index
    %111 = vector.load %arg20[%c0_73, %c0_74] : memref<32x72xf32, #tpu.memory_space<vmem>>, vector<32x72xf32>
    %cst_75 = arith.constant dense<0.000000e+00> : vector<64x72xf32>
    %112 = tpu.matmul %7, %111, %cst_75 {dimension_numbers = #tpu.dot_dimension_numbers<[1], [0], [0], [1], [0, 0, 1, 1], [], []>} : vector<64x32xf32>, vector<32x72xf32>, vector<64x72xf32> -> vector<64x72xf32>
    %c0_76 = arith.constant 0 : index
    %c0_77 = arith.constant 0 : index
    %113 = vector.load %arg21[%c0_76, %c0_77] : memref<32x72xf32, #tpu.memory_space<vmem>>, vector<32x72xf32>
    %cst_78 = arith.constant dense<0.000000e+00> : vector<64x72xf32>
    %114 = tpu.matmul %9, %113, %cst_78 {dimension_numbers = #tpu.dot_dimension_numbers<[1], [0], [0], [1], [0, 0, 1, 1], [], []>} : vector<64x32xf32>, vector<32x72xf32>, vector<64x72xf32> -> vector<64x72xf32>
    %115 = arith.addf %112, %114 : vector<64x72xf32>
    %c0_79 = arith.constant 0 : index
    %c0_80 = arith.constant 0 : index
    %116 = vector.load %arg22[%c0_79, %c0_80] : memref<32x72xf32, #tpu.memory_space<vmem>>, vector<32x72xf32>
    %cst_81 = arith.constant dense<0.000000e+00> : vector<64x72xf32>
    %117 = tpu.matmul %110, %116, %cst_81 {dimension_numbers = #tpu.dot_dimension_numbers<[1], [0], [0], [1], [0, 0, 1, 1], [], []>} : vector<64x32xf32>, vector<32x72xf32>, vector<64x72xf32> -> vector<64x72xf32>
    %118 = arith.addf %115, %117 : vector<64x72xf32>
    %c0_82 = arith.constant 0 : index
    %c0_83 = arith.constant 0 : index
    %119 = vector.load %arg23[%c0_82, %c0_83] : memref<1x72xf32, #tpu.memory_space<vmem>>, vector<1x72xf32>
    %120 = vector.broadcast %119 : vector<1x72xf32> to vector<64x72xf32>
    %121 = arith.addf %118, %120 : vector<64x72xf32>
    %cst_84 = arith.constant 0.000000e+00 : f32
    %122 = vector.broadcast %cst_84 : f32 to vector<96x72xf32>
    %c0_85 = arith.constant 0 : index
    %c0_86 = arith.constant 0 : index
    %123 = vector.load %arg29[%c0_85, %c0_86] : memref<96x72xf32, #tpu.memory_space<vmem>>, vector<96x72xf32>
    tpu.vector_store %arg29[%c0_85, %c0_86], %122 {strides = array<i32>} : memref<96x72xf32, #tpu.memory_space<vmem>>, vector<96x72xf32>,
    %c16 = arith.constant 16 : index
    %c0_87 = arith.constant 0 : index
    %124 = vector.load %arg29[%c16, %c0_87] : memref<96x72xf32, #tpu.memory_space<vmem>>, vector<64x72xf32>
    tpu.vector_store %arg29[%c16, %c0_87], %121 {strides = array<i32>} : memref<96x72xf32, #tpu.memory_space<vmem>>, vector<64x72xf32>,
    %cst_88 = arith.constant 0.000000e+00 : f32
    %125 = vector.broadcast %cst_88 : f32 to vector<64x32xf32>
    %c7 = arith.constant 7 : index
    %c0_89 = arith.constant 0 : index
    %126 = vector.load %arg29[%c7, %c0_89] : memref<96x72xf32, #tpu.memory_space<vmem>>, vector<64x72xf32>
    %c0_90 = arith.constant 0 : index
    %c0_91 = arith.constant 0 : index
    %c0_92 = arith.constant 0 : index
    %127 = vector.load %arg26[%c0_90, %c0_91, %c0_92] : memref<9x64x1xf32, #tpu.memory_space<vmem>>, vector<1x64x1xf32>
    %128 = vector.shape_cast %127 : vector<1x64x1xf32> to vector<64x1xf32>
    %129 = vector.broadcast %128 : vector<64x1xf32> to vector<64x72xf32>
    %130 = arith.mulf %126, %129 : vector<64x72xf32>
    %c0_93 = arith.constant 0 : index
    %c0_94 = arith.constant 0 : index
    %c0_95 = arith.constant 0 : index
    %131 = vector.load %arg24[%c0_93, %c0_94, %c0_95] : memref<9x72x32xf32, #tpu.memory_space<vmem>>, vector<1x72x32xf32>
    %132 = vector.shape_cast %131 : vector<1x72x32xf32> to vector<72x32xf32>
    %cst_96 = arith.constant dense<0.000000e+00> : vector<64x32xf32>
    %133 = tpu.matmul %130, %132, %cst_96 {dimension_numbers = #tpu.dot_dimension_numbers<[1], [0], [0], [1], [0, 0, 1, 1], [], []>} : vector<64x72xf32>, vector<72x32xf32>, vector<64x32xf32> -> vector<64x32xf32>
    %134 = arith.addf %125, %133 : vector<64x32xf32>
    %c8 = arith.constant 8 : index
    %c0_97 = arith.constant 0 : index
    %135 = vector.load %arg29[%c8, %c0_97] : memref<96x72xf32, #tpu.memory_space<vmem>>, vector<64x72xf32>
    %c1 = arith.constant 1 : index
    %c0_98 = arith.constant 0 : index
    %c0_99 = arith.constant 0 : index
    %136 = vector.load %arg26[%c1, %c0_98, %c0_99] : memref<9x64x1xf32, #tpu.memory_space<vmem>>, vector<1x64x1xf32>
    %137 = vector.shape_cast %136 : vector<1x64x1xf32> to vector<64x1xf32>
    %138 = vector.broadcast %137 : vector<64x1xf32> to vector<64x72xf32>
    %139 = arith.mulf %135, %138 : vector<64x72xf32>
    %c1_100 = arith.constant 1 : index
    %c0_101 = arith.constant 0 : index
    %c0_102 = arith.constant 0 : index
    %140 = vector.load %arg24[%c1_100, %c0_101, %c0_102] : memref<9x72x32xf32, #tpu.memory_space<vmem>>, vector<1x72x32xf32>
    %141 = vector.shape_cast %140 : vector<1x72x32xf32> to vector<72x32xf32>
    %cst_103 = arith.constant dense<0.000000e+00> : vector<64x32xf32>
    %142 = tpu.matmul %139, %141, %cst_103 {dimension_numbers = #tpu.dot_dimension_numbers<[1], [0], [0], [1], [0, 0, 1, 1], [], []>} : vector<64x72xf32>, vector<72x32xf32>, vector<64x32xf32> -> vector<64x32xf32>
    %143 = arith.addf %134, %142 : vector<64x32xf32>
    %c9 = arith.constant 9 : index
    %c0_104 = arith.constant 0 : index
    %144 = vector.load %arg29[%c9, %c0_104] : memref<96x72xf32, #tpu.memory_space<vmem>>, vector<64x72xf32>
    %c2 = arith.constant 2 : index
    %c0_105 = arith.constant 0 : index
    %c0_106 = arith.constant 0 : index
    %145 = vector.load %arg26[%c2, %c0_105, %c0_106] : memref<9x64x1xf32, #tpu.memory_space<vmem>>, vector<1x64x1xf32>
    %146 = vector.shape_cast %145 : vector<1x64x1xf32> to vector<64x1xf32>
    %147 = vector.broadcast %146 : vector<64x1xf32> to vector<64x72xf32>
    %148 = arith.mulf %144, %147 : vector<64x72xf32>
    %c2_107 = arith.constant 2 : index
    %c0_108 = arith.constant 0 : index
    %c0_109 = arith.constant 0 : index
    %149 = vector.load %arg24[%c2_107, %c0_108, %c0_109] : memref<9x72x32xf32, #tpu.memory_space<vmem>>, vector<1x72x32xf32>
    %150 = vector.shape_cast %149 : vector<1x72x32xf32> to vector<72x32xf32>
    %cst_110 = arith.constant dense<0.000000e+00> : vector<64x32xf32>
    %151 = tpu.matmul %148, %150, %cst_110 {dimension_numbers = #tpu.dot_dimension_numbers<[1], [0], [0], [1], [0, 0, 1, 1], [], []>} : vector<64x72xf32>, vector<72x32xf32>, vector<64x32xf32> -> vector<64x32xf32>
    %152 = arith.addf %143, %151 : vector<64x32xf32>
    %c15 = arith.constant 15 : index
    %c0_111 = arith.constant 0 : index
    %153 = vector.load %arg29[%c15, %c0_111] : memref<96x72xf32, #tpu.memory_space<vmem>>, vector<64x72xf32>
    %c3 = arith.constant 3 : index
    %c0_112 = arith.constant 0 : index
    %c0_113 = arith.constant 0 : index
    %154 = vector.load %arg26[%c3, %c0_112, %c0_113] : memref<9x64x1xf32, #tpu.memory_space<vmem>>, vector<1x64x1xf32>
    %155 = vector.shape_cast %154 : vector<1x64x1xf32> to vector<64x1xf32>
    %156 = vector.broadcast %155 : vector<64x1xf32> to vector<64x72xf32>
    %157 = arith.mulf %153, %156 : vector<64x72xf32>
    %c3_114 = arith.constant 3 : index
    %c0_115 = arith.constant 0 : index
    %c0_116 = arith.constant 0 : index
    %158 = vector.load %arg24[%c3_114, %c0_115, %c0_116] : memref<9x72x32xf32, #tpu.memory_space<vmem>>, vector<1x72x32xf32>
    %159 = vector.shape_cast %158 : vector<1x72x32xf32> to vector<72x32xf32>
    %cst_117 = arith.constant dense<0.000000e+00> : vector<64x32xf32>
    %160 = tpu.matmul %157, %159, %cst_117 {dimension_numbers = #tpu.dot_dimension_numbers<[1], [0], [0], [1], [0, 0, 1, 1], [], []>} : vector<64x72xf32>, vector<72x32xf32>, vector<64x32xf32> -> vector<64x32xf32>
    %161 = arith.addf %152, %160 : vector<64x32xf32>
    %c16_118 = arith.constant 16 : index
    %c0_119 = arith.constant 0 : index
    %162 = vector.load %arg29[%c16_118, %c0_119] : memref<96x72xf32, #tpu.memory_space<vmem>>, vector<64x72xf32>
    %c4 = arith.constant 4 : index
    %c0_120 = arith.constant 0 : index
    %c0_121 = arith.constant 0 : index
    %163 = vector.load %arg26[%c4, %c0_120, %c0_121] : memref<9x64x1xf32, #tpu.memory_space<vmem>>, vector<1x64x1xf32>
    %164 = vector.shape_cast %163 : vector<1x64x1xf32> to vector<64x1xf32>
    %165 = vector.broadcast %164 : vector<64x1xf32> to vector<64x72xf32>
    %166 = arith.mulf %162, %165 : vector<64x72xf32>
    %c4_122 = arith.constant 4 : index
    %c0_123 = arith.constant 0 : index
    %c0_124 = arith.constant 0 : index
    %167 = vector.load %arg24[%c4_122, %c0_123, %c0_124] : memref<9x72x32xf32, #tpu.memory_space<vmem>>, vector<1x72x32xf32>
    %168 = vector.shape_cast %167 : vector<1x72x32xf32> to vector<72x32xf32>
    %cst_125 = arith.constant dense<0.000000e+00> : vector<64x32xf32>
    %169 = tpu.matmul %166, %168, %cst_125 {dimension_numbers = #tpu.dot_dimension_numbers<[1], [0], [0], [1], [0, 0, 1, 1], [], []>} : vector<64x72xf32>, vector<72x32xf32>, vector<64x32xf32> -> vector<64x32xf32>
    %170 = arith.addf %161, %169 : vector<64x32xf32>
    %c17 = arith.constant 17 : index
    %c0_126 = arith.constant 0 : index
    %171 = vector.load %arg29[%c17, %c0_126] : memref<96x72xf32, #tpu.memory_space<vmem>>, vector<64x72xf32>
    %c5 = arith.constant 5 : index
    %c0_127 = arith.constant 0 : index
    %c0_128 = arith.constant 0 : index
    %172 = vector.load %arg26[%c5, %c0_127, %c0_128] : memref<9x64x1xf32, #tpu.memory_space<vmem>>, vector<1x64x1xf32>
    %173 = vector.shape_cast %172 : vector<1x64x1xf32> to vector<64x1xf32>
    %174 = vector.broadcast %173 : vector<64x1xf32> to vector<64x72xf32>
    %175 = arith.mulf %171, %174 : vector<64x72xf32>
    %c5_129 = arith.constant 5 : index
    %c0_130 = arith.constant 0 : index
    %c0_131 = arith.constant 0 : index
    %176 = vector.load %arg24[%c5_129, %c0_130, %c0_131] : memref<9x72x32xf32, #tpu.memory_space<vmem>>, vector<1x72x32xf32>
    %177 = vector.shape_cast %176 : vector<1x72x32xf32> to vector<72x32xf32>
    %cst_132 = arith.constant dense<0.000000e+00> : vector<64x32xf32>
    %178 = tpu.matmul %175, %177, %cst_132 {dimension_numbers = #tpu.dot_dimension_numbers<[1], [0], [0], [1], [0, 0, 1, 1], [], []>} : vector<64x72xf32>, vector<72x32xf32>, vector<64x32xf32> -> vector<64x32xf32>
    %179 = arith.addf %170, %178 : vector<64x32xf32>
    %c23 = arith.constant 23 : index
    %c0_133 = arith.constant 0 : index
    %180 = vector.load %arg29[%c23, %c0_133] : memref<96x72xf32, #tpu.memory_space<vmem>>, vector<64x72xf32>
    %c6 = arith.constant 6 : index
    %c0_134 = arith.constant 0 : index
    %c0_135 = arith.constant 0 : index
    %181 = vector.load %arg26[%c6, %c0_134, %c0_135] : memref<9x64x1xf32, #tpu.memory_space<vmem>>, vector<1x64x1xf32>
    %182 = vector.shape_cast %181 : vector<1x64x1xf32> to vector<64x1xf32>
    %183 = vector.broadcast %182 : vector<64x1xf32> to vector<64x72xf32>
    %184 = arith.mulf %180, %183 : vector<64x72xf32>
    %c6_136 = arith.constant 6 : index
    %c0_137 = arith.constant 0 : index
    %c0_138 = arith.constant 0 : index
    %185 = vector.load %arg24[%c6_136, %c0_137, %c0_138] : memref<9x72x32xf32, #tpu.memory_space<vmem>>, vector<1x72x32xf32>
    %186 = vector.shape_cast %185 : vector<1x72x32xf32> to vector<72x32xf32>
    %cst_139 = arith.constant dense<0.000000e+00> : vector<64x32xf32>
    %187 = tpu.matmul %184, %186, %cst_139 {dimension_numbers = #tpu.dot_dimension_numbers<[1], [0], [0], [1], [0, 0, 1, 1], [], []>} : vector<64x72xf32>, vector<72x32xf32>, vector<64x32xf32> -> vector<64x32xf32>
    %188 = arith.addf %179, %187 : vector<64x32xf32>
    %c24 = arith.constant 24 : index
    %c0_140 = arith.constant 0 : index
    %189 = vector.load %arg29[%c24, %c0_140] : memref<96x72xf32, #tpu.memory_space<vmem>>, vector<64x72xf32>
    %c7_141 = arith.constant 7 : index
    %c0_142 = arith.constant 0 : index
    %c0_143 = arith.constant 0 : index
    %190 = vector.load %arg26[%c7_141, %c0_142, %c0_143] : memref<9x64x1xf32, #tpu.memory_space<vmem>>, vector<1x64x1xf32>
    %191 = vector.shape_cast %190 : vector<1x64x1xf32> to vector<64x1xf32>
    %192 = vector.broadcast %191 : vector<64x1xf32> to vector<64x72xf32>
    %193 = arith.mulf %189, %192 : vector<64x72xf32>
    %c7_144 = arith.constant 7 : index
    %c0_145 = arith.constant 0 : index
    %c0_146 = arith.constant 0 : index
    %194 = vector.load %arg24[%c7_144, %c0_145, %c0_146] : memref<9x72x32xf32, #tpu.memory_space<vmem>>, vector<1x72x32xf32>
    %195 = vector.shape_cast %194 : vector<1x72x32xf32> to vector<72x32xf32>
    %cst_147 = arith.constant dense<0.000000e+00> : vector<64x32xf32>
    %196 = tpu.matmul %193, %195, %cst_147 {dimension_numbers = #tpu.dot_dimension_numbers<[1], [0], [0], [1], [0, 0, 1, 1], [], []>} : vector<64x72xf32>, vector<72x32xf32>, vector<64x32xf32> -> vector<64x32xf32>
    %197 = arith.addf %188, %196 : vector<64x32xf32>
    %c25 = arith.constant 25 : index
    %c0_148 = arith.constant 0 : index
    %198 = vector.load %arg29[%c25, %c0_148] : memref<96x72xf32, #tpu.memory_space<vmem>>, vector<64x72xf32>
    %c8_149 = arith.constant 8 : index
    %c0_150 = arith.constant 0 : index
    %c0_151 = arith.constant 0 : index
    %199 = vector.load %arg26[%c8_149, %c0_150, %c0_151] : memref<9x64x1xf32, #tpu.memory_space<vmem>>, vector<1x64x1xf32>
    %200 = vector.shape_cast %199 : vector<1x64x1xf32> to vector<64x1xf32>
    %201 = vector.broadcast %200 : vector<64x1xf32> to vector<64x72xf32>
    %202 = arith.mulf %198, %201 : vector<64x72xf32>
    %c8_152 = arith.constant 8 : index
    %c0_153 = arith.constant 0 : index
    %c0_154 = arith.constant 0 : index
    %203 = vector.load %arg24[%c8_152, %c0_153, %c0_154] : memref<9x72x32xf32, #tpu.memory_space<vmem>>, vector<1x72x32xf32>
    %204 = vector.shape_cast %203 : vector<1x72x32xf32> to vector<72x32xf32>
    %cst_155 = arith.constant dense<0.000000e+00> : vector<64x32xf32>
    %205 = tpu.matmul %202, %204, %cst_155 {dimension_numbers = #tpu.dot_dimension_numbers<[1], [0], [0], [1], [0, 0, 1, 1], [], []>} : vector<64x72xf32>, vector<72x32xf32>, vector<64x32xf32> -> vector<64x32xf32>
    %206 = arith.addf %197, %205 : vector<64x32xf32>
    %c0_156 = arith.constant 0 : index
    %c0_157 = arith.constant 0 : index
    %207 = vector.load %arg27[%c0_156, %c0_157] : memref<1x1xf32, #tpu.memory_space<vmem>>, vector<1x1xf32>
    %c0_158 = arith.constant 0 : index
    %c0_159 = arith.constant 0 : index
    %208 = vector.load %arg25[%c0_158, %c0_159] : memref<1x32xf32, #tpu.memory_space<vmem>>, vector<1x32xf32>
    %209 = vector.broadcast %208 : vector<1x32xf32> to vector<64x32xf32>
    %210 = arith.addf %206, %209 : vector<64x32xf32>
    %211 = vector.broadcast %207 : vector<1x1xf32> to vector<64x32xf32>
    %212 = arith.mulf %211, %210 : vector<64x32xf32>
    %213 = arith.addf %108, %212 : vector<64x32xf32>
    %214 = arith.addf %1, %213 : vector<64x32xf32>
    %c0_160 = arith.constant 0 : index
    %c0_161 = arith.constant 0 : index
    %c0_162 = arith.constant 0 : index
    %215 = vector.load %arg28[%c0_160, %c0_161, %c0_162] : memref<1x64x32xf32, #tpu.memory_space<vmem>>, vector<1x64x32xf32>
    %216 = vector.shape_cast %215 : vector<1x64x32xf32> to vector<64x32xf32>
    %217 = vector.shape_cast %214 : vector<64x32xf32> to vector<1x64x32xf32>
    tpu.vector_store %arg28[%c0_160, %c0_161, %c0_162], %217 {strides = array<i32>} : memref<1x64x32xf32, #tpu.memory_space<vmem>>, vector<1x64x32xf32>,
    return
  }
  func.func @transform_0(%arg0: i32) -> (i32, i32, i32) {
    %c0_i32 = arith.constant 0 : i32
    %c0_i32_0 = arith.constant 0 : i32
    %c0_i32_1 = arith.constant 0 : i32
    return %arg0, %c0_i32, %c0_i32_0 : i32, i32, i32
  }
  func.func @transform_1(%arg0: i32) -> (i32, i32, i32) {
    %c0_i32 = arith.constant 0 : i32
    %c0_i32_0 = arith.constant 0 : i32
    %c0_i32_1 = arith.constant 0 : i32
    return %arg0, %c0_i32, %c0_i32_0 : i32, i32, i32
  }
  func.func @transform_2(%arg0: i32) -> (i32, i32, i32) {
    %c0_i32 = arith.constant 0 : i32
    %c0_i32_0 = arith.constant 0 : i32
    %c0_i32_1 = arith.constant 0 : i32
    return %arg0, %c0_i32, %c0_i32_0 : i32, i32, i32
  }
  func.func @transform_3(%arg0: i32) -> (i32, i32) {
    %c0_i32 = arith.constant 0 : i32
    %c0_i32_0 = arith.constant 0 : i32
    %c0_i32_1 = arith.constant 0 : i32
    return %c0_i32, %c0_i32_0 : i32, i32
  }
  func.func @transform_4(%arg0: i32) -> (i32, i32) {
    %c0_i32 = arith.constant 0 : i32
    %c0_i32_0 = arith.constant 0 : i32
    %c0_i32_1 = arith.constant 0 : i32
    return %c0_i32, %c0_i32_0 : i32, i32
  }
  func.func @transform_5(%arg0: i32) -> (i32, i32) {
    %c0_i32 = arith.constant 0 : i32
    %c0_i32_0 = arith.constant 0 : i32
    %c0_i32_1 = arith.constant 0 : i32
    return %c0_i32, %c0_i32_0 : i32, i32
  }
  func.func @transform_6(%arg0: i32) -> (i32, i32) {
    %c0_i32 = arith.constant 0 : i32
    %c0_i32_0 = arith.constant 0 : i32
    %c0_i32_1 = arith.constant 0 : i32
    return %c0_i32, %c0_i32_0 : i32, i32
  }
  func.func @transform_7(%arg0: i32) -> (i32, i32) {
    %c0_i32 = arith.constant 0 : i32
    %c0_i32_0 = arith.constant 0 : i32
    %c0_i32_1 = arith.constant 0 : i32
    return %c0_i32, %c0_i32_0 : i32, i32
  }
  func.func @transform_8(%arg0: i32) -> (i32, i32) {
    %c0_i32 = arith.constant 0 : i32
    %c0_i32_0 = arith.constant 0 : i32
    %c0_i32_1 = arith.constant 0 : i32
    return %c0_i32, %c0_i32_0 : i32, i32
  }
  func.func @transform_9(%arg0: i32) -> (i32, i32) {
    %c0_i32 = arith.constant 0 : i32
    %c0_i32_0 = arith.constant 0 : i32
    %c0_i32_1 = arith.constant 0 : i32
    return %c0_i32, %c0_i32_0 : i32, i32
  }
  func.func @transform_10(%arg0: i32) -> (i32, i32) {
    %c0_i32 = arith.constant 0 : i32
    %c0_i32_0 = arith.constant 0 : i32
    %c0_i32_1 = arith.constant 0 : i32
    return %c0_i32, %c0_i32_0 : i32, i32
  }
  func.func @transform_11(%arg0: i32) -> (i32, i32) {
    %c0_i32 = arith.constant 0 : i32
    %c0_i32_0 = arith.constant 0 : i32
    %c0_i32_1 = arith.constant 0 : i32
    return %c0_i32, %c0_i32_0 : i32, i32
  }
  func.func @transform_12(%arg0: i32) -> (i32, i32) {
    %c0_i32 = arith.constant 0 : i32
    %c0_i32_0 = arith.constant 0 : i32
    %c0_i32_1 = arith.constant 0 : i32
    return %c0_i32, %c0_i32_0 : i32, i32
  }
  func.func @transform_13(%arg0: i32) -> (i32, i32) {
    %c0_i32 = arith.constant 0 : i32
    %c0_i32_0 = arith.constant 0 : i32
    %c0_i32_1 = arith.constant 0 : i32
    return %c0_i32, %c0_i32_0 : i32, i32
  }
  func.func @transform_14(%arg0: i32) -> (i32, i32) {
    %c0_i32 = arith.constant 0 : i32
    %c0_i32_0 = arith.constant 0 : i32
    %c0_i32_1 = arith.constant 0 : i32
    return %c0_i32, %c0_i32_0 : i32, i32
  }
  func.func @transform_15(%arg0: i32) -> (i32, i32) {
    %c0_i32 = arith.constant 0 : i32
    %c0_i32_0 = arith.constant 0 : i32
    %c0_i32_1 = arith.constant 0 : i32
    return %c0_i32, %c0_i32_0 : i32, i32
  }
  func.func @transform_16(%arg0: i32) -> (i32, i32) {
    %c0_i32 = arith.constant 0 : i32
    %c0_i32_0 = arith.constant 0 : i32
    %c0_i32_1 = arith.constant 0 : i32
    return %c0_i32, %c0_i32_0 : i32, i32
  }
  func.func @transform_17(%arg0: i32) -> (i32, i32) {
    %c0_i32 = arith.constant 0 : i32
    %c0_i32_0 = arith.constant 0 : i32
    %c0_i32_1 = arith.constant 0 : i32
    return %c0_i32, %c0_i32_0 : i32, i32
  }
  func.func @transform_18(%arg0: i32) -> (i32, i32) {
    %c0_i32 = arith.constant 0 : i32
    %c0_i32_0 = arith.constant 0 : i32
    %c0_i32_1 = arith.constant 0 : i32
    return %c0_i32, %c0_i32_0 : i32, i32
  }
  func.func @transform_19(%arg0: i32) -> (i32, i32) {
    %c0_i32 = arith.constant 0 : i32
    %c0_i32_0 = arith.constant 0 : i32
    %c0_i32_1 = arith.constant 0 : i32
    return %c0_i32, %c0_i32_0 : i32, i32
  }
  func.func @transform_20(%arg0: i32) -> (i32, i32) {
    %c0_i32 = arith.constant 0 : i32
    %c0_i32_0 = arith.constant 0 : i32
    %c0_i32_1 = arith.constant 0 : i32
    return %c0_i32, %c0_i32_0 : i32, i32
  }
  func.func @transform_21(%arg0: i32) -> (i32, i32) {
    %c0_i32 = arith.constant 0 : i32
    %c0_i32_0 = arith.constant 0 : i32
    %c0_i32_1 = arith.constant 0 : i32
    return %c0_i32, %c0_i32_0 : i32, i32
  }
  func.func @transform_22(%arg0: i32) -> (i32, i32) {
    %c0_i32 = arith.constant 0 : i32
    %c0_i32_0 = arith.constant 0 : i32
    %c0_i32_1 = arith.constant 0 : i32
    return %c0_i32, %c0_i32_0 : i32, i32
  }
  func.func @transform_23(%arg0: i32) -> (i32, i32, i32) {
    %c0_i32 = arith.constant 0 : i32
    %c0_i32_0 = arith.constant 0 : i32
    %c0_i32_1 = arith.constant 0 : i32
    %c0_i32_2 = arith.constant 0 : i32
    return %c0_i32, %c0_i32_0, %c0_i32_1 : i32, i32, i32
  }
  func.func @transform_24(%arg0: i32) -> (i32, i32) {
    %c0_i32 = arith.constant 0 : i32
    %c0_i32_0 = arith.constant 0 : i32
    %c0_i32_1 = arith.constant 0 : i32
    return %c0_i32, %c0_i32_0 : i32, i32
  }
  func.func @transform_25(%arg0: i32) -> (i32, i32, i32) {
    %c0_i32 = arith.constant 0 : i32
    %c0_i32_0 = arith.constant 0 : i32
    %c0_i32_1 = arith.constant 0 : i32
    %c0_i32_2 = arith.constant 0 : i32
    return %c0_i32, %c0_i32_0, %c0_i32_1 : i32, i32, i32
  }
  func.func @transform_26(%arg0: i32) -> (i32, i32) {
    %c0_i32 = arith.constant 0 : i32
    %c0_i32_0 = arith.constant 0 : i32
    %c0_i32_1 = arith.constant 0 : i32
    return %c0_i32, %c0_i32_0 : i32, i32
  }
  func.func @transform_27(%arg0: i32) -> (i32, i32, i32) {
    %c0_i32 = arith.constant 0 : i32
    %c0_i32_0 = arith.constant 0 : i32
    %c0_i32_1 = arith.constant 0 : i32
    return %arg0, %c0_i32, %c0_i32_0 : i32, i32, i32
  }
}

</mosaic_0001>

<bundles_post_ra>
// kernel: tpu_custom_call.1
= control target key start
LH: loop header
LB: loop body
LE: loop exit
PB: predicated region body
PF: predicated region fallthrough
CT: control target
= control target key end

     0   :  { %s8854_s0 = inlined_call_operand.vmem [shape: f32[2,64,32], index: 0, kind: input, shape index: {}]   ;;  %s8855_s1 = inlined_call_operand.vmem [shape: f32[2,64,32], index: 1, kind: input, shape index: {}]   ;;  %s8856_s2 = inlined_call_operand.vmem [shape: f32[2,32,64], index: 2, kind: input, shape index: {}]   ;;  %s8857_s3 = inlined_call_operand.vmem [shape: f32[32,32], index: 3, kind: input, shape index: {}]   ;;  %s8858_s4 = inlined_call_operand.vmem [shape: f32[32,32], index: 4, kind: input, shape index: {}]   ;;  %s8859_s5 = inlined_call_operand.vmem [shape: f32[32,32], index: 5, kind: input, shape index: {}]   ;;  %s8860_s6 = inlined_call_operand.vmem [shape: f32[32,32], index: 6, kind: input, shape index: {}]   ;;  %s8861_s7 = inlined_call_operand.vmem [shape: f32[32,32], index: 7, kind: input, shape index: {}]   ;;  %s8862_s8 = inlined_call_operand.vmem [shape: f32[32,32], index: 8, kind: input, shape index: {}]   ;;  %s8863_s9 = inlined_call_operand.vmem [shape: f32[1,32], index: 9, kind: input, shape index: {}]   ;;  %s8864_s10 = inlined_call_operand.vmem [shape: f32[1,32], index: 10, kind: input, shape index: {}]   ;;  %s8865_s11 = inlined_call_operand.vmem [shape: f32[32,64], index: 11, kind: input, shape index: {}]   ;;  %s8866_s12 = inlined_call_operand.vmem [shape: f32[32,64], index: 12, kind: input, shape index: {}]   ;;  %s8867_s13 = inlined_call_operand.vmem [shape: f32[64,32], index: 13, kind: input, shape index: {}]   ;;  %s8868_s14 = inlined_call_operand.vmem [shape: f32[1,32], index: 14, kind: input, shape index: {}]   ;;  %s8869_s15 = inlined_call_operand.vmem [shape: f32[1,32], index: 15, kind: input, shape index: {}]   ;;  %s8870_s16 = inlined_call_operand.vmem [shape: f32[32,64], index: 16, kind: input, shape index: {}]   ;;  %s8871_s17 = inlined_call_operand.vmem [shape: f32[32,64], index: 17, kind: input, shape index: {}]   ;;  %s8872_s18 = inlined_call_operand.vmem [shape: f32[64,32], index: 18, kind: input, shape index: {}]   ;;  %s8873_s19 = inlined_call_operand.vmem [shape: f32[32,72], index: 19, kind: input, shape index: {}]   ;;  %s8874_s20 = inlined_call_operand.vmem [shape: f32[32,72], index: 20, kind: input, shape index: {}]   ;;  %s8875_s21 = inlined_call_operand.vmem [shape: f32[32,72], index: 21, kind: input, shape index: {}]   ;;  %s8876_s22 = inlined_call_operand.vmem [shape: f32[1,72], index: 22, kind: input, shape index: {}]   ;;  %s8877_s23 = inlined_call_operand.vmem [shape: f32[9,72,32], index: 23, kind: input, shape index: {}]   ;;  %s8878_s24 = inlined_call_operand.vmem [shape: f32[1,32], index: 24, kind: input, shape index: {}]   ;;  %s8879_s25 = inlined_call_operand.vmem [shape: f32[9,64,1], index: 25, kind: input, shape index: {}]   ;;  %s8880_s26 = inlined_call_operand.<no memory space> [shape: f32[1,1], index: 26, kind: input, shape index: {}]   ;;  %s8881_s27 = inlined_call_operand.vmem [shape: f32[2,64,32], index: 27, kind: output, shape index: {}]  }
   0x1   :  { %8901 = sst [smem:[#allocation28_spill]] %s8854_s0  ;;  %v32_v0 = vstv %s8880_s26 }
   0x2   :  { %8902 = sst [smem:[#allocation29_spill]] %s8855_s1  ;;  %33 = vst [vmem:[#allocation3] sm:$0x1] %v32_v0 }
   0x3   :  { %8903 = sst [smem:[#allocation30_spill]] %s8856_s2 }
   0x4   :  { %8904 = sst [smem:[#allocation31_spill]] %s8857_s3 }
   0x5   :  { %8905 = sst [smem:[#allocation32_spill]] %s8858_s4 }
   0x6   :  { %8906 = sst [smem:[#allocation33_spill]] %s8859_s5 }
   0x7   :  { %8907 = sst [smem:[#allocation34_spill]] %s8860_s6 }
   0x8   :  { %8908 = sst [smem:[#allocation35_spill]] %s8861_s7 }
   0x9   :  { %8909 = sst [smem:[#allocation36_spill]] %s8862_s8  ;;  %s7164_s8 = smov 0  }
   0xa   :  { %8910 = sst [smem:[#allocation37_spill]] %s8863_s9 }
   0xb   :  { %8911 = sst [smem:[#allocation38_spill]] %s8864_s10 }
   0xc   :  { %8912 = sst [smem:[#allocation39_spill]] %s8865_s11 }
   0xd LB: > { %s5528_s30 = sadd.s32 4294967295, %s7017_s8   ;;  %p5532_p0 = scmp.ge.s32.totalorder %s7017_s8, 1  ;;  %s7017_s8 = sphi %s7164_s8, %s39_s8  }
   0xe   : > { %p759_p1 = scmp.lt.s32.totalorder %s7017_s8, 3 }
  0x10   : > { %p760_p2 = pnand %p5532_p0, %p759_p1 }
  0x12   : > { %763 = sbr.rel (%p760_p2) target bundleno = 2659 (0xa63), region = 128 }
  0x17   : > { %s8913_s28 = sld [smem:[#allocation32_spill]]  ;;  %p841_p3 = scmp.lt.s32.totalorder %s5528_s30, 1  ;;  %vm885_vm0 = vcmask 261120   ;;  %vm1333_vm3 = vcmask 523264  }
  0x18   : > { %s8914_s1 = sld [smem:[#allocation31_spill]] }
  0x19   : > { %s8974_s30 = smov (!%p841_p3, %s5528_s30), 1  ;;  %s8915_s29 = sld [smem:[#allocation29_spill]] }
  0x1a   : > { %s7193_s26 = sshll.u32 %s8974_s30, 6  ;;  %s5892_s11 = sshll.u32 %s8974_s30, 5 }
  0x1b   : > { %s8916_s9 = sld [smem:[#allocation28_spill]] }
  0x1c   : > { %s8917_s10 = sld [smem:[#allocation30_spill]] }
  0x1d   : > { %v1018_v1 = vld [vmem:[%s8913_s28 + $0x18] sm:$0xff]  ;;  %v1017_v2 = vld [vmem:[%s8913_s28 + $0x10] sm:$0xff]  ;;  %v1016_v5 = vld [vmem:[%s8913_s28 + $0x8] sm:$0xff]  ;;  %s8918_s3 = sld [smem:[#allocation34_spill]] }
  0x1e   : > { %6275 = vmatprep.subr.mxu1 %v1018_v1  ;;  %v884_v3 = vld [vmem:[%s8914_s1 + $0x18] sm:$0xff]  ;;  %v883_v4 = vld [vmem:[%s8914_s1 + $0x10] sm:$0xff]  ;;  %v882_v6 = vld [vmem:[%s8914_s1 + $0x8] sm:$0xff]  ;;  %s8919_s2 = sld [smem:[#allocation36_spill]] }
  0x1f   : > { %6276 = vmatpush3.msra.mxu1 %v1018_v1  ;;  %6255 = vmatprep.subr.mxu0 %v884_v3  ;;  %v1015_v7 = vld [vmem:[%s8913_s28] sm:$0xff]  ;;  %s7199_s6 = scalar_lea.vmem %s8915_s29, %s7193_s26  ;;  %s8920_s7 = sld [smem:[#allocation35_spill]] }
  0x20   : > { %6277 = vmatprep.subr.mxu1 %v1017_v2  ;;  %6256 = vmatpush3.msra.mxu0 %v884_v3  ;;  %v869_v8 = vld [vmem:[%s7199_s6] sm:$0xff]  ;;  %v870_v9 = vld [vmem:[%s7199_s6 + $0x8] sm:$0xff]  ;;  %v871_v11 = vld [vmem:[%s7199_s6 + $0x10] sm:$0xff]  ;;  %s8922_s30 = sld [smem:[#allocation37_spill]] }
  0x21   : > { %6278 = vmatpush3.msra.mxu1 %v1017_v2  ;;  %6257 = vmatprep.subr.mxu0 %v883_v4  ;;  %v881_v10 = vld [vmem:[%s8914_s1] sm:$0xff]  ;;  %s7210_s5 = scalar_lea.vmem %s8916_s9, %s7193_s26  ;;  %v872_v14 = vld [vmem:[%s7199_s6 + $0x18] sm:$0xff]  ;;  %v874_v20 = vld [vmem:[%s7199_s6 + $0x28] sm:$0xff]  ;;  %s8921_s9 = sld [smem:[#allocation39_spill]] }
  0x22   : > { %6279 = vmatprep.subr.mxu1 %v1016_v5  ;;  %6258 = vmatpush3.msra.mxu0 %v883_v4  ;;  %v7215_v12 = vld [vmem:[%s7210_s5] sm:$0xff]  ;;  %s7220_s29 = scalar_lea.vmem %s8917_s10, %s5892_s11  ;;  %v7224_v13 = vld [vmem:[%s7210_s5 + $0x8] sm:$0xff]  ;;  %v7229_v15 = vld [vmem:[%s7210_s5 + $0x10] sm:$0xff]  ;;  %s8924_s0 = sld [smem:[#allocation33_spill]] }
  0x23   : > { %6280 = vmatpush3.msra.mxu1 %v1016_v5  ;;  %6259 = vmatprep.subr.mxu0 %v882_v6  ;;  %v873_v16 = vld [vmem:[%s7199_s6 + $0x20] sm:$0xff]  ;;  %v880_v17 = vld [vmem:[%s7220_s29 + $0x18] sm:$0xff]  ;;  %v879_v18 = vld [vmem:[%s7220_s29 + $0x10] sm:$0xff] }
  0x24   : > { %6281 = vmatprep.subr.mxu1 %v1015_v7  ;;  %6283 = vmatprep.mubr.msk.f32.mxu1 %vm885_vm0, %v869_v8  ;;  %v7242_v19 = vld [vmem:[%s7210_s5 + $0x18] sm:$0xff]  ;;  %v7247_v21 = vld [vmem:[%s7210_s5 + $0x20] sm:$0xff]  ;;  %v875_v22 = vld [vmem:[%s7199_s6 + $0x30] sm:$0xff] }
  0x25   : > { %6282 = vmatpush3.msra.mxu1 %v1015_v7  ;;  %6260 = vmatpush3.msra.mxu0 %v882_v6  ;;  %v878_v23 = vld [vmem:[%s7220_s29 + $0x8] sm:$0xff]  ;;  %v876_v25 = vld [vmem:[%s7199_s6 + $0x38] sm:$0xff]  ;;  %v7262_v26 = vld [vmem:[%s7210_s5 + $0x30] sm:$0xff] }
  0x26   : > { %6284 = vmatmul.mubr.msk.f32.vlgmr.msra.gmra.mxu1 %vm885_vm0, %v870_v9  ;;  %6261 = vmatprep.subr.mxu0 %v881_v10  ;;  %v7257_v24 = vld [vmem:[%s7210_s5 + $0x28] sm:$0xff]  ;;  %v877_v27 = vld [vmem:[%s7220_s29] sm:$0xff]  ;;  %v7271_v28 = vld [vmem:[%s7210_s5 + $0x38] sm:$0xff]  ;;  %s8923_s29 = sld [smem:[#allocation38_spill]] }
  0x27   : > { %6286 = vmatprep.mubr.msk.f32.mxu1 %vm885_vm0, %v871_v11  ;;  %6262 = vmatpush3.msra.mxu0 %v881_v10  ;;  %v1148_v29 = vld [vmem:[%s8918_s3] sm:$0xff]  ;;  %v1149_v30 = vld [vmem:[%s8918_s3 + $0x8] sm:$0xff]  ;;  %v1150_v31 = vld [vmem:[%s8918_s3 + $0x10] sm:$0xff] }
  0x28   : > { %6263 = vmatprep.mubr.msk.f32.mxu0 %vm885_vm0, %v7215_v12  ;;  %6295 = vmatprep.subr.mxu0 %v880_v17  ;;  %v1151_v32 = vld [vmem:[%s8918_s3 + $0x18] sm:$0xff]  ;;  %v7301_v34 = vld [vmem:[%s8919_s2 + $0x10] sm:$0xff]  ;;  %v7307_v35 = vld [vmem:[%s8919_s2 + $0x8] sm:$0xff] }
  0x29   : > { %6264 = vmatmul.mubr.msk.f32.vlgmr.msra.gmra.mxu0 %vm885_vm0, %v7224_v13  ;;  %v7294_v33 = vld [vmem:[%s8919_s2 + $0x18] sm:$0xff]  ;;  %v7315_v36 = vld [vmem:[%s8919_s2] sm:$0xff]  ;;  %s8816_s2 = scalar_lea.vmem %s8881_s27, %s7193_s26 }
  0x2a   : > { %6287 = vmatmul.mubr.msk.f32.gmra.mxu1 %vm885_vm0, %v872_v14  ;;  %6266 = vmatprep.mubr.msk.f32.mxu0 %vm885_vm0, %v7229_v15 }
  0x2b   : > { %6289 = vmatprep.mubr.msk.f32.mxu1 %vm885_vm0, %v873_v16  ;;  %6296 = vmatpush3.msra.mxu0 %v880_v17 }
  0x2c   : > { %6297 = vmatprep.subr.mxu0 %v879_v18 }
  0x2d   : > { %6267 = vmatmul.mubr.msk.f32.gmra.mxu0 %vm885_vm0, %v7242_v19 }
  0x2e   : > { %6290 = vmatmul.mubr.msk.f32.gmra.mxu1 %vm885_vm0, %v874_v20  ;;  %6269 = vmatprep.mubr.msk.f32.mxu0 %vm885_vm0, %v7247_v21 }
  0x2f   : > { %6292 = vmatprep.mubr.msk.f32.mxu1 %vm885_vm0, %v875_v22  ;;  %6298 = vmatpush3.msra.mxu0 %v879_v18 }
  0x30   : > { %6299 = vmatprep.subr.mxu0 %v878_v23 }
  0x31   : > { %6270 = vmatmul.mubr.msk.f32.gmra.mxu0 %vm885_vm0, %v7257_v24 }
  0x32   : > { %6293 = vmatmul.mubr.msk.f32.gmra.mxu1 %vm885_vm0, %v876_v25  ;;  %6272 = vmatprep.mubr.msk.f32.mxu0 %vm885_vm0, %v7262_v26 }
  0x33   : > { %6300 = vmatpush3.msra.mxu0 %v878_v23 }
  0x34   : > { %6301 = vmatprep.subr.mxu0 %v877_v27 }
  0x35   : > { %6273 = vmatmul.mubr.msk.f32.gmra.mxu0 %vm885_vm0, %v7271_v28 }
  0x36   : > { %6302 = vmatpush3.msra.mxu0 %v877_v27  ;;  %6303 = vmatprep.mubr.msk.f32.mxu0 %vm885_vm0, %v1148_v29 }
  0x37   : > { %6331 = vmatprep.subr.mxu0 %v7294_v33 }
  0x39   : > { %6304 = vmatmul.mubr.msk.f32.vlgmr.msra.gmra.mxu0 %vm885_vm0, %v1149_v30 }
  0x3a   : > { %6306 = vmatprep.mubr.msk.f32.mxu0 %vm885_vm0, %v1150_v31  ;;  %6332 = vmatpush3.msra.mxu0 %v7294_v33 }
  0x3b   : > { %6333 = vmatprep.subr.mxu0 %v7301_v34 }
  0x3c   : > { %6334 = vmatpush3.msra.mxu0 %v7301_v34 }
  0x3d   : > { %6307 = vmatmul.mubr.msk.f32.gmra.mxu0 %vm885_vm0, %v1151_v32  ;;  %6335 = vmatprep.subr.mxu0 %v7307_v35 }
  0x3e   : > { %6336 = vmatpush3.msra.mxu0 %v7307_v35 }
  0x3f   : > { %6337 = vmatprep.subr.mxu0 %v7315_v36 }
  0x40   : > { %6338 = vmatpush3.msra.mxu0 %v7315_v36 }
  0xe6   : > { %v7319_v37 = vpop.f32.mrf.mxu1 }
  0xe7   : > { %v1307_v38 = vmul.f32 1.442695, %v7319_v37  ;;  %v1298_v61 = vadd.f32 1.0, %v7319_v37  ;;  %vm1290_vm1 = vcmp.gt.f32.partialorder %v7319_v37, 0.0 }
  0xe8   : > { %v7322_v39 = vpop.f32.mrf.mxu1 }
  0xe9   : > { %6907 = vpow2.f32 %v1307_v38  ;;  %v1305_v40 = vmul.f32 1.442695, %v7322_v39  ;;  %v7325_v41 = vpop.f32.mrf.mxu0  ;;  %v1297_v62 = vadd.f32 1.0, %v7322_v39  ;;  %vm1289_vm2 = vcmp.gt.f32.partialorder %v7322_v39, 0.0 }
  0xea   : > { %v7327_v42 = vpop.f32.mrf.mxu1  ;;  %v1267_v27 = vmul.f32 1.442695, %v7325_v41  ;;  %vm1250_vm10 = vcmp.gt.f32.partialorder %v7325_v41, 0.0 }
  0xeb   : > { %6909 = vpow2.f32 %v1305_v40  ;;  %v1311_v43 = vmul.f32 1.442695, %v7327_v42  ;;  %v7330_v44 = vpop.f32.mrf.mxu0  ;;  %v1300_v6 = vadd.f32 1.0, %v7327_v42  ;;  %vm1292_vm4 = vcmp.gt.f32.partialorder %v7327_v42, 0.0 }
  0xec   : > { %v7332_v45 = vpop.f32.mrf.mxu1  ;;  %vm1249_vm11 = vcmp.gt.f32.partialorder %v7330_v44, 0.0 }
  0xed   : > { %6911 = vpow2.f32 %v1311_v43  ;;  %v1309_v46 = vmul.f32 1.442695, %v7332_v45  ;;  %v7335_v47 = vpop.f32.mrf.mxu0  ;;  %v1299_v7 = vadd.f32 1.0, %v7332_v45  ;;  %vm1291_vm5 = vcmp.gt.f32.partialorder %v7332_v45, 0.0 }
  0xee   : > { %v7337_v48 = vpop.f32.mrf.mxu1  ;;  %v1265_v43 = vmul.f32 1.442695, %v7330_v44  ;;  %vm1252_vm13 = vcmp.gt.f32.partialorder %v7335_v47, 0.0 }
  0xef   : > { %6913 = vpow2.f32 %v1309_v46  ;;  %v1315_v49 = vmul.f32 1.442695, %v7337_v48  ;;  %v7340_v50 = vpop.f32.mrf.mxu0  ;;  %v1302_v20 = vadd.f32 1.0, %v7337_v48  ;;  %vm1294_vm6 = vcmp.gt.f32.partialorder %v7337_v48, 0.0 }
  0xf0   : > { %v7342_v51 = vpop.f32.mrf.mxu1  ;;  %vm1251_vm12 = vcmp.gt.f32.partialorder %v7340_v50, 0.0 }
  0xf1   : > { %6915 = vpow2.f32 %v1315_v49  ;;  %v1313_v52 = vmul.f32 1.442695, %v7342_v51  ;;  %v7345_v53 = vpop.f32.mrf.mxu0  ;;  %v1301_v22 = vadd.f32 1.0, %v7342_v51  ;;  %vm1293_vm7 = vcmp.gt.f32.partialorder %v7342_v51, 0.0 }
  0xf2   : > { %v7347_v54 = vpop.f32.mrf.mxu1  ;;  %vm1254_vm15 = vcmp.gt.f32.partialorder %v7345_v53, 0.0 }
  0xf3   : > { %6917 = vpow2.f32 %v1313_v52  ;;  %v1319_v55 = vmul.f32 1.442695, %v7347_v54  ;;  %v7350_v56 = vpop.f32.mrf.mxu0  ;;  %v1304_v30 = vadd.f32 1.0, %v7347_v54  ;;  %vm1296_vm8 = vcmp.gt.f32.partialorder %v7347_v54, 0.0 }
  0xf4   : > { %v7352_v57 = vpop.f32.mrf.mxu1  ;;  %vm1253_vm14 = vcmp.gt.f32.partialorder %v7350_v56, 0.0 }
  0xf5   : > { %6919 = vpow2.f32 %v1319_v55  ;;  %v1317_v58 = vmul.f32 1.442695, %v7352_v57  ;;  %v7355_v59 = vpop.f32.mrf.mxu0  ;;  %v1303_v49 = vadd.f32 1.0, %v7352_v57  ;;  %vm1295_vm9 = vcmp.gt.f32.partialorder %v7352_v57, 0.0 }
  0xf6   : > { %v6908_v60 = vpop.eup %6907 }
  0xf7   : > { %6921 = vpow2.f32 %v1317_v58  ;;  %v7359_v63 = vpop.f32.mrf.mxu0  ;;  %v7365_v2 = vsel %vm1290_vm1, %v1298_v61, %v6908_v60  ;;  %v1269_v60 = vmul.f32 1.442695, %v7340_v50 }
  0xf8   : > { %v6910_v0 = vpop.eup %6909  ;;  %v1436_v10 = vsel %vm885_vm0, %v7365_v2, 0.0  ;;  %6923 = vpow2.f32 %v1267_v27  ;;  %vm1255_vm1 = vcmp.gt.f32.partialorder %v7359_v63, 0.0 }
  0xf9   : > { %v7363_v1 = vpop.f32.mrf.mxu0  ;;  %v7367_v3 = vsel %vm1289_vm2, %v1297_v62, %v6910_v0  ;;  %6925 = vpow2.f32 %v1265_v43  ;;  %vm1256_vm2 = vcmp.gt.f32.partialorder %v7355_v59, 0.0 }
  0xfa   : > { %v6912_v4 = vpop.eup %6911  ;;  %v1435_v5 = vsel %vm885_vm0, %v7367_v3, 0.0  ;;  %6927 = vpow2.f32 %v1269_v60 }
  0xfb   : > { %v1230_v8 = vpop.f32.mrf.mxu0  ;;  %v1324_v11 = vsel %vm1292_vm4, %v1300_v6, %v6912_v4  ;;  %v1437_v16 = vadd.f32 %v1436_v10, %v1435_v5  ;;  %v1271_v5 = vmul.f32 1.442695, %v7335_v47  ;;  %v1275_v10 = vmul.f32 1.442695, %v7345_v53 }
  0xfc   : > { %v6914_v9 = vpop.eup %6913  ;;  %6325 = vmatprep.mubr.msk.f32.mxu1 %vm1333_vm3, %v1230_v8  ;;  %v1440_v29 = vsel %vm885_vm0, %v1324_v11, 0.0  ;;  %vm3481_vm4 = vcmask 588800  }
  0xfd   : > { %v1323_v14 = vsel %vm1291_vm5, %v1299_v7, %v6914_v9  ;;  %v1273_v7 = vmul.f32 1.442695, %v7350_v56  ;;  %6929 = vpow2.f32 %v1271_v5  ;;  %v1263_v5 = vadd.f32 1.0, %v7359_v63 }
  0xfe   : > { %v6916_v17 = vpop.eup %6915  ;;  %v1438_v18 = vsel %vm885_vm0, %v1323_v14, 0.0 }
  0xff   : > { %v1439_v23 = vadd.f32 %v1438_v18, %v1437_v16  ;;  %v1326_v31 = vsel %vm1294_vm6, %v1302_v20, %v6916_v17  ;;  %6931 = vpow2.f32 %v1273_v7  ;;  %v1277_v17 = vmul.f32 1.442695, %v7359_v63  ;;  %v6308_v20 = vpop.f32.mrf.mxu0 }
 0x100   : > { %v6918_v25 = vpop.eup %6917  ;;  %v1444_v61 = vsel %vm885_vm0, %v1326_v31, 0.0  ;;  %6933 = vpow2.f32 %v1275_v10  ;;  %v1264_v10 = vadd.f32 1.0, %v7355_v59 }
 0x101   : > { %v1325_v32 = vsel %vm1293_vm7, %v1301_v22, %v6918_v25  ;;  %v1441_v38 = vadd.f32 %v1440_v29, %v1439_v23  ;;  %v1279_v22 = vmul.f32 1.442695, %v7355_v59  ;;  %6935 = vpow2.f32 %v1277_v17 }
 0x102   : > { %v6920_v40 = vpop.eup %6919  ;;  %v1442_v46 = vsel %vm885_vm0, %v1325_v32, 0.0  ;;  %v1258_v29 = vadd.f32 1.0, %v7325_v41 }
 0x103   : > { %v1328_v52 = vsel %vm1296_vm8, %v1304_v30, %v6920_v40  ;;  %v1443_v55 = vadd.f32 %v1442_v46, %v1441_v38  ;;  %v1257_v30 = vadd.f32 1.0, %v7330_v44  ;;  %6937 = vpow2.f32 %v1279_v22 }
 0x104   : > { %v6922_v58 = vpop.eup %6921  ;;  %6309 = vmatprep.subr.mxu1 %v1328_v52  ;;  %v1448_v8 = vsel %vm885_vm0, %v1328_v52, 0.0  ;;  %v1260_v46 = vadd.f32 1.0, %v7335_v47 }
 0x105   : > { %6310 = vmatpush3.msra.mxu1 %v1328_v52  ;;  %v1327_v62 = vsel %vm1295_vm9, %v1303_v49, %v6922_v58  ;;  %v1445_v0 = vadd.f32 %v1444_v61, %v1443_v55  ;;  %v6924_v27 = vpop.eup %6923 }
 0x106   : > { %6311 = vmatprep.subr.mxu1 %v1327_v62  ;;  %v1446_v4 = vsel %vm885_vm0, %v1327_v62, 0.0  ;;  %v7413_v40 = vsel %vm1250_vm10, %v1258_v29, %v6924_v27  ;;  %v1760_v27 = vld [vmem:[%s8920_s7 + $0x10] sm:$0xff]  ;;  %v1759_v29 = vld [vmem:[%s8920_s7 + $0x8] sm:$0xff] }
 0x107   : > { %6312 = vmatpush3.msra.mxu1 %v1327_v62  ;;  %v1447_v6 = vadd.f32 %v1446_v4, %v1445_v0  ;;  %v1262_v62 = vadd.f32 1.0, %v7345_v53 }
 0x108   : > { %6313 = vmatprep.subr.mxu1 %v1326_v31 }
 0x109   : > { %6314 = vmatpush3.msra.mxu1 %v1326_v31  ;;  %v1449_v9 = vadd.f32 %v1448_v8, %v1447_v6  ;;  %v6926_v31 = vpop.eup %6925 }
 0x10a   : > { %6315 = vmatprep.subr.mxu1 %v1325_v32  ;;  %v1281_v43 = vsel %vm1249_vm11, %v1257_v30, %v6926_v31 }
 0x10b   : > { %6316 = vmatpush3.msra.mxu1 %v1325_v32  ;;  %v1450_v16 = vrot.slane %v1449_v9, 4  ;;  %v6928_v32 = vpop.eup %6927 }
 0x10c   : > { %6317 = vmatprep.subr.mxu1 %v1324_v11 }
 0x10d   : > { %6318 = vmatpush3.msra.mxu1 %v1324_v11  ;;  %v1451_v18 = vadd.f32 %v1450_v16, %v1449_v9  ;;  %v1240_v11 = vpop.f32.mrf.mxu0 }
 0x10e   : > { %6319 = vmatprep.subr.mxu1 %v1323_v14 }
 0x10f   : > { %6320 = vmatpush3.msra.mxu1 %v1323_v14  ;;  %v1452_v23 = vrot.slane %v1451_v18, 2 }
 0x110   : > { %6321 = vmatprep.subr.mxu1 %v7365_v2 }
 0x111   : > { %6322 = vmatpush3.msra.mxu1 %v7365_v2  ;;  %v1453_v25 = vadd.f32 %v1452_v23, %v1451_v18  ;;  %v1259_v2 = vadd.f32 1.0, %v7340_v50 }
 0x112   : > { %6323 = vmatprep.subr.mxu1 %v7367_v3 }
 0x113   : > { %v1454_v14 = vrot.slane %v1453_v25, 1  ;;  %6324 = vmatpush3.msra.mxu1 %v7367_v3  ;;  %v6930_v3 = vpop.eup %6929  ;;  %v1283_v55 = vsel %vm1251_vm12, %v1259_v2, %v6928_v32 }
 0x114   : > { %6326 = vmatmul.mubr.msk.f32.vlgmr.msra.gmra.mxu1 %vm1333_vm3, %v7363_v1  ;;  %v1261_v1 = vadd.f32 1.0, %v7350_v56  ;;  %v6932_v58 = vpop.eup %6931  ;;  %v1284_v61 = vsel %vm1252_vm13, %v1260_v46, %v6930_v3 }
 0x115   : > { %v1455_v38 = vadd.f32 %v1454_v14, %v1453_v25  ;;  %6328 = vmatprep.mubr.msk.f32.mxu1 %vm1333_vm3, %v1240_v11  ;;  %v6934_v0 = vpop.eup %6933  ;;  %v1761_v25 = vld [vmem:[%s8920_s7 + $0x18] sm:$0xff] }
 0x116   : > { %v1285_v4 = vsel %vm1253_vm14, %v1261_v1, %v6932_v58  ;;  %v6936_v7 = vpop.eup %6935  ;;  %v1286_v9 = vsel %vm1254_vm15, %v1262_v62, %v6934_v0  ;;  %6371 = vmatprep.subr.mxu0 %v1761_v25 }
 0x117   : > { %v1456_v49 = vmul.f32 %v1455_v38, %v1281_v43  ;;  %v1457_v52 = vmul.f32 %v1455_v38, %v7413_v40  ;;  %v1458_v60 = vmul.f32 %v1455_v38, %v1283_v55  ;;  %v1459_v6 = vmul.f32 %v1455_v38, %v1284_v61  ;;  %v6938_v16 = vpop.eup %6937 }
 0x118   : > { %6329 = vmatmul.mubr.msk.f32.gmra.mxu1 %vm1333_vm3, %v6308_v20  ;;  %v1460_v8 = vmul.f32 %v1455_v38, %v1285_v4  ;;  %v1287_v17 = vsel %vm1255_vm1, %v1263_v5, %v6936_v7  ;;  %v1461_v18 = vmul.f32 %v1455_v38, %v1286_v9  ;;  %v1288_v22 = vsel %vm1256_vm2, %v1264_v10, %v6938_v16 }
 0x119   : > { %6339 = vmatprep.mubr.msk.f32.mxu0 %vm885_vm0, %v1456_v49  ;;  %6359 = vmatprep.mubr.msk.f32.mxu1 %vm885_vm0, %v1281_v43  ;;  %v1462_v20 = vmul.f32 %v1455_v38, %v1287_v17  ;;  %v1463_v23 = vmul.f32 %v1455_v38, %v1288_v22 }
 0x11a   : > { %6340 = vmatmul.mubr.msk.f32.vlgmr.msra.gmra.mxu0 %vm885_vm0, %v1457_v52 }
 0x11b   : > { %6342 = vmatprep.mubr.msk.f32.mxu0 %vm885_vm0, %v1458_v60  ;;  %6372 = vmatpush3.msra.mxu0 %v1761_v25 }
 0x11c   : > { %6373 = vmatprep.subr.mxu0 %v1760_v27 }
 0x11d   : > { %6374 = vmatpush3.msra.mxu0 %v1760_v27 }
 0x11e   : > { %6343 = vmatmul.mubr.msk.f32.gmra.mxu0 %vm885_vm0, %v1459_v6  ;;  %6375 = vmatprep.subr.mxu0 %v1759_v29 }
 0x11f   : > { %6345 = vmatprep.mubr.msk.f32.mxu0 %vm885_vm0, %v1460_v8  ;;  %6376 = vmatpush3.msra.mxu0 %v1759_v29 }
 0x122   : > { %6346 = vmatmul.mubr.msk.f32.gmra.mxu0 %vm885_vm0, %v1461_v18 }
 0x123   : > { %6348 = vmatprep.mubr.msk.f32.mxu0 %vm885_vm0, %v1462_v20 }
 0x126   : > { %6349 = vmatmul.mubr.msk.f32.gmra.mxu0 %vm885_vm0, %v1463_v23 }
 0x1d4   : > { %v6327_v30 = vpop.f32.mrf.mxu1 }
 0x1d5   : > { %v1432_v38 = vmul.f32 %v6327_v30, %v7307_v35 }
 0x1d6   : > { %v1412_v11 = vpop.f32.mrf.mxu1 }
 0x1d7   : > { %v1431_v43 = vmul.f32 %v1412_v11, %v7315_v36 }
 0x1d8   : > { %v6330_v31 = vpop.f32.mrf.mxu1 }
 0x1d9   : > { %v1434_v14 = vmul.f32 %v6330_v31, %v7294_v33  ;;  %v1758_v33 = vld [vmem:[%s8920_s7] sm:$0xff] }
 0x1da   : > { %v1422_v2 = vpop.f32.mrf.mxu1  ;;  %6377 = vmatprep.subr.mxu0 %v1758_v33 }
 0x1db   : > { %v1433_v32 = vmul.f32 %v1422_v2, %v7301_v34  ;;  %6351 = vmatprep.subr.msk.mxu1 %vm885_vm0, %v1434_v14  ;;  %6378 = vmatpush3.msra.mxu0 %v1758_v33  ;;  %v6341_v34 = vpop.f32.mrf.mxu0 }
 0x1dc   : > { %6352 = vmatpush3.xpose.msk.msra.mxu1 %vm885_vm0, %v1434_v14  ;;  %v1560_v52 = vadd.f32 1e-06, %v6341_v34 }
 0x1dd   : > { %6353 = vmatprep.subr.msk.mxu1 %vm885_vm0, %v1433_v32  ;;  %v1554_v35 = vpop.f32.mrf.mxu0 }
 0x1de   : > { %v1555_v49 = vadd.f32 1e-06, %v1554_v35 }
 0x1df   : > { %v6344_v36 = vpop.f32.mrf.mxu0 }
 0x1e0   : > { %6354 = vmatpush3.xpose.msk.msra.mxu1 %vm885_vm0, %v1433_v32  ;;  %6939 = vrcp.f32 %v1555_v49  ;;  %v1570_v1 = vadd.f32 1e-06, %v6344_v36 }
 0x1e1   : > { %6355 = vmatprep.subr.msk.mxu1 %vm885_vm0, %v1432_v38  ;;  %6941 = vrcp.f32 %v1560_v52 }
 0x1e4   : > { %6356 = vmatpush3.xpose.msk.msra.mxu1 %vm885_vm0, %v1432_v38 }
 0x1e5   : > { %6357 = vmatprep.subr.msk.mxu1 %vm885_vm0, %v1431_v43 }
 0x1e8   : > { %6358 = vmatpush3.xpose.msk.msra.mxu1 %vm885_vm0, %v1431_v43 }
 0x1eb   : > { %6360 = vmatmul.mubr.msk.f32.vlgmr.msra.gmra.mxu1 %vm885_vm0, %v7413_v40  ;;  %v1564_v40 = vpop.f32.mrf.mxu0 }
 0x1ec   : > { %6362 = vmatprep.mubr.msk.f32.mxu1 %vm885_vm0, %v1283_v55  ;;  %v1565_v55 = vadd.f32 1e-06, %v1564_v40 }
 0x1ed   : > { %v6347_v46 = vpop.f32.mrf.mxu0  ;;  %v6940_v6 = vpop.eup %6939 }
 0x1ee   : > { %6943 = vrcp.f32 %v1565_v55  ;;  %v6942_v8 = vpop.eup %6941 }
 0x1ef   : > { %6363 = vmatmul.mubr.msk.f32.gmra.mxu1 %vm885_vm0, %v1284_v61  ;;  %v1574_v3 = vpop.f32.mrf.mxu0  ;;  %6945 = vrcp.f32 %v1570_v1  ;;  %v1580_v61 = vadd.f32 1e-06, %v6347_v46 }
 0x1f0   : > { %6365 = vmatprep.mubr.msk.f32.mxu1 %vm885_vm0, %v1285_v4  ;;  %v1575_v60 = vadd.f32 1e-06, %v1574_v3 }
 0x1f1   : > { %v6350_v58 = vpop.f32.mrf.mxu0 }
 0x1f2   : > { %6947 = vrcp.f32 %v1575_v60  ;;  %v1590_v4 = vadd.f32 1e-06, %v6350_v58 }
 0x1f3   : > { %6366 = vmatmul.mubr.msk.f32.gmra.mxu1 %vm885_vm0, %v1286_v9  ;;  %v1584_v62 = vpop.f32.mrf.mxu0  ;;  %6949 = vrcp.f32 %v1580_v61 }
 0x1f4   : > { %6368 = vmatprep.mubr.msk.f32.mxu1 %vm885_vm0, %v1287_v17  ;;  %v1585_v0 = vadd.f32 1e-06, %v1584_v62 }
 0x1f6   : > { %6951 = vrcp.f32 %v1585_v0 }
 0x1f7   : > { %6369 = vmatmul.mubr.msk.f32.gmra.mxu1 %vm885_vm0, %v1288_v22  ;;  %6953 = vrcp.f32 %v1590_v4 }
 0x1fb   : > { %v6944_v17 = vpop.eup %6943 }
 0x1fc   : > { %v6946_v20 = vpop.eup %6945 }
 0x1ff   : > { %v6948_v27 = vpop.eup %6947 }
 0x200   : > { %v6950_v30 = vpop.eup %6949 }
 0x203   : > { %v6952_v2 = vpop.eup %6951 }
 0x204   : > { %v6954_v38 = vpop.eup %6953 }
 0x2ab   : > { %v6361_v5 = vpop.f32.mrf.mxu1 }
 0x2ac   : > { %v1751_v10 = vmul.f32 %v6942_v8, %v6361_v5 }
 0x2ad   : > { %v1711_v7 = vpop.f32.mrf.mxu1 }
 0x2ae   : > { %v1750_v9 = vmul.f32 %v6940_v6, %v1711_v7 }
 0x2af   : > { %v6364_v16 = vpop.f32.mrf.mxu1 }
 0x2b0   : > { %6379 = vmatprep.mubr.msk.f32.mxu0 %vm885_vm0, %v1750_v9  ;;  %v1753_v23 = vmul.f32 %v6946_v20, %v6364_v16 }
 0x2b1   : > { %v1721_v18 = vpop.f32.mrf.mxu1  ;;  %6380 = vmatmul.mubr.msk.f32.vlgmr.msra.gmra.mxu0 %vm885_vm0, %v1751_v10 }
 0x2b2   : > { %v1752_v22 = vmul.f32 %v6944_v17, %v1721_v18 }
 0x2b3   : > { %v6367_v25 = vpop.f32.mrf.mxu1 }
 0x2b4   : > { %6382 = vmatprep.mubr.msk.f32.mxu0 %vm885_vm0, %v1752_v22  ;;  %v1755_v31 = vmul.f32 %v6950_v30, %v6367_v25 }
 0x2b5   : > { %v1731_v29 = vpop.f32.mrf.mxu1  ;;  %6383 = vmatmul.mubr.msk.f32.gmra.mxu0 %vm885_vm0, %v1753_v23 }
 0x2b6   : > { %v1754_v11 = vmul.f32 %v6948_v27, %v1731_v29 }
 0x2b7   : > { %v6370_v14 = vpop.f32.mrf.mxu1 }
 0x2b8   : > { %6385 = vmatprep.mubr.msk.f32.mxu0 %vm885_vm0, %v1754_v11  ;;  %v1757_v33 = vmul.f32 %v6954_v38, %v6370_v14 }
 0x2b9   : > { %v1741_v32 = vpop.f32.mrf.mxu1  ;;  %6386 = vmatmul.mubr.msk.f32.gmra.mxu0 %vm885_vm0, %v1755_v31 }
 0x2ba   : > { %v1756_v43 = vmul.f32 %v6952_v2, %v1741_v32 }
 0x2bc   : > { %6388 = vmatprep.mubr.msk.f32.mxu0 %vm885_vm0, %v1756_v43 }
 0x2bd   : > { %6389 = vmatmul.mubr.msk.f32.gmra.mxu0 %vm885_vm0, %v1757_v33 }
 0x2be   : > { %6419 = vmatprep.mubr.msk.f32.mxu0 %vm885_vm0, %v7215_v12 }
 0x371   : > { %v6381_v34 = vpop.f32.mrf.mxu0 }
 0x372   : > { %v1896_v49 = vsel %vm885_vm0, %v6381_v34, 0.0 }
 0x373   : > { %v1852_v35 = vpop.f32.mrf.mxu0 }
 0x374   : > { %v1893_v36 = vsel %vm885_vm0, %v1852_v35, 0.0 }
 0x375   : > { %1894 = vadd.xlane.f32.xlu0 %v1893_v36  ;;  %v6384_v40 = vpop.f32.mrf.mxu0 }
 0x376   : > { %v1902_v1 = vsel %vm885_vm0, %v6384_v40, 0.0 }
 0x377   : > { %v1862_v46 = vpop.f32.mrf.mxu0 }
 0x378   : > { %v1899_v52 = vsel %vm885_vm0, %v1862_v46, 0.0 }
 0x379   : > { %1897 = vadd.xlane.f32.xlu0 %v1896_v49  ;;  %1900 = vadd.xlane.f32.xlu1 %v1899_v52  ;;  %v6387_v3 = vpop.f32.mrf.mxu0 }
 0x37a   : > { %v1908_v61 = vsel %vm885_vm0, %v6387_v3, 0.0 }
 0x37b   : > { %v1872_v55 = vpop.f32.mrf.mxu0 }
 0x37c   : > { %v1905_v58 = vsel %vm885_vm0, %v1872_v55, 0.0 }
 0x37d   : > { %1903 = vadd.xlane.f32.xlu1 %v1902_v1  ;;  %1906 = vadd.xlane.f32.xlu0 %v1905_v58  ;;  %v6390_v12 = vpop.f32.mrf.mxu0 }
 0x37e   : > { %v1914_v0 = vsel %vm885_vm0, %v6390_v12, 0.0 }
 0x37f   : > { %v1882_v60 = vpop.f32.mrf.mxu0 }
 0x380   : > { %v1911_v62 = vsel %vm885_vm0, %v1882_v60, 0.0 }
 0x381   : > { %1909 = vadd.xlane.f32.xlu1 %v1908_v61  ;;  %1912 = vadd.xlane.f32.xlu0 %v1911_v62 }
 0x385   : > { %1915 = vadd.xlane.f32.xlu1 %v1914_v0 }
 0x3fe   : > { %v1895_v4 = vpop.xlane.xlu0 %1894 }
 0x3ff   : > { %v1918_v5 = vmul.f32 0.03125, %v1895_v4  ;;  %v2029_v4 = vld [vmem:[%s8921_s9 + $0x18] sm:$0xff] }
 0x400   : > { %6411 = vmatprep.subr.mxu0 %v2029_v4 }
 0x401   : > { %v7486_v6 = vsub.f32 %v1852_v35, %v1918_v5  ;;  %6412 = vmatpush3.msra.mxu0 %v2029_v4  ;;  %v2028_v5 = vld [vmem:[%s8921_s9 + $0x10] sm:$0xff] }
 0x402   : > { %v1898_v7 = vpop.xlane.xlu0 %1897  ;;  %v1901_v8 = vpop.xlane.xlu1 %1900  ;;  %6413 = vmatprep.subr.mxu0 %v2028_v5 }
 0x403   : > { %v1919_v9 = vmul.f32 0.03125, %v1898_v7  ;;  %v1920_v10 = vmul.f32 0.03125, %v1901_v8  ;;  %v1934_v16 = vmul.f32 %v7486_v6, %v7486_v6  ;;  %v2032_v7 = vld [vmem:[%s8866_s12 + $0x10] sm:$0xff]  ;;  %6414 = vmatpush3.msra.mxu0 %v2028_v5  ;;  %v2027_v8 = vld [vmem:[%s8921_s9 + $0x8] sm:$0xff] }
 0x404   : > { %6415 = vmatprep.subr.mxu0 %v2027_v8 }
 0x405   : > { %v7490_v17 = vsub.f32 %v6381_v34, %v1919_v9  ;;  %v7492_v18 = vsub.f32 %v1862_v46, %v1920_v10  ;;  %v1942_v20 = vsel %vm885_vm0, %v1934_v16, 0.0  ;;  %v2031_v9 = vld [vmem:[%s8866_s12 + $0x8] sm:$0xff]  ;;  %6416 = vmatpush3.msra.mxu0 %v2027_v8  ;;  %v2030_v10 = vld [vmem:[%s8866_s12] sm:$0xff] }
 0x406   : > { %v1904_v22 = vpop.xlane.xlu1 %1903  ;;  %v1907_v23 = vpop.xlane.xlu0 %1906  ;;  %1943 = vadd.xlane.f32.xlu0 %v1942_v20  ;;  %v2026_v16 = vld [vmem:[%s8921_s9] sm:$0xff] }
 0x407   : > { %v1921_v25 = vmul.f32 0.03125, %v1904_v22  ;;  %v1922_v27 = vmul.f32 0.03125, %v1907_v23  ;;  %v1935_v29 = vmul.f32 %v7490_v17, %v7490_v17  ;;  %v1936_v30 = vmul.f32 %v7492_v18, %v7492_v18  ;;  %6417 = vmatprep.subr.mxu0 %v2026_v16 }
 0x408   : > { %6418 = vmatpush3.msra.mxu0 %v2026_v16 }
 0x409   : > { %v7499_v11 = vsub.f32 %v6384_v40, %v1921_v25  ;;  %v7501_v31 = vsub.f32 %v1872_v55, %v1922_v27  ;;  %v1945_v14 = vsel %vm885_vm0, %v1935_v29, 0.0  ;;  %v1948_v2 = vsel %vm885_vm0, %v1936_v30, 0.0  ;;  %6420 = vmatmul.mubr.msk.f32.vlgmr.msra.gmra.mxu0 %vm885_vm0, %v7224_v13  ;;  %v2283_v13 = vld [vmem:[%s8867_s13 + $0x38] sm:$0xff] }
 0x40a   : > { %v1910_v32 = vpop.xlane.xlu1 %1909  ;;  %1946 = vadd.xlane.f32.xlu1 %v1945_v14  ;;  %1949 = vadd.xlane.f32.xlu0 %v1948_v2  ;;  %v1913_v38 = vpop.xlane.xlu0 %1912 }
 0x40b   : > { %v1923_v43 = vmul.f32 0.03125, %v1910_v32  ;;  %v1924_v33 = vmul.f32 0.03125, %v1913_v38  ;;  %v1937_v34 = vmul.f32 %v7499_v11, %v7499_v11  ;;  %v1938_v35 = vmul.f32 %v7501_v31, %v7501_v31  ;;  %6422 = vmatprep.mubr.msk.f32.mxu0 %vm885_vm0, %v7229_v15 }
 0x40d   : > { %v7509_v36 = vsub.f32 %v6387_v3, %v1923_v43  ;;  %v7511_v40 = vsub.f32 %v1882_v60, %v1924_v33  ;;  %v1951_v46 = vsel %vm885_vm0, %v1937_v34, 0.0  ;;  %v1954_v49 = vsel %vm885_vm0, %v1938_v35, 0.0  ;;  %6423 = vmatmul.mubr.msk.f32.gmra.mxu0 %vm885_vm0, %v7242_v19 }
 0x40e   : > { %1952 = vadd.xlane.f32.xlu1 %v1951_v46  ;;  %v1916_v52 = vpop.xlane.xlu1 %1915  ;;  %1955 = vadd.xlane.f32.xlu0 %v1954_v49 }
 0x40f   : > { %v1925_v55 = vmul.f32 0.03125, %v1916_v52  ;;  %v1939_v1 = vmul.f32 %v7509_v36, %v7509_v36  ;;  %v1940_v58 = vmul.f32 %v7511_v40, %v7511_v40  ;;  %6425 = vmatprep.mubr.msk.f32.mxu0 %vm885_vm0, %v7247_v21 }
 0x411   : > { %v7519_v61 = vsub.f32 %v6390_v12, %v1925_v55  ;;  %v1957_v3 = vsel %vm885_vm0, %v1939_v1, 0.0  ;;  %v1960_v60 = vsel %vm885_vm0, %v1940_v58, 0.0  ;;  %v2033_v12 = vld [vmem:[%s8866_s12 + $0x18] sm:$0xff]  ;;  %6426 = vmatmul.mubr.msk.f32.gmra.mxu0 %vm885_vm0, %v7257_v24  ;;  %v5593_v55 = vld [vmem:[%s8922_s30] ss:$0 sm:$0xff] }
 0x412   : > { %1958 = vadd.xlane.f32.xlu1 %v1957_v3  ;;  %1961 = vadd.xlane.f32.xlu0 %v1960_v60  ;;  %v5594_v3 = vld [vmem:[%s8923_s29] ss:$0 sm:$0xff] }
 0x413   : > { %v1941_v62 = vmul.f32 %v7519_v61, %v7519_v61  ;;  %6391 = vmatprep.subr.mxu1 %v2033_v12  ;;  %6428 = vmatprep.mubr.msk.f32.mxu0 %vm885_vm0, %v7262_v26 }
 0x414   : > { %6392 = vmatpush3.msra.mxu1 %v2033_v12 }
 0x415   : > { %v1963_v0 = vsel %vm885_vm0, %v1941_v62, 0.0  ;;  %6393 = vmatprep.subr.mxu1 %v2032_v7  ;;  %6429 = vmatmul.mubr.msk.f32.gmra.mxu0 %vm885_vm0, %v7271_v28 }
 0x416   : > { %1964 = vadd.xlane.f32.xlu1 %v1963_v0  ;;  %6394 = vmatpush3.msra.mxu1 %v2032_v7 }
 0x417   : > { %6395 = vmatprep.subr.mxu1 %v2031_v9 }
 0x418   : > { %6396 = vmatpush3.msra.mxu1 %v2031_v9 }
 0x419   : > { %6397 = vmatprep.subr.mxu1 %v2030_v10 }
 0x41a   : > { %6398 = vmatpush3.msra.mxu1 %v2030_v10 }
 0x41b   : > { %6431 = vmatprep.subr.mxu1 %v2283_v13 }
 0x48f   : > { %v1944_v15 = vpop.xlane.xlu0 %1943 }
 0x490   : > { %v1966_v20 = vmul.f32 0.03125, %v1944_v15 }
 0x492   : > { %v1974_v19 = vadd.f32 1e-05, %v1966_v20 }
 0x493   : > { %v1947_v22 = vpop.xlane.xlu1 %1946  ;;  %v1950_v23 = vpop.xlane.xlu0 %1949 }
 0x494   : > { %6955 = vrsqrt.f32 %v1974_v19  ;;  %v1967_v21 = vmul.f32 0.03125, %v1947_v22  ;;  %v1968_v25 = vmul.f32 0.03125, %v1950_v23  ;;  %v2282_v19 = vld [vmem:[%s8867_s13 + $0x30] sm:$0xff]  ;;  %v2281_v23 = vld [vmem:[%s8867_s13 + $0x28] sm:$0xff] }
 0x496   : > { %v1975_v24 = vadd.f32 1e-05, %v1967_v21  ;;  %v1976_v27 = vadd.f32 1e-05, %v1968_v25 }
 0x497   : > { %v1953_v29 = vpop.xlane.xlu1 %1952  ;;  %v1956_v26 = vpop.xlane.xlu0 %1955 }
 0x498   : > { %6957 = vrsqrt.f32 %v1975_v24  ;;  %v1969_v30 = vmul.f32 0.03125, %v1953_v29  ;;  %v1970_v28 = vmul.f32 0.03125, %v1956_v26 }
 0x499   : > { %6959 = vrsqrt.f32 %v1976_v27  ;;  %v2280_v27 = vld [vmem:[%s8867_s13 + $0x20] sm:$0xff] }
 0x49a   : > { %v1977_v14 = vadd.f32 1e-05, %v1969_v30  ;;  %v1978_v2 = vadd.f32 1e-05, %v1970_v28 }
 0x49b   : > { %v1959_v32 = vpop.xlane.xlu1 %1958  ;;  %v1962_v38 = vpop.xlane.xlu0 %1961 }
 0x49c   : > { %6961 = vrsqrt.f32 %v1977_v14  ;;  %v1971_v43 = vmul.f32 0.03125, %v1959_v32  ;;  %v1972_v33 = vmul.f32 0.03125, %v1962_v38  ;;  %v2277_v32 = vld [vmem:[%s8867_s13 + $0x8] sm:$0xff]  ;;  %v2276_v38 = vld [vmem:[%s8867_s13] sm:$0xff] }
 0x49d   : > { %6963 = vrsqrt.f32 %v1978_v2  ;;  %v2279_v2 = vld [vmem:[%s8867_s13 + $0x18] sm:$0xff] }
 0x49e   : > { %v1979_v34 = vadd.f32 1e-05, %v1971_v43  ;;  %v1980_v35 = vadd.f32 1e-05, %v1972_v33  ;;  %v2550_v43 = vld [vmem:[%s8870_s16 + $0x18] sm:$0xff] }
 0x49f   : > { %v1965_v46 = vpop.xlane.xlu1 %1964 }
 0x4a0   : > { %6965 = vrsqrt.f32 %v1979_v34  ;;  %v1973_v49 = vmul.f32 0.03125, %v1965_v46 }
 0x4a1   : > { %v6956_v52 = vpop.eup %6955  ;;  %6967 = vrsqrt.f32 %v1980_v35 }
 0x4a2   : > { %v1981_v1 = vadd.f32 1e-05, %v1973_v49  ;;  %v1990_v58 = vmul.f32 %v6956_v52, %v7486_v6 }
 0x4a4   : > { %6969 = vrsqrt.f32 %v1981_v1  ;;  %v2004_v60 = vmul.f32 %v5593_v55, %v1990_v58 }
 0x4a5   : > { %v6958_v62 = vpop.eup %6957 }
 0x4a6   : > { %v6960_v0 = vpop.eup %6959  ;;  %v1991_v4 = vmul.f32 %v6958_v62, %v7490_v17  ;;  %v2018_v12 = vadd.f32 %v5594_v3, %v2004_v60 }
 0x4a7   : > { %v1992_v5 = vmul.f32 %v6960_v0, %v7492_v18 }
 0x4a8   : > { %v2005_v7 = vmul.f32 %v5593_v55, %v1991_v4  ;;  %6399 = vmatprep.mubr.msk.f32.mxu1 %vm885_vm0, %v2018_v12 }
 0x4a9   : > { %v6962_v8 = vpop.eup %6961  ;;  %v2006_v9 = vmul.f32 %v5593_v55, %v1992_v5 }
 0x4aa   : > { %v6964_v10 = vpop.eup %6963  ;;  %v2019_v6 = vadd.f32 %v5594_v3, %v2005_v7  ;;  %v1993_v16 = vmul.f32 %v6962_v8, %v7499_v11  ;;  %v2549_v7 = vld [vmem:[%s8870_s16 + $0x10] sm:$0xff] }
 0x4ab   : > { %v2020_v15 = vadd.f32 %v5594_v3, %v2006_v9  ;;  %v1994_v20 = vmul.f32 %v6964_v10, %v7501_v31  ;;  %v2548_v10 = vld [vmem:[%s8870_s16 + $0x8] sm:$0xff] }
 0x4ac   : > { %6400 = vmatmul.mubr.msk.f32.vlgmr.msra.gmra.mxu1 %vm885_vm0, %v2019_v6  ;;  %v2007_v17 = vmul.f32 %v5593_v55, %v1993_v16 }
 0x4ad   : > { %v6966_v18 = vpop.eup %6965  ;;  %6402 = vmatprep.mubr.msk.f32.mxu1 %vm885_vm0, %v2020_v15  ;;  %v2008_v22 = vmul.f32 %v5593_v55, %v1994_v20  ;;  %6432 = vmatpush3.msra.mxu1 %v2283_v13 }
 0x4ae   : > { %v6968_v11 = vpop.eup %6967  ;;  %v2021_v21 = vadd.f32 %v5594_v3, %v2007_v17  ;;  %v1995_v31 = vmul.f32 %v6966_v18, %v7509_v36  ;;  %6433 = vmatprep.subr.mxu1 %v2282_v19  ;;  %v2547_v17 = vld [vmem:[%s8870_s16] sm:$0xff] }
 0x4af   : > { %v2022_v25 = vadd.f32 %v5594_v3, %v2008_v22  ;;  %v1996_v24 = vmul.f32 %v6968_v11, %v7511_v40  ;;  %6434 = vmatpush3.msra.mxu1 %v2282_v19 }
 0x4b0   : > { %6403 = vmatmul.mubr.msk.f32.gmra.mxu1 %vm885_vm0, %v2021_v21  ;;  %v2009_v13 = vmul.f32 %v5593_v55, %v1995_v31  ;;  %6435 = vmatprep.subr.mxu1 %v2281_v23 }
 0x4b1   : > { %v6970_v29 = vpop.eup %6969  ;;  %6405 = vmatprep.mubr.msk.f32.mxu1 %vm885_vm0, %v2022_v25  ;;  %v2010_v26 = vmul.f32 %v5593_v55, %v1996_v24  ;;  %6436 = vmatpush3.msra.mxu1 %v2281_v23  ;;  %v2953_v23 = vld [vmem:[%s8924_s0 + $0x18] sm:$0xff] }
 0x4b2   : > { %v2023_v30 = vadd.f32 %v5594_v3, %v2009_v13  ;;  %v1997_v36 = vmul.f32 %v6970_v29, %v7519_v61  ;;  %6437 = vmatprep.subr.mxu1 %v2280_v27  ;;  %v2278_v61 = vld [vmem:[%s8867_s13 + $0x10] sm:$0xff]  ;;  %v6987_v29 = vld [vmem:[%s7210_s5] sm:$0xff] }
 0x4b3   : > { %v2024_v28 = vadd.f32 %v5594_v3, %v2010_v26  ;;  %6438 = vmatpush3.msra.mxu1 %v2280_v27  ;;  %v2952_v26 = vld [vmem:[%s8924_s0 + $0x10] sm:$0xff] }
 0x4b4   : > { %6406 = vmatmul.mubr.msk.f32.gmra.mxu1 %vm885_vm0, %v2023_v30  ;;  %v2011_v40 = vmul.f32 %v5593_v55, %v1997_v36  ;;  %6439 = vmatprep.subr.mxu1 %v2279_v2  ;;  %v6988_v30 = vld [vmem:[%s7210_s5 + $0x8] sm:$0xff]  ;;  %v6989_v36 = vld [vmem:[%s7210_s5 + $0x10] sm:$0xff] }
 0x4b5   : > { %6408 = vmatprep.mubr.msk.f32.mxu1 %vm885_vm0, %v2024_v28  ;;  %6440 = vmatpush3.msra.mxu1 %v2279_v2  ;;  %v2951_v28 = vld [vmem:[%s8924_s0 + $0x8] sm:$0xff]  ;;  %v6991_v2 = vld [vmem:[%s7210_s5 + $0x20] sm:$0xff] }
 0x4b6   : > { %v2025_v14 = vadd.f32 %v5594_v3, %v2011_v40  ;;  %6441 = vmatprep.subr.mxu1 %v2278_v61  ;;  %v2950_v40 = vld [vmem:[%s8924_s0] sm:$0xff] }
 0x4b7   : > { %6442 = vmatpush3.msra.mxu1 %v2278_v61  ;;  %v3062_v61 = vld [vmem:[%s8873_s19 + $0x18] sm:$0xff] }
 0x4b8   : > { %6409 = vmatmul.mubr.msk.f32.gmra.mxu1 %vm885_vm0, %v2025_v14  ;;  %6443 = vmatprep.subr.mxu1 %v2277_v32  ;;  %v6990_v14 = vld [vmem:[%s7210_s5 + $0x18] sm:$0xff] }
 0x4b9   : > { %6444 = vmatpush3.msra.mxu1 %v2277_v32  ;;  %v6992_v32 = vld [vmem:[%s7210_s5 + $0x28] sm:$0xff] }
 0x4ba   : > { %6445 = vmatprep.subr.mxu1 %v2276_v38 }
 0x4bb   : > { %6446 = vmatpush3.msra.mxu1 %v2276_v38  ;;  %v6993_v38 = vld [vmem:[%s7210_s5 + $0x30] sm:$0xff] }
 0x4bc   : > { %6479 = vmatprep.subr.mxu1 %v2550_v43 }
 0x4c9   : > { %v6421_v33 = vpop.f32.mrf.mxu0 }
 0x4cb   : > { %v2229_v34 = vpop.f32.mrf.mxu0 }
 0x4cd   : > { %v6424_v35 = vpop.f32.mrf.mxu0 }
 0x4cf   : > { %v2239_v46 = vpop.f32.mrf.mxu0 }
 0x4d1   : > { %v6427_v1 = vpop.f32.mrf.mxu0 }
 0x4d3   : > { %v2249_v12 = vpop.f32.mrf.mxu0 }
 0x4d5   : > { %v6430_v20 = vpop.f32.mrf.mxu0 }
 0x4d7   : > { %v2259_v31 = vpop.f32.mrf.mxu0 }
 0x56c   : > { %v6401_v49 = vpop.f32.mrf.mxu1 }
 0x56d   : > { %v2235_v52 = vadd.f32 %v6421_v33, %v6401_v49  ;;  %v6995_v33 = vld [vmem:[%s7199_s6] sm:$0xff]  ;;  %v3060_v49 = vld [vmem:[%s8873_s19 + $0x8] sm:$0xff] }
 0x56e   : > { %v2124_v55 = vpop.f32.mrf.mxu1 }
 0x56f   : > { %v2230_v58 = vadd.f32 %v2229_v34, %v2124_v55  ;;  %v2269_v62 = vmax.f32 %v2235_v52, 0.0  ;;  %v3061_v34 = vld [vmem:[%s8873_s19 + $0x10] sm:$0xff]  ;;  %v3059_v52 = vld [vmem:[%s8873_s19] sm:$0xff]  ;;  %v6998_v55 = vld [vmem:[%s7199_s6 + $0x18] sm:$0xff] }
 0x570   : > { %v6404_v3 = vpop.f32.mrf.mxu1 }
 0x571   : > { %v2268_v60 = vmax.f32 %v2230_v58, 0.0  ;;  %v2245_v0 = vadd.f32 %v6424_v35, %v6404_v3  ;;  %v6996_v35 = vld [vmem:[%s7199_s6 + $0x8] sm:$0xff]  ;;  %v7001_v3 = vld [vmem:[%s7199_s6 + $0x30] sm:$0xff] }
 0x572   : > { %v2134_v4 = vpop.f32.mrf.mxu1  ;;  %v7000_v58 = vld [vmem:[%s7199_s6 + $0x28] sm:$0xff] }
 0x573   : > { %v2240_v5 = vadd.f32 %v2239_v46, %v2134_v4  ;;  %6447 = vmatprep.mubr.msk.f32.mxu1 %vm1333_vm3, %v2268_v60  ;;  %v2271_v6 = vmax.f32 %v2245_v0, 0.0  ;;  %v6997_v46 = vld [vmem:[%s7199_s6 + $0x10] sm:$0xff]  ;;  %v7002_v60 = vld [vmem:[%s7199_s6 + $0x38] sm:$0xff] }
 0x574   : > { %v6407_v8 = vpop.f32.mrf.mxu1  ;;  %6448 = vmatmul.mubr.msk.f32.vlgmr.msra.gmra.mxu1 %vm1333_vm3, %v2269_v62 }
 0x575   : > { %v2270_v9 = vmax.f32 %v2240_v5, 0.0  ;;  %6480 = vmatpush3.msra.mxu1 %v2550_v43  ;;  %v2255_v16 = vadd.f32 %v6427_v1, %v6407_v8  ;;  %v6994_v43 = vld [vmem:[%s7210_s5 + $0x38] sm:$0xff]  ;;  %v6999_v1 = vld [vmem:[%s7199_s6 + $0x20] sm:$0xff] }
 0x576   : > { %v2144_v15 = vpop.f32.mrf.mxu1  ;;  %6481 = vmatprep.subr.mxu1 %v2549_v7 }
 0x577   : > { %v2250_v19 = vadd.f32 %v2249_v12, %v2144_v15  ;;  %6450 = vmatprep.mubr.msk.f32.mxu1 %vm1333_vm3, %v2270_v9  ;;  %6482 = vmatpush3.msra.mxu1 %v2549_v7  ;;  %v2273_v11 = vmax.f32 %v2255_v16, 0.0 }
 0x578   : > { %v6410_v18 = vpop.f32.mrf.mxu1  ;;  %6451 = vmatmul.mubr.msk.f32.gmra.mxu1 %vm1333_vm3, %v2271_v6  ;;  %6483 = vmatprep.subr.mxu1 %v2548_v10 }
 0x579   : > { %v2272_v22 = vmax.f32 %v2250_v19, 0.0  ;;  %6484 = vmatpush3.msra.mxu1 %v2548_v10  ;;  %v2265_v21 = vadd.f32 %v6430_v20, %v6410_v18 }
 0x57a   : > { %v2154_v25 = vpop.f32.mrf.mxu1  ;;  %6485 = vmatprep.subr.mxu1 %v2547_v17 }
 0x57b   : > { %v2260_v24 = vadd.f32 %v2259_v31, %v2154_v25  ;;  %6453 = vmatprep.mubr.msk.f32.mxu1 %vm1333_vm3, %v2272_v22  ;;  %6486 = vmatpush3.msra.mxu1 %v2547_v17  ;;  %v2275_v13 = vmax.f32 %v2265_v21, 0.0 }
 0x57c   : > { %6454 = vmatmul.mubr.msk.f32.gmra.mxu1 %vm1333_vm3, %v2273_v11  ;;  %6527 = vmatprep.subr.mxu1 %v2953_v23 }
 0x57d   : > { %v2274_v27 = vmax.f32 %v2260_v24, 0.0 }
 0x57f   : > { %6456 = vmatprep.mubr.msk.f32.mxu1 %vm1333_vm3, %v2274_v27 }
 0x580   : > { %6457 = vmatmul.mubr.msk.f32.gmra.mxu1 %vm1333_vm3, %v2275_v13 }
 0x581   : > { %6487 = vmatprep.mubr.msk.f32.mxu1 %vm885_vm0, %v6987_v29 }
 0x584   : > { %6488 = vmatmul.mubr.msk.f32.vlgmr.msra.gmra.mxu1 %vm885_vm0, %v6988_v30 }
 0x585   : > { %6490 = vmatprep.mubr.msk.f32.mxu1 %vm885_vm0, %v6989_v36  ;;  %6528 = vmatpush3.msra.mxu1 %v2953_v23 }
 0x586   : > { %6529 = vmatprep.subr.mxu1 %v2952_v26 }
 0x587   : > { %6530 = vmatpush3.msra.mxu1 %v2952_v26 }
 0x588   : > { %6491 = vmatmul.mubr.msk.f32.gmra.mxu1 %vm885_vm0, %v6990_v14  ;;  %6531 = vmatprep.subr.mxu1 %v2951_v28 }
 0x589   : > { %6493 = vmatprep.mubr.msk.f32.mxu1 %vm885_vm0, %v6991_v2  ;;  %6532 = vmatpush3.msra.mxu1 %v2951_v28 }
 0x58a   : > { %6533 = vmatprep.subr.mxu1 %v2950_v40 }
 0x58b   : > { %6534 = vmatpush3.msra.mxu1 %v2950_v40 }
 0x58c   : > { %6494 = vmatmul.mubr.msk.f32.gmra.mxu1 %vm885_vm0, %v6992_v32  ;;  %6567 = vmatprep.subr.mxu1 %v3062_v61 }
 0x58d   : > { %6496 = vmatprep.mubr.msk.f32.mxu1 %vm885_vm0, %v6993_v38 }
 0x590   : > { %6497 = vmatmul.mubr.msk.f32.gmra.mxu1 %vm885_vm0, %v6994_v43 }
 0x591   : > { %6535 = vmatprep.mubr.msk.f32.mxu1 %vm885_vm0, %v6995_v33 }
 0x594   : > { %6536 = vmatmul.mubr.msk.f32.vlgmr.msra.gmra.mxu1 %vm885_vm0, %v6996_v35 }
 0x595   : > { %6538 = vmatprep.mubr.msk.f32.mxu1 %vm885_vm0, %v6997_v46  ;;  %6568 = vmatpush3.msra.mxu1 %v3062_v61 }
 0x596   : > { %6569 = vmatprep.subr.mxu1 %v3061_v34 }
 0x597   : > { %6570 = vmatpush3.msra.mxu1 %v3061_v34 }
 0x598   : > { %6539 = vmatmul.mubr.msk.f32.gmra.mxu1 %vm885_vm0, %v6998_v55  ;;  %6571 = vmatprep.subr.mxu1 %v3060_v49 }
 0x599   : > { %6541 = vmatprep.mubr.msk.f32.mxu1 %vm885_vm0, %v6999_v1  ;;  %6572 = vmatpush3.msra.mxu1 %v3060_v49 }
 0x59a   : > { %6573 = vmatprep.subr.mxu1 %v3059_v52 }
 0x59b   : > { %6574 = vmatpush3.msra.mxu1 %v3059_v52 }
 0x59c   : > { %6542 = vmatmul.mubr.msk.f32.gmra.mxu1 %vm885_vm0, %v7000_v58 }
 0x59d   : > { %6544 = vmatprep.mubr.msk.f32.mxu1 %vm885_vm0, %v7001_v3 }
 0x5a0   : > { %6545 = vmatmul.mubr.msk.f32.gmra.mxu1 %vm885_vm0, %v7002_v60 }
 0x5a1   : > { %6575 = vmatprep.mubr.msk.f32.mxu1 %vm885_vm0, %v7330_v44 }
 0x5a4   : > { %6576 = vmatmul.mubr.msk.f32.vlgmr.msra.gmra.mxu1 %vm885_vm0, %v7325_v41 }
 0x5a5   : > { %6578 = vmatprep.mubr.msk.f32.mxu1 %vm885_vm0, %v7340_v50 }
 0x5a8   : > { %6579 = vmatmul.mubr.msk.f32.gmra.mxu1 %vm885_vm0, %v7335_v47 }
 0x5a9   : > { %6581 = vmatprep.mubr.msk.f32.mxu1 %vm885_vm0, %v7350_v56 }
 0x5ac   : > { %6582 = vmatmul.mubr.msk.f32.gmra.mxu1 %vm885_vm0, %v7345_v53 }
 0x5ad   : > { %6584 = vmatprep.mubr.msk.f32.mxu1 %vm885_vm0, %v7359_v63 }
 0x5b0   : > { %6585 = vmatmul.mubr.msk.f32.gmra.mxu1 %vm885_vm0, %v7355_v59 }
 0x634   : > { %v6449_v44 = vpop.f32.mrf.mxu1 }
 0x635   : > { %v2418_v41 = vsel %vm885_vm0, %v6449_v44, 0.0 }
 0x636   : > { %2419 = vadd.xlane.f32.xlu1 %v2418_v41  ;;  %v2374_v50 = vpop.f32.mrf.mxu1  ;;  %v2553_v41 = vld [vmem:[%s8871_s17 + $0x10] sm:$0xff] }
 0x637   : > { %v2415_v62 = vsel %vm885_vm0, %v2374_v50, 0.0 }
 0x638   : > { %2416 = vadd.xlane.f32.xlu0 %v2415_v62  ;;  %v6452_v47 = vpop.f32.mrf.mxu1  ;;  %v2551_v62 = vld [vmem:[%s8871_s17] sm:$0xff] }
 0x639   : > { %v2424_v56 = vsel %vm885_vm0, %v6452_v47, 0.0 }
 0x63a   : > { %2425 = vadd.xlane.f32.xlu1 %v2424_v56  ;;  %v2384_v0 = vpop.f32.mrf.mxu1  ;;  %v7019_v56 = vmov 0  }
 0x63b   : > { %v2421_v53 = vsel %vm885_vm0, %v2384_v0, 0.0  ;;  %6906 = vset.pattern.permute.xlu1 %v7019_v56  ;;  %6905 = vset.pattern.permute.xlu0 %v7019_v56 }
 0x63c   : > { %2422 = vadd.xlane.f32.xlu0 %v2421_v53  ;;  %v6455_v63 = vpop.f32.mrf.mxu1  ;;  %v5678_v53 = vld [vmem:[%s8879_s25 + $0x40] sm:$0xff] }
 0x63d   : > { %v2430_v4 = vsel %vm885_vm0, %v6455_v63, 0.0 }
 0x63e   : > { %2431 = vadd.xlane.f32.xlu1 %v2430_v4  ;;  %v2394_v59 = vpop.f32.mrf.mxu1  ;;  %v5681_v4 = vld [vmem:[%s8879_s25 + $0x58] sm:$0xff] }
 0x63f   : > { %v2427_v12 = vsel %vm885_vm0, %v2394_v59, 0.0 }
 0x640   : > { %2428 = vadd.xlane.f32.xlu0 %v2427_v12  ;;  %v6458_v5 = vpop.f32.mrf.mxu1  ;;  %v3510_v12 = vld [vmem:[%s8879_s25] sm:$0xff] }
 0x641   : > { %v2436_v7 = vsel %vm885_vm0, %v6458_v5, 0.0 }
 0x642   : > { %2437 = vadd.xlane.f32.xlu1 %v2436_v7  ;;  %v2404_v8 = vpop.f32.mrf.mxu1  ;;  %v5711_v7 = vld [vmem:[%s8879_s25 + $0x80] sm:$0xff] }
 0x643   : > { %v2433_v9 = vsel %vm885_vm0, %v2404_v8, 0.0 }
 0x644   : > { %2434 = vadd.xlane.f32.xlu0 %v2433_v9  ;;  %v5712_v9 = vld [vmem:[%s8879_s25 + $0x88] sm:$0xff] }
 0x6bf   : > { %v2420_v10 = vpop.xlane.xlu1 %2419 }
 0x6c0   : > { %v2440_v6 = vmul.f32 0.03125, %v2420_v10  ;;  %v5682_v10 = vld [vmem:[%s8879_s25 + $0x60] sm:$0xff] }
 0x6c1   : > { %v2417_v16 = vpop.xlane.xlu0 %2416 }
 0x6c2   : > { %v7710_v15 = vsub.f32 %v6449_v44, %v2440_v6  ;;  %v2439_v20 = vmul.f32 0.03125, %v2417_v16  ;;  %v2554_v44 = vld [vmem:[%s8871_s17 + $0x18] sm:$0xff]  ;;  %v5683_v16 = vld [vmem:[%s8879_s25 + $0x68] sm:$0xff] }
 0x6c3   : > { %v2426_v19 = vpop.xlane.xlu1 %2425  ;;  %6459 = vmatprep.subr.mxu0 %v2554_v44  ;;  %v3517_v6 = vld [vmem:[%s8879_s25 + $0x38] sm:$0xff] }
 0x6c4   : > { %v7712_v17 = vsub.f32 %v2374_v50, %v2439_v20  ;;  %v2442_v18 = vmul.f32 0.03125, %v2426_v19  ;;  %v2456_v22 = vmul.f32 %v7710_v15, %v7710_v15  ;;  %6460 = vmatpush3.msra.mxu0 %v2554_v44  ;;  %v2552_v50 = vld [vmem:[%s8871_s17 + $0x8] sm:$0xff]  ;;  %v5714_v20 = vld [vmem:[%s8879_s25 + $0x98] sm:$0xff]  ;;  %v3512_v19 = vld [vmem:[%s8879_s25 + $0x10] sm:$0xff] }
 0x6c5   : > { %v2423_v23 = vpop.xlane.xlu0 %2422  ;;  %6461 = vmatprep.subr.mxu0 %v2553_v41  ;;  %v5767_v44 = vld [vmem:[%s8879_s25 + $0x130] sm:$0xff] }
 0x6c6   : > { %v7716_v11 = vsub.f32 %v6452_v47, %v2442_v18  ;;  %v2441_v21 = vmul.f32 0.03125, %v2423_v23  ;;  %v2466_v31 = vsel %vm885_vm0, %v2456_v22, 0.0  ;;  %v2455_v25 = vmul.f32 %v7712_v17, %v7712_v17  ;;  %6462 = vmatpush3.msra.mxu0 %v2553_v41  ;;  %v5679_v47 = vld [vmem:[%s8879_s25 + $0x48] sm:$0xff]  ;;  %v3513_v22 = vld [vmem:[%s8879_s25 + $0x18] sm:$0xff] }
 0x6c7   : > { %v2432_v24 = vpop.xlane.xlu1 %2431  ;;  %2467 = vadd.xlane.f32.xlu1 %v2466_v31  ;;  %6463 = vmatprep.subr.mxu0 %v2552_v50  ;;  %v5737_v18 = vld [vmem:[%s8879_s25 + $0xc8] sm:$0xff]  ;;  %v5738_v31 = vld [vmem:[%s8879_s25 + $0xd0] sm:$0xff] }
 0x6c8   : > { %v7721_v27 = vsub.f32 %v2384_v0, %v2441_v21  ;;  %v2444_v13 = vmul.f32 0.03125, %v2432_v24  ;;  %v2463_v29 = vsel %vm885_vm0, %v2455_v25, 0.0  ;;  %v2458_v26 = vmul.f32 %v7716_v11, %v7716_v11  ;;  %6464 = vmatpush3.msra.mxu0 %v2552_v50  ;;  %v5680_v0 = vld [vmem:[%s8879_s25 + $0x50] sm:$0xff]  ;;  %v5716_v23 = vld [vmem:[%s8879_s25 + $0xa8] sm:$0xff]  ;;  %v3514_v21 = vld [vmem:[%s8879_s25 + $0x20] sm:$0xff] }
 0x6c9   : > { %v2429_v30 = vpop.xlane.xlu0 %2428  ;;  %2464 = vadd.xlane.f32.xlu0 %v2463_v29  ;;  %6465 = vmatprep.subr.mxu0 %v2551_v62  ;;  %v3515_v25 = vld [vmem:[%s8879_s25 + $0x28] sm:$0xff]  ;;  %v5739_v24 = vld [vmem:[%s8879_s25 + $0xd8] sm:$0xff]  ;;  %v5761_v29 = vld [vmem:[%s8879_s25 + $0x100] sm:$0xff] }
 0x6ca   : > { %v7726_v36 = vsub.f32 %v6455_v63, %v2444_v13  ;;  %v2443_v28 = vmul.f32 0.03125, %v2429_v30  ;;  %v2472_v40 = vsel %vm885_vm0, %v2458_v26, 0.0  ;;  %v2457_v14 = vmul.f32 %v7721_v27, %v7721_v27  ;;  %6466 = vmatpush3.msra.mxu0 %v2551_v62  ;;  %v5684_v63 = vld [vmem:[%s8879_s25 + $0x70] sm:$0xff]  ;;  %v5762_v30 = vld [vmem:[%s8879_s25 + $0x108] sm:$0xff] }
 0x6cb   : > { %2473 = vadd.xlane.f32.xlu1 %v2472_v40  ;;  %v2438_v2 = vpop.xlane.xlu1 %2437  ;;  %v3516_v13 = vld [vmem:[%s8879_s25 + $0x30] sm:$0xff]  ;;  %v5743_v40 = vld [vmem:[%s8879_s25 + $0xf8] sm:$0xff] }
 0x6cc   : > { %v7731_v61 = vsub.f32 %v2394_v59, %v2443_v28  ;;  %v2446_v32 = vmul.f32 0.03125, %v2438_v2  ;;  %v2469_v38 = vsel %vm885_vm0, %v2457_v14, 0.0  ;;  %v2460_v43 = vmul.f32 %v7726_v36, %v7726_v36  ;;  %v5685_v59 = vld [vmem:[%s8879_s25 + $0x78] sm:$0xff]  ;;  %v5713_v26 = vld [vmem:[%s8879_s25 + $0x90] sm:$0xff]  ;;  %v5736_v28 = vld [vmem:[%s8879_s25 + $0xc0] sm:$0xff] }
 0x6cd   : > { %2470 = vadd.xlane.f32.xlu0 %v2469_v38  ;;  %v2435_v33 = vpop.xlane.xlu0 %2434  ;;  %v5715_v14 = vld [vmem:[%s8879_s25 + $0xa0] sm:$0xff]  ;;  %v5717_v2 = vld [vmem:[%s8879_s25 + $0xb0] sm:$0xff] }
 0x6ce   : > { %v7736_v34 = vsub.f32 %v6458_v5, %v2446_v32  ;;  %v2445_v35 = vmul.f32 0.03125, %v2435_v33  ;;  %v2478_v46 = vsel %vm885_vm0, %v2460_v43, 0.0  ;;  %v2459_v49 = vmul.f32 %v7731_v61, %v7731_v61  ;;  %v7786_v5 = vld [vmem:[%s8872_s18 + $0x38] sm:$0xff]  ;;  %v5740_v38 = vld [vmem:[%s8879_s25 + $0xe0] sm:$0xff]  ;;  %v5741_v43 = vld [vmem:[%s8879_s25 + $0xe8] sm:$0xff] }
 0x6cf   : > { %2479 = vadd.xlane.f32.xlu1 %v2478_v46  ;;  %6499 = vmatprep.subr.mxu0 %v7786_v5  ;;  %v5718_v32 = vld [vmem:[%s8879_s25 + $0xb8] sm:$0xff]  ;;  %v5742_v33 = vld [vmem:[%s8879_s25 + $0xf0] sm:$0xff]  ;;  %v5786_v46 = vld [vmem:[%s8879_s25 + $0x140] sm:$0xff] }
 0x6d0   : > { %v7741_v52 = vsub.f32 %v2404_v8, %v2445_v35  ;;  %v2475_v55 = vsel %vm885_vm0, %v2459_v49, 0.0  ;;  %v2462_v1 = vmul.f32 %v7736_v34, %v7736_v34  ;;  %v3511_v8 = vld [vmem:[%s8879_s25 + $0x8] sm:$0xff]  ;;  %v5763_v35 = vld [vmem:[%s8879_s25 + $0x110] sm:$0xff]  ;;  %v5765_v49 = vld [vmem:[%s8879_s25 + $0x120] sm:$0xff] }
 0x6d1   : > { %2476 = vadd.xlane.f32.xlu0 %v2475_v55 }
 0x6d2   : > { %v2484_v58 = vsel %vm885_vm0, %v2462_v1, 0.0  ;;  %v2461_v3 = vmul.f32 %v7741_v52, %v7741_v52 }
 0x6d3   : > { %2485 = vadd.xlane.f32.xlu1 %v2484_v58 }
 0x6d4   : > { %v2481_v60 = vsel %vm885_vm0, %v2461_v3, 0.0 }
 0x6d5   : > { %2482 = vadd.xlane.f32.xlu0 %v2481_v60 }
 0x6e4   : > { %3599 = vperm.xlu1 %6906, %v5679_v47  }
 0x6e8   : > { %3604 = vperm.xlu1 %6906, %v5680_v0  }
 0x6eb   : > { %3594 = vperm.xlu0 %6905, %v5678_v53   ;;  %v5768_v53 = vld [vmem:[%s8879_s25 + $0x138] sm:$0xff] }
 0x6ec   : > { %3609 = vperm.xlu1 %6906, %v5681_v4  }
 0x6ef   : > { %3624 = vperm.xlu0 %6905, %v5684_v63  }
 0x6f0   : > { %3520 = vperm.xlu1 %6906, %v3510_v12  }
 0x6f3   : > { %3629 = vperm.xlu0 %6905, %v5685_v59  }
 0x6f4   : > { %3525 = vperm.xlu1 %6906, %v3511_v8  }
 0x6f7   : > { %3927 = vperm.xlu0 %6905, %v5711_v7  }
 0x6f8   : > { %3614 = vperm.xlu1 %6906, %v5682_v10  }
 0x6fb   : > { %3932 = vperm.xlu0 %6905, %v5712_v9   ;;  %v5790_v9 = vld [vmem:[%s8879_s25 + $0x160] sm:$0xff] }
 0x6fc   : > { %3619 = vperm.xlu1 %6906, %v5683_v16  }
 0x6ff   : > { %3555 = vperm.xlu0 %6905, %v3517_v6  }
 0x700   : > { %3530 = vperm.xlu1 %6906, %v3512_v19  }
 0x703   : > { %3942 = vperm.xlu0 %6905, %v5714_v20  }
 0x704   : > { %3535 = vperm.xlu1 %6906, %v3513_v22   ;;  %v5791_v22 = vld [vmem:[%s8879_s25 + $0x168] sm:$0xff] }
 0x707   : > { %4144 = vperm.xlu0 %6905, %v5737_v18  }
 0x708   : > { %3540 = vperm.xlu1 %6906, %v3514_v21  }
 0x70b   : > { %3952 = vperm.xlu0 %6905, %v5716_v23  }
 0x70c   : > { %3545 = vperm.xlu1 %6906, %v3515_v25  }
 0x70f   : > { %4149 = vperm.xlu0 %6905, %v5738_v31   ;;  %v5619_v31 = vld [vmem:[%s8868_s14] ss:$0 sm:$0xff] }
 0x710   : > { %3550 = vperm.xlu1 %6906, %v3516_v13  }
 0x713   : > { %4154 = vperm.xlu0 %6905, %v5739_v24  }
 0x714   : > { %3937 = vperm.xlu1 %6906, %v5713_v26  }
 0x717   : > { %4351 = vperm.xlu0 %6905, %v5761_v29  }
 0x718   : > { %4139 = vperm.xlu1 %6906, %v5736_v28  }
 0x71b   : > { %4356 = vperm.xlu0 %6905, %v5762_v30   ;;  %v5620_v30 = vld [vmem:[%s8869_s15] ss:$0 sm:$0xff] }
 0x71c   : > { %3947 = vperm.xlu1 %6906, %v5715_v14  }
 0x71f   : > { %4174 = vperm.xlu0 %6905, %v5743_v40  }
 0x720   : > { %3957 = vperm.xlu1 %6906, %v5717_v2  }
 0x724   : > { %3962 = vperm.xlu1 %6906, %v5718_v32  }
 0x728   : > { %4159 = vperm.xlu1 %6906, %v5740_v38  }
 0x72c   : > { %4164 = vperm.xlu1 %6906, %v5741_v43  }
 0x730   : > { %4169 = vperm.xlu1 %6906, %v5742_v33  }
 0x734   : > { %4361 = vperm.xlu1 %6906, %v5763_v35   ;;  %v2803_v35 = vld [vmem:[%s8872_s18 + $0x30] sm:$0xff] }
 0x738   : > { %4563 = vperm.xlu1 %6906, %v5786_v46  }
 0x73c   : > { %4371 = vperm.xlu1 %6906, %v5765_v49   ;;  %v2802_v49 = vld [vmem:[%s8872_s18 + $0x28] sm:$0xff] }
 0x740   : > { %4381 = vperm.xlu1 %6906, %v5767_v44  }
 0x744   : > { %4386 = vperm.xlu1 %6906, %v5768_v53   ;;  %v5764_v53 = vld [vmem:[%s8879_s25 + $0x118] sm:$0xff] }
 0x745   : > { %4366 = vperm.xlu0 %6905, %v5764_v53  }
 0x748   : > { %4583 = vperm.xlu1 %6906, %v5790_v9   ;;  %v7980_v9 = vld [vmem:[%s8874_s20 + $0x18] sm:$0xff] }
 0x74c   : > { %4588 = vperm.xlu1 %6906, %v5791_v22   ;;  %v5840_v22 = vld [vmem:[%s8879_s25 + $0x1e0] sm:$0xff] }
 0x750   : > { %v2468_v55 = vpop.xlane.xlu1 %2467 }
 0x751   : > { %v2488_v1 = vmul.f32 0.03125, %v2468_v55 }
 0x752   : > { %v2465_v58 = vpop.xlane.xlu0 %2464 }
 0x753   : > { %v2496_v3 = vadd.f32 1e-05, %v2488_v1  ;;  %v2487_v60 = vmul.f32 0.03125, %v2465_v58 }
 0x754   : > { %v2474_v41 = vpop.xlane.xlu1 %2473 }
 0x755   : > { %6971 = vrsqrt.f32 %v2496_v3  ;;  %v2495_v50 = vadd.f32 1e-05, %v2487_v60  ;;  %v2490_v62 = vmul.f32 0.03125, %v2474_v41 }
 0x756   : > { %v2471_v47 = vpop.xlane.xlu0 %2470 }
 0x757   : > { %6973 = vrsqrt.f32 %v2495_v50  ;;  %v2498_v56 = vadd.f32 1e-05, %v2490_v62  ;;  %v2489_v0 = vmul.f32 0.03125, %v2471_v47 }
 0x758   : > { %v2480_v63 = vpop.xlane.xlu1 %2479 }
 0x759   : > { %6975 = vrsqrt.f32 %v2498_v56  ;;  %v2497_v4 = vadd.f32 1e-05, %v2489_v0  ;;  %v2492_v59 = vmul.f32 0.03125, %v2480_v63  ;;  %v2799_v56 = vld [vmem:[%s8872_s18 + $0x10] sm:$0xff]  ;;  %v2798_v63 = vld [vmem:[%s8872_s18 + $0x8] sm:$0xff] }
 0x75a   : > { %v2477_v12 = vpop.xlane.xlu0 %2476  ;;  %v5792_v0 = vld [vmem:[%s8879_s25 + $0x170] sm:$0xff] }
 0x75b   : > { %6977 = vrsqrt.f32 %v2497_v4  ;;  %v2500_v7 = vadd.f32 1e-05, %v2492_v59  ;;  %v2491_v8 = vmul.f32 0.03125, %v2477_v12  ;;  %4593 = vperm.xlu1 %6906, %v5792_v0   ;;  %v2797_v4 = vld [vmem:[%s8872_s18] sm:$0xff]  ;;  %v5813_v59 = vld [vmem:[%s8879_s25 + $0x190] sm:$0xff]  ;;  %v5787_v12 = vld [vmem:[%s8879_s25 + $0x148] sm:$0xff] }
 0x75c   : > { %v2486_v10 = vpop.xlane.xlu1 %2485  ;;  %4568 = vperm.xlu0 %6905, %v5787_v12  }
 0x75d   : > { %6979 = vrsqrt.f32 %v2500_v7  ;;  %v2499_v6 = vadd.f32 1e-05, %v2491_v8  ;;  %v2494_v16 = vmul.f32 0.03125, %v2486_v10  ;;  %v5836_v7 = vld [vmem:[%s8879_s25 + $0x1c0] sm:$0xff]  ;;  %v5766_v8 = vld [vmem:[%s8879_s25 + $0x128] sm:$0xff] }
 0x75e   : > { %v2483_v20 = vpop.xlane.xlu0 %2482  ;;  %v5837_v10 = vld [vmem:[%s8879_s25 + $0x1c8] sm:$0xff] }
 0x75f   : > { %6981 = vrsqrt.f32 %v2499_v6  ;;  %v2502_v19 = vadd.f32 1e-05, %v2494_v16  ;;  %v2493_v18 = vmul.f32 0.03125, %v2483_v20  ;;  %4785 = vperm.xlu1 %6906, %v5813_v59   ;;  %v5788_v6 = vld [vmem:[%s8879_s25 + $0x150] sm:$0xff]  ;;  %v5789_v20 = vld [vmem:[%s8879_s25 + $0x158] sm:$0xff] }
 0x760   : > { %4376 = vperm.xlu0 %6905, %v5766_v8   ;;  %v5817_v16 = vld [vmem:[%s8879_s25 + $0x1b0] sm:$0xff] }
 0x761   : > { %6983 = vrsqrt.f32 %v2502_v19  ;;  %v2501_v23 = vadd.f32 1e-05, %v2493_v18  ;;  %v5818_v19 = vld [vmem:[%s8879_s25 + $0x1b8] sm:$0xff]  ;;  %v5811_v18 = vld [vmem:[%s8879_s25 + $0x180] sm:$0xff]  ;;  %v3065_v8 = vld [vmem:[%s8874_s20 + $0x10] sm:$0xff] }
 0x762   : > { %v6972_v21 = vpop.eup %6971 }
 0x763   : > { %v2512_v25 = vmul.f32 %v6972_v21, %v7710_v15  ;;  %6985 = vrsqrt.f32 %v2501_v23  ;;  %4987 = vperm.xlu1 %6906, %v5836_v7   ;;  %v5812_v23 = vld [vmem:[%s8879_s25 + $0x188] sm:$0xff] }
 0x764   : > { %v6974_v24 = vpop.eup %6973  ;;  %4573 = vperm.xlu0 %6905, %v5788_v6   ;;  %v5841_v21 = vld [vmem:[%s8879_s25 + $0x1e8] sm:$0xff] }
 0x765   : > { %v2511_v13 = vmul.f32 %v6974_v24, %v7712_v17  ;;  %v2526_v26 = vmul.f32 %v5619_v31, %v2512_v25  ;;  %v7020_v25 = vmov 0.0   ;;  %v5842_v24 = vld [vmem:[%s8879_s25 + $0x1f0] sm:$0xff] }
 0x766   : > { %v6976_v29 = vpop.eup %6975  ;;  %3482 = vst.msk [vmem:[#allocation2] sm:$0xff] %vm3481_vm4, %v7020_v25  ;;  %3483 = vst.msk [vmem:[#allocation2 + $0x8] sm:$0xff] %vm3481_vm4, %v7020_v25 }
 0x767   : > { %v2525_v28 = vmul.f32 %v5619_v31, %v2511_v13  ;;  %v2514_v40 = vmul.f32 %v6976_v29, %v7716_v11  ;;  %v7903_v15 = vadd.f32 %v5620_v30, %v2526_v26  ;;  %4992 = vperm.xlu1 %6906, %v5837_v10   ;;  %3484 = vst.msk [vmem:[#allocation2 + $0x10] sm:$0xff] %vm3481_vm4, %v7020_v25  ;;  %3485 = vst.msk [vmem:[#allocation2 + $0x18] sm:$0xff] %vm3481_vm4, %v7020_v25  ;;  %v5814_v13 = vld [vmem:[%s8879_s25 + $0x198] sm:$0xff]  ;;  %v5815_v26 = vld [vmem:[%s8879_s25 + $0x1a0] sm:$0xff] }
 0x768   : > { %v6978_v14 = vpop.eup %6977  ;;  %4578 = vperm.xlu0 %6905, %v5789_v20   ;;  %3486 = vst.msk [vmem:[#allocation2 + $0x20] sm:$0xff] %vm3481_vm4, %v7020_v25  ;;  %3487 = vst.msk [vmem:[#allocation2 + $0x28] sm:$0xff] %vm3481_vm4, %v7020_v25  ;;  %v5843_v29 = vld [vmem:[%s8879_s25 + $0x1f8] sm:$0xff] }
 0x769   : > { %v7900_v2 = vadd.f32 %v5620_v30, %v2525_v28  ;;  %v2513_v32 = vmul.f32 %v6978_v14, %v7721_v27  ;;  %8926 = vst [vmem:[#allocation5_spill] sm:$0xff] %v7903_v15  ;;  %v2528_v43 = vmul.f32 %v5619_v31, %v2514_v40  ;;  %3488 = vst.msk [vmem:[#allocation2 + $0x30] sm:$0xff] %vm3481_vm4, %v7020_v25  ;;  %v5816_v28 = vld [vmem:[%s8879_s25 + $0x1a8] sm:$0xff]  ;;  %v5838_v14 = vld [vmem:[%s8879_s25 + $0x1d0] sm:$0xff] }
 0x76a   : > { %v6980_v38 = vpop.eup %6979  ;;  %3489 = vst.msk [vmem:[#allocation2 + $0x38] sm:$0xff] %vm3481_vm4, %v7020_v25  ;;  %3490 = vst.msk [vmem:[#allocation2 + $0x40] sm:$0xff] %vm3481_vm4, %v7020_v25  ;;  %v5862_v40 = vld [vmem:[%s8879_s25 + $0x208] sm:$0xff] }
 0x76b   : > { %8925 = vst [vmem:[#allocation4_spill] sm:$0xff] %v7900_v2  ;;  %6467 = vmatprep.mubr.msk.f32.mxu0 %vm885_vm0, %v7900_v2  ;;  %v2527_v17 = vmul.f32 %v5619_v31, %v2513_v32  ;;  %v2516_v33 = vmul.f32 %v6980_v38, %v7726_v36  ;;  %v7920_v36 = vadd.f32 %v5620_v30, %v2528_v43  ;;  %3491 = vst.msk [vmem:[#allocation2 + $0x48] sm:$0xff] %vm3481_vm4, %v7020_v25  ;;  %v5887_v32 = vld [vmem:[#allocation3] ss:$0 sm:$0xff]  ;;  %v5839_v38 = vld [vmem:[%s8879_s25 + $0x1d8] sm:$0xff] }
 0x76c   : > { %v6982_v11 = vpop.eup %6981  ;;  %6468 = vmatmul.mubr.msk.f32.vlgmr.msra.gmra.mxu0 %vm885_vm0, %v7903_v15  ;;  %4805 = vperm.xlu1 %6906, %v5817_v16   ;;  %3492 = vst.msk [vmem:[#allocation2 + $0x50] sm:$0xff] %vm3481_vm4, %v7020_v25  ;;  %3493 = vst.msk [vmem:[#allocation2 + $0x58] sm:$0xff] %vm3481_vm4, %v7020_v25  ;;  %v5863_v43 = vld [vmem:[%s8879_s25 + $0x210] sm:$0xff]  ;;  %v3064_v16 = vld [vmem:[%s8874_s20 + $0x8] sm:$0xff] }
 0x76d   : > { %v7913_v46 = vadd.f32 %v5620_v30, %v2527_v17  ;;  %v2515_v27 = vmul.f32 %v6982_v11, %v7731_v61  ;;  %6500 = vmatpush3.msra.mxu0 %v7786_v5  ;;  %8928 = vst [vmem:[#allocation7_spill] sm:$0xff] %v7920_v36  ;;  %v2530_v1 = vmul.f32 %v5619_v31, %v2516_v33  ;;  %v2801_v61 = vld [vmem:[%s8872_s18 + $0x20] sm:$0xff]  ;;  %v3575_v17 = vld [vmem:[#allocation2 + $0x8] sm:$0xff]  ;;  %v3595_v33 = vpop.permute.xlu0 %3594  ;;  %v5864_v11 = vld [vmem:[%s8879_s25 + $0x218] sm:$0xff] }
 0x76e   : > { %v6984_v55 = vpop.eup %6983  ;;  %6501 = vmatprep.subr.mxu0 %v2803_v35  ;;  %4775 = vperm.xlu0 %6905, %v5811_v18   ;;  %v3328_v25 = vld [vmem:[%s8875_s21 + $0x18] sm:$0xff] }
 0x76f   : > { %8927 = vst [vmem:[#allocation6_spill] sm:$0xff] %v7913_v46  ;;  %6470 = vmatprep.mubr.msk.f32.mxu0 %vm885_vm0, %v7913_v46  ;;  %v2529_v58 = vmul.f32 %v5619_v31, %v2515_v27  ;;  %v2518_v3 = vmul.f32 %v6984_v55, %v7736_v34  ;;  %6502 = vmatpush3.msra.mxu0 %v2803_v35  ;;  %v5865_v27 = vld [vmem:[%s8879_s25 + $0x220] sm:$0xff]  ;;  %v5867_v55 = vld [vmem:[%s8879_s25 + $0x230] sm:$0xff] }
 0x770   : > { %v6986_v5 = vpop.eup %6985  ;;  %6471 = vmatmul.mubr.msk.f32.gmra.mxu0 %vm885_vm0, %v7920_v36  ;;  %6503 = vmatprep.subr.mxu0 %v2802_v49  ;;  %v7933_v41 = vadd.f32 %v5620_v30, %v2530_v1  ;;  %v3632_v35 = vmul.f32 %v3595_v33, %v3575_v17  ;;  %v5868_v1 = vld [vmem:[%s8879_s25 + $0x238] sm:$0xff] }
 0x771   : > { %v7930_v60 = vadd.f32 %v5620_v30, %v2529_v58  ;;  %v2517_v44 = vmul.f32 %v6986_v5, %v7741_v52  ;;  %6504 = vmatpush3.msra.mxu0 %v2802_v49  ;;  %v2532_v50 = vmul.f32 %v5619_v31, %v2518_v3  ;;  %v2800_v52 = vld [vmem:[%s8872_s18 + $0x18] sm:$0xff]  ;;  %4810 = vperm.xlu1 %6906, %v5818_v19   ;;  %v5866_v49 = vld [vmem:[%s8879_s25 + $0x228] sm:$0xff]  ;;  %v6489_v58 = vpop.f32.mrf.mxu1 }
 0x772   : > { %8930 = vst [vmem:[#allocation9_spill] sm:$0xff] %v7933_v41  ;;  %6505 = vmatprep.subr.mxu0 %v2801_v61  ;;  %4780 = vperm.xlu0 %6905, %v5812_v23  }
 0x773   : > { %8929 = vst [vmem:[#allocation8_spill] sm:$0xff] %v7930_v60  ;;  %6473 = vmatprep.mubr.msk.f32.mxu0 %vm885_vm0, %v7930_v60  ;;  %v2531_v34 = vmul.f32 %v5619_v31, %v2517_v44  ;;  %6506 = vmatpush3.msra.mxu0 %v2801_v61  ;;  %v7941_v47 = vadd.f32 %v5620_v30, %v2532_v50  ;;  %v5793_v31 = vld [vmem:[%s8879_s25 + $0x178] sm:$0xff]  ;;  %v2750_v3 = vpop.f32.mrf.mxu1 }
 0x774   : > { %6474 = vmatmul.mubr.msk.f32.gmra.mxu0 %vm885_vm0, %v7933_v41  ;;  %6507 = vmatprep.subr.mxu0 %v2800_v52 }
 0x775   : > { %v7939_v62 = vadd.f32 %v5620_v30, %v2531_v34  ;;  %8932 = vst [vmem:[#allocation11_spill] sm:$0xff] %v7941_v47  ;;  %6508 = vmatpush3.msra.mxu0 %v2800_v52  ;;  %5007 = vperm.xlu1 %6906, %v5840_v22   ;;  %v5861_v30 = vld [vmem:[%s8879_s25 + $0x200] sm:$0xff]  ;;  %v6492_v61 = vpop.f32.mrf.mxu1 }
 0x776   : > { %6509 = vmatprep.subr.mxu0 %v2799_v56  ;;  %4598 = vperm.xlu0 %6905, %v5793_v31  }
 0x777   : > { %8931 = vst [vmem:[#allocation10_spill] sm:$0xff] %v7939_v62  ;;  %6476 = vmatprep.mubr.msk.f32.mxu0 %vm885_vm0, %v7939_v62  ;;  %6510 = vmatpush3.msra.mxu0 %v2799_v56  ;;  %v2760_v5 = vpop.f32.mrf.mxu1 }
 0x778   : > { %6477 = vmatmul.mubr.msk.f32.gmra.mxu0 %vm885_vm0, %v7941_v47  ;;  %6511 = vmatprep.subr.mxu0 %v2798_v63 }
 0x779   : > { %6512 = vmatpush3.msra.mxu0 %v2798_v63  ;;  %5012 = vperm.xlu1 %6906, %v5841_v21   ;;  %v6495_v50 = vpop.f32.mrf.mxu1  ;;  %v3063_v21 = vld [vmem:[%s8874_s20] sm:$0xff] }
 0x77a   : > { %6513 = vmatprep.subr.mxu0 %v2797_v4  ;;  %4790 = vperm.xlu0 %6905, %v5814_v13  }
 0x77b   : > { %6514 = vmatpush3.msra.mxu0 %v2797_v4  ;;  %6625 = vmatprep.mubr.msk.f32.mxu1 %vm3481_vm4, %v3632_v35  ;;  %v2770_v63 = vpop.f32.mrf.mxu1 }
 0x77c   : > { %6547 = vmatprep.subr.mxu0 %v7980_v9 }
 0x77d   : > { %5017 = vperm.xlu1 %6906, %v5842_v24   ;;  %v6498_v20 = vpop.f32.mrf.mxu1 }
 0x77e   : > { %4795 = vperm.xlu0 %6905, %v5815_v26  }
 0x77f   : > { %v2780_v24 = vpop.f32.mrf.mxu1 }
 0x781   : > { %5022 = vperm.xlu1 %6906, %v5843_v29  }
 0x782   : > { %4800 = vperm.xlu0 %6905, %v5816_v28  }
 0x785   : > { %5199 = vperm.xlu1 %6906, %v5861_v30  }
 0x786   : > { %4997 = vperm.xlu0 %6905, %v5838_v14   ;;  %v6537_v14 = vpop.f32.mrf.mxu1 }
 0x789   : > { %5204 = vperm.xlu1 %6906, %v5862_v40  }
 0x78a   : > { %5002 = vperm.xlu0 %6905, %v5839_v38   ;;  %v3020_v38 = vpop.f32.mrf.mxu1 }
 0x78c   : > { %v6540_v17 = vpop.f32.mrf.mxu1 }
 0x78d   : > { %5414 = vperm.xlu1 %6906, %v5887_v32   ;;  %v3327_v32 = vld [vmem:[%s8875_s21 + $0x10] sm:$0xff] }
 0x78e   : > { %5209 = vperm.xlu0 %6905, %v5863_v43   ;;  %v3326_v43 = vld [vmem:[%s8875_s21 + $0x8] sm:$0xff] }
 0x792   : > { %5214 = vperm.xlu0 %6905, %v5864_v11  }
 0x796   : > { %5219 = vperm.xlu0 %6905, %v5865_v27  }
 0x79a   : > { %5224 = vperm.xlu0 %6905, %v5866_v49   ;;  %v5694_v49 = vld [vmem:[%s8877_s23 + $0x88] sm:$0xff] }
 0x79b   : > { %6607 = vmatprep.subr.mxu1 %v5694_v49 }
 0x79c   : > { %6608 = vmatpush3.msra.mxu1 %v5694_v49 }
 0x79e   : > { %5229 = vperm.xlu0 %6905, %v5867_v55   ;;  %v3574_v55 = vld [vmem:[%s8877_s23 + $0x40] sm:$0xff] }
 0x7a2   : > { %5234 = vperm.xlu0 %6905, %v5868_v1   ;;  %v5693_v1 = vld [vmem:[%s8877_s23 + $0x80] sm:$0xff] }
 0x7a3   : > { %6609 = vmatprep.subr.mxu1 %v5693_v1 }
 0x7a4   : > { %6610 = vmatpush3.msra.mxu1 %v5693_v1 }
 0x82c   : > { %v6469_v44 = vpop.f32.mrf.mxu0 }
 0x82d   : > { %v2756_v34 = vadd.f32 %v6489_v58, %v6469_v44  ;;  %v3573_v58 = vld [vmem:[%s8877_s23 + $0x38] sm:$0xff]  ;;  %v3571_v44 = vld [vmem:[%s8877_s23 + $0x28] sm:$0xff] }
 0x82e   : > { %v2645_v52 = vpop.f32.mrf.mxu0 }
 0x82f   : > { %v2751_v56 = vadd.f32 %v2750_v3, %v2645_v52  ;;  %v2790_v4 = vmax.f32 %v2756_v34, 0.0  ;;  %v5692_v3 = vld [vmem:[%s8877_s23 + $0x78] sm:$0xff]  ;;  %v3570_v34 = vld [vmem:[%s8877_s23 + $0x20] sm:$0xff] }
 0x830   : > { %v6472_v0 = vpop.f32.mrf.mxu0  ;;  %6611 = vmatprep.subr.mxu1 %v5692_v3  ;;  %v5689_v52 = vld [vmem:[%s8877_s23 + $0x60] sm:$0xff] }
 0x831   : > { %v2789_v53 = vmax.f32 %v2751_v56, 0.0  ;;  %v2766_v59 = vadd.f32 %v6492_v61, %v6472_v0  ;;  %v3572_v61 = vld [vmem:[%s8877_s23 + $0x30] sm:$0xff]  ;;  %6612 = vmatpush3.msra.mxu1 %v5692_v3  ;;  %v3569_v56 = vld [vmem:[%s8877_s23 + $0x18] sm:$0xff] }
 0x832   : > { %v2655_v12 = vpop.f32.mrf.mxu0  ;;  %v5688_v0 = vld [vmem:[%s8877_s23 + $0x58] sm:$0xff] }
 0x833   : > { %v2761_v7 = vadd.f32 %v2760_v5, %v2655_v12  ;;  %6515 = vmatprep.mubr.msk.f32.mxu0 %vm1333_vm3, %v2789_v53  ;;  %v2792_v19 = vmax.f32 %v2766_v59, 0.0  ;;  %v5691_v5 = vld [vmem:[%s8877_s23 + $0x70] sm:$0xff]  ;;  %v5686_v59 = vld [vmem:[%s8877_s23 + $0x48] sm:$0xff]  ;;  %v3566_v12 = vld [vmem:[%s8877_s23] sm:$0xff] }
 0x834   : > { %v6475_v10 = vpop.f32.mrf.mxu0  ;;  %6516 = vmatmul.mubr.msk.f32.vlgmr.msra.gmra.mxu0 %vm1333_vm3, %v2790_v4  ;;  %6613 = vmatprep.subr.mxu1 %v5691_v5  ;;  %v3568_v53 = vld [vmem:[%s8877_s23 + $0x10] sm:$0xff]  ;;  %v3567_v4 = vld [vmem:[%s8877_s23 + $0x8] sm:$0xff] }
 0x835   : > { %v2791_v6 = vmax.f32 %v2761_v7, 0.0  ;;  %6548 = vmatpush3.msra.mxu0 %v7980_v9  ;;  %v2776_v18 = vadd.f32 %v6495_v50, %v6475_v10  ;;  %6614 = vmatpush3.msra.mxu1 %v5691_v5  ;;  %v5690_v50 = vld [vmem:[%s8877_s23 + $0x68] sm:$0xff]  ;;  %v8189_v7 = vld [vmem:[%s8877_s23 + $0xd0] sm:$0xff] }
 0x836   : > { %v2665_v22 = vpop.f32.mrf.mxu0  ;;  %6549 = vmatprep.subr.mxu0 %v3065_v8  ;;  %6615 = vmatprep.subr.mxu1 %v5690_v50 }
 0x837   : > { %v2771_v23 = vadd.f32 %v2770_v63, %v2665_v22  ;;  %6518 = vmatprep.mubr.msk.f32.mxu0 %vm1333_vm3, %v2791_v6  ;;  %6550 = vmatpush3.msra.mxu0 %v3065_v8  ;;  %v2794_v13 = vmax.f32 %v2776_v18, 0.0  ;;  %v5687_v63 = vld [vmem:[%s8877_s23 + $0x50] sm:$0xff]  ;;  %v8194_v8 = vld [vmem:[%s8877_s23 + $0x118] sm:$0xff]  ;;  %v8208_v18 = vpop.permute.xlu0 %3624 }
 0x838   : > { %v6478_v31 = vpop.f32.mrf.mxu0  ;;  %6519 = vmatmul.mubr.msk.f32.gmra.mxu0 %vm1333_vm3, %v2792_v19  ;;  %6551 = vmatprep.subr.mxu0 %v3064_v16 }
 0x839   : > { %v2793_v9 = vmax.f32 %v2771_v23, 0.0  ;;  %6552 = vmatpush3.msra.mxu0 %v3064_v16  ;;  %v2786_v29 = vadd.f32 %v6498_v20, %v6478_v31  ;;  %6616 = vmatpush3.msra.mxu1 %v5690_v50 }
 0x83a   : > { %v2675_v26 = vpop.f32.mrf.mxu0  ;;  %6553 = vmatprep.subr.mxu0 %v3063_v21  ;;  %6617 = vmatprep.subr.mxu1 %v5689_v52 }
 0x83b   : > { %v2781_v30 = vadd.f32 %v2780_v24, %v2675_v26  ;;  %6521 = vmatprep.mubr.msk.f32.mxu0 %vm1333_vm3, %v2793_v9  ;;  %6554 = vmatpush3.msra.mxu0 %v3063_v21  ;;  %v2796_v40 = vmax.f32 %v2786_v29, 0.0  ;;  %v8212_v23 = vpop.permute.xlu0 %3629 }
 0x83c   : > { %6522 = vmatmul.mubr.msk.f32.gmra.mxu0 %vm1333_vm3, %v2794_v13  ;;  %6587 = vmatprep.subr.mxu0 %v3328_v25 }
 0x83d   : > { %v2795_v28 = vmax.f32 %v2781_v30, 0.0  ;;  %6618 = vmatpush3.msra.mxu1 %v5689_v52 }
 0x83e   : > { %6619 = vmatprep.subr.mxu1 %v5688_v0 }
 0x83f   : > { %6524 = vmatprep.mubr.msk.f32.mxu0 %vm1333_vm3, %v2795_v28  ;;  %6620 = vmatpush3.msra.mxu1 %v5688_v0  ;;  %v8216_v31 = vpop.permute.xlu0 %3927 }
 0x840   : > { %6525 = vmatmul.mubr.msk.f32.gmra.mxu0 %vm1333_vm3, %v2796_v40  ;;  %6621 = vmatprep.subr.mxu1 %v5687_v63 }
 0x841   : > { %6555 = vmatprep.mubr.msk.f32.mxu0 %vm885_vm0, %v7322_v39  ;;  %v3325_v39 = vld [vmem:[%s8875_s21] sm:$0xff]  ;;  %6622 = vmatpush3.msra.mxu1 %v5687_v63 }
 0x842   : > { %6623 = vmatprep.subr.mxu1 %v5686_v59 }
 0x843   : > { %6624 = vmatpush3.msra.mxu1 %v5686_v59  ;;  %v5677_v59 = vld [vmem:[%s8876_s22] ss:$0 sm:$0xff] }
 0x844   : > { %6556 = vmatmul.mubr.msk.f32.vlgmr.msra.gmra.mxu0 %vm885_vm0, %v7319_v37  ;;  %v8111_v37 = vpop.permute.xlu1 %3599  ;;  %6667 = vmatprep.subr.mxu1 %v8189_v7 }
 0x845   : > { %6558 = vmatprep.mubr.msk.f32.mxu0 %vm885_vm0, %v7332_v45  ;;  %6588 = vmatpush3.msra.mxu0 %v3328_v25  ;;  %v3030_v45 = vpop.f32.mrf.mxu1  ;;  %v8220_v25 = vpop.permute.xlu0 %3932 }
 0x846   : > { %6589 = vmatprep.subr.mxu0 %v3327_v32 }
 0x847   : > { %6590 = vmatpush3.msra.mxu0 %v3327_v32  ;;  %v6543_v33 = vpop.f32.mrf.mxu1 }
 0x848   : > { %6559 = vmatmul.mubr.msk.f32.gmra.mxu0 %vm885_vm0, %v7327_v42  ;;  %6591 = vmatprep.subr.mxu0 %v3326_v43  ;;  %v8117_v35 = vpop.permute.xlu1 %3604 }
 0x849   : > { %6561 = vmatprep.mubr.msk.f32.mxu0 %vm885_vm0, %v7342_v51  ;;  %6592 = vmatpush3.msra.mxu0 %v3326_v43  ;;  %v3040_v42 = vpop.f32.mrf.mxu1  ;;  %v8224_v13 = vpop.permute.xlu0 %3555 }
 0x84a   : > { %6593 = vmatprep.subr.mxu0 %v3325_v39 }
 0x84b   : > { %6594 = vmatpush3.msra.mxu0 %v3325_v39  ;;  %v6546_v11 = vpop.f32.mrf.mxu1 }
 0x84c   : > { %6562 = vmatmul.mubr.msk.f32.gmra.mxu0 %vm885_vm0, %v7337_v48  ;;  %v8124_v51 = vpop.permute.xlu1 %3609  ;;  %v3502_v48 = vld [vmem:[#allocation2 + $0x7] sm:$0xff]  ;;  %6637 = vmatprep.subr.mxu0 %v3574_v55 }
 0x84d   : > { %6564 = vmatprep.mubr.msk.f32.mxu0 %vm885_vm0, %v7352_v57  ;;  %v3050_v57 = vpop.f32.mrf.mxu1  ;;  %v8228_v26 = vpop.permute.xlu0 %3942 }
 0x850   : > { %6565 = vmatmul.mubr.msk.f32.gmra.mxu0 %vm885_vm0, %v7347_v54  ;;  %v3521_v27 = vpop.permute.xlu1 %3520 }
 0x851   : > { %6595 = vmatprep.mubr.msk.f32.mxu0 %vm885_vm0, %v3020_v38  ;;  %v3558_v54 = vmul.f32 %v3521_v27, %v3502_v48  ;;  %v8238_v32 = vpop.permute.xlu0 %4144 }
 0x854   : > { %6596 = vmatmul.mubr.msk.f32.vlgmr.msra.gmra.mxu0 %vm885_vm0, %v6537_v14  ;;  %v8198_v10 = vpop.permute.xlu1 %3525 }
 0x855   : > { %6598 = vmatprep.mubr.msk.f32.mxu0 %vm885_vm0, %v3030_v45  ;;  %6638 = vmatpush3.msra.mxu0 %v3574_v55  ;;  %v8248_v45 = vpop.permute.xlu0 %3952 }
 0x856   : > { %6639 = vmatprep.subr.mxu0 %v3573_v58 }
 0x857   : > { %6640 = vmatpush3.msra.mxu0 %v3573_v58 }
 0x858   : > { %6599 = vmatmul.mubr.msk.f32.gmra.mxu0 %vm885_vm0, %v6540_v17  ;;  %6641 = vmatprep.subr.mxu0 %v3572_v61  ;;  %v8200_v6 = vpop.permute.xlu1 %3614 }
 0x859   : > { %6601 = vmatprep.mubr.msk.f32.mxu0 %vm885_vm0, %v3040_v42  ;;  %6642 = vmatpush3.msra.mxu0 %v3572_v61  ;;  %v8256_v27 = vpop.permute.xlu0 %4149 }
 0x85a   : > { %6643 = vmatprep.subr.mxu0 %v3571_v44 }
 0x85b   : > { %6644 = vmatpush3.msra.mxu0 %v3571_v44 }
 0x85c   : > { %6602 = vmatmul.mubr.msk.f32.gmra.mxu0 %vm885_vm0, %v6543_v33  ;;  %6645 = vmatprep.subr.mxu0 %v3570_v34  ;;  %v8202_v16 = vpop.permute.xlu1 %3619 }
 0x85d   : > { %6604 = vmatprep.mubr.msk.f32.mxu0 %vm885_vm0, %v3050_v57  ;;  %6646 = vmatpush3.msra.mxu0 %v3570_v34  ;;  %v8260_v3 = vpop.permute.xlu0 %4154 }
 0x85e   : > { %6647 = vmatprep.subr.mxu0 %v3569_v56 }
 0x85f   : > { %6648 = vmatpush3.msra.mxu0 %v3569_v56 }
 0x860   : > { %6605 = vmatmul.mubr.msk.f32.gmra.mxu0 %vm885_vm0, %v6546_v11  ;;  %6649 = vmatprep.subr.mxu0 %v3568_v53  ;;  %v8204_v20 = vpop.permute.xlu1 %3530  ;;  %v6577_v11 = vpop.f32.mrf.mxu1 }
 0x861   : > { %6655 = vmatprep.mubr.msk.f32.mxu0 %vm3481_vm4, %v3558_v54  ;;  %6650 = vmatpush3.msra.mxu0 %v3568_v53  ;;  %v8264_v56 = vpop.permute.xlu0 %4351 }
 0x862   : > { %6651 = vmatprep.subr.mxu0 %v3567_v4  ;;  %v3286_v49 = vpop.f32.mrf.mxu1 }
 0x863   : > { %6652 = vmatpush3.msra.mxu0 %v3567_v4 }
 0x864   : > { %6653 = vmatprep.subr.mxu0 %v3566_v12  ;;  %v8206_v19 = vpop.permute.xlu1 %3535  ;;  %v6580_v61 = vpop.f32.mrf.mxu1 }
 0x865   : > { %6654 = vmatpush3.msra.mxu0 %v3566_v12 }
 0x866   : > { %6697 = vmatprep.subr.mxu0 %v8194_v8  ;;  %v3296_v50 = vpop.f32.mrf.mxu1 }
 0x868   : > { %v8210_v22 = vpop.permute.xlu1 %3540  ;;  %v6583_v63 = vpop.f32.mrf.mxu1 }
 0x86a   : > { %v3306_v46 = vpop.f32.mrf.mxu1 }
 0x86c   : > { %v8214_v21 = vpop.permute.xlu1 %3545 }
 0x870   : > { %v8218_v9 = vpop.permute.xlu1 %3550 }
 0x874   : > { %v8222_v24 = vpop.permute.xlu1 %3937 }
 0x878   : > { %v8226_v29 = vpop.permute.xlu1 %4139 }
 0x87c   : > { %v8236_v14 = vpop.permute.xlu1 %3947 }
 0x880   : > { %v8246_v17 = vpop.permute.xlu1 %3957 }
 0x884   : > { %v8254_v57 = vpop.permute.xlu1 %3962 }
 0x888   : > { %v8258_v58 = vpop.permute.xlu1 %4159 }
 0x88c   : > { %v8262_v52 = vpop.permute.xlu1 %4164 }
 0x890   : > { %v8269_v60 = vpop.permute.xlu1 %4169 }
 0x894   : > { %v8275_v15 = vpop.permute.xlu1 %4361 }
 0x8f4   : > { %v8230_v30 = vpop.f32.mrf.mxu0 }
 0x8f5   : > { %8933 = vst [vmem:[#allocation12_spill] sm:$0xff] %v8230_v30 }
 0x8f6   : > { %v8232_v28 = vpop.f32.mrf.mxu0 }
 0x8f7   : > { %8934 = vst [vmem:[#allocation13_spill] sm:$0xff] %v8232_v28 }
 0x8f8   : > { %v8234_v40 = vpop.f32.mrf.mxu0 }
 0x8f9   : > { %8935 = vst [vmem:[#allocation14_spill] sm:$0xff] %v8234_v40 }
 0x8fa   : > { %v8240_v38 = vpop.f32.mrf.mxu0 }
 0x8fb   : > { %8936 = vst [vmem:[#allocation15_spill] sm:$0xff] %v8240_v38 }
 0x8fc   : > { %v8242_v43 = vpop.f32.mrf.mxu0 }
 0x8fd   : > { %8937 = vst [vmem:[#allocation16_spill] sm:$0xff] %v8242_v43 }
 0x8fe   : > { %v8244_v39 = vpop.f32.mrf.mxu0 }
 0x8ff   : > { %8938 = vst [vmem:[#allocation17_spill] sm:$0xff] %v8244_v39 }
 0x900   : > { %v8250_v33 = vpop.f32.mrf.mxu0 }
 0x901   : > { %8939 = vst [vmem:[#allocation18_spill] sm:$0xff] %v8250_v33 }
 0x902   : > { %v8252_v42 = vpop.f32.mrf.mxu0 }
 0x903   : > { %8940 = vst [vmem:[#allocation19_spill] sm:$0xff] %v8252_v42  ;;  %v8271_v42 = vpop.permute.xlu0 %4356 }
 0x904   : > { %v6557_v48 = vpop.f32.mrf.mxu0 }
 0x905   : > { %v3292_v53 = vadd.f32 %v6577_v11, %v6557_v48 }
 0x906   : > { %v3157_v54 = vpop.f32.mrf.mxu0 }
 0x907   : > { %v3287_v12 = vadd.f32 %v3286_v49, %v3157_v54 }
 0x908   : > { %v6560_v55 = vpop.f32.mrf.mxu0 }
 0x909   : > { %v3302_v33 = vadd.f32 %v6580_v61, %v6560_v55  ;;  %v8277_v55 = vpop.permute.xlu0 %4174 }
 0x90a   : > { %v3167_v1 = vpop.f32.mrf.mxu0 }
 0x90b   : > { %v3297_v38 = vadd.f32 %v3296_v50, %v3167_v1 }
 0x90c   : > { %v6563_v5 = vpop.f32.mrf.mxu0 }
 0x90d   : > { %v3312_v2 = vadd.f32 %v6583_v63, %v6563_v5 }
 0x90e   : > { %v3177_v44 = vpop.f32.mrf.mxu0 }
 0x910   : > { %v6566_v34 = vpop.f32.mrf.mxu0 }
 0x912   : > { %v3187_v0 = vpop.f32.mrf.mxu0 }
 0x914   : > { %v6597_v4 = vpop.f32.mrf.mxu0 }
 0x915   : > { %v3459_v62 = vadd.f32 %v6597_v4, %v3292_v53  ;;  %v6586_v53 = vpop.f32.mrf.mxu1 }
 0x916   : > { %v3419_v47 = vpop.f32.mrf.mxu0 }
 0x917   : > { %v3474_v39 = vadd.f32 %v5677_v59, %v3459_v62  ;;  %v3458_v41 = vadd.f32 %v3419_v47, %v3287_v12  ;;  %v3307_v62 = vadd.f32 %v3306_v46, %v3177_v44  ;;  %v3316_v61 = vpop.f32.mrf.mxu1 }
 0x918   : > { %v6600_v43 = vpop.f32.mrf.mxu0 }
 0x919   : > { %3495 = vst.msk [vmem:[#allocation2 + $0x18] sm:$0xff] %vm3481_vm4, %v3474_v39  ;;  %v3473_v11 = vadd.f32 %v5677_v59, %v3458_v41  ;;  %v3461_v48 = vadd.f32 %v6600_v43, %v3302_v33  ;;  %v3322_v41 = vadd.f32 %v6586_v53, %v6566_v34  ;;  %v8290_v34 = vpop.permute.xlu1 %4563 }
 0x91a   : > { %v3429_v36 = vpop.f32.mrf.mxu0 }
 0x91b   : > { %3494 = vst.msk [vmem:[#allocation2 + $0x10] sm:$0xff] %vm3481_vm4, %v3473_v11  ;;  %v3476_v54 = vadd.f32 %v5677_v59, %v3461_v48  ;;  %v3460_v49 = vadd.f32 %v3429_v36, %v3297_v38  ;;  %v3317_v36 = vadd.f32 %v3316_v61, %v3187_v0  ;;  %v8292_v11 = vpop.permute.xlu0 %4366 }
 0x91c   : > { %v6603_v4 = vpop.f32.mrf.mxu0 }
 0x91d   : > { %3497 = vst.msk [vmem:[#allocation2 + $0x28] sm:$0xff] %vm3481_vm4, %v3476_v54  ;;  %v3475_v47 = vadd.f32 %v5677_v59, %v3460_v49  ;;  %v3463_v1 = vadd.f32 %v6603_v4, %v3312_v2 }
 0x91e   : > { %v3439_v39 = vpop.f32.mrf.mxu0 }
 0x91f   : > { %3496 = vst.msk [vmem:[#allocation2 + $0x20] sm:$0xff] %vm3481_vm4, %v3475_v47  ;;  %v3478_v43 = vadd.f32 %v5677_v59, %v3463_v1  ;;  %v3462_v33 = vadd.f32 %v3439_v39, %v3307_v62 }
 0x920   : > { %v6606_v5 = vpop.f32.mrf.mxu0  ;;  %v8282_v63 = vld [vmem:[#allocation2 + $0x18] sm:$0xff] }
 0x921   : > { %3499 = vst.msk [vmem:[#allocation2 + $0x38] sm:$0xff] %vm3481_vm4, %v3478_v43  ;;  %v3477_v38 = vadd.f32 %v5677_v59, %v3462_v33  ;;  %v3465_v50 = vadd.f32 %v6606_v5, %v3322_v41  ;;  %v3634_v62 = vmul.f32 %v8117_v35, %v8282_v63  ;;  %v5725_v35 = vld [vmem:[%s8877_s23 + $0xc0] sm:$0xff]  ;;  %v8335_v41 = vpop.permute.xlu1 %4371  ;;  %v8337_v43 = vpop.permute.xlu0 %4568  ;;  %v5724_v5 = vld [vmem:[%s8877_s23 + $0xb8] sm:$0xff] }
 0x922   : > { %v3449_v46 = vpop.f32.mrf.mxu0  ;;  %v8284_v44 = vld [vmem:[#allocation2 + $0x10] sm:$0xff] }
 0x923   : > { %v8286_v12 = vld [vmem:[#allocation2 + $0xf] sm:$0xff]  ;;  %v8288_v2 = vld [vmem:[#allocation2 + $0x17] sm:$0xff]  ;;  %3498 = vst.msk [vmem:[#allocation2 + $0x30] sm:$0xff] %vm3481_vm4, %v3477_v38  ;;  %v3480_v0 = vadd.f32 %v5677_v59, %v3465_v50  ;;  %v3464_v48 = vadd.f32 %v3449_v46, %v3317_v36  ;;  %v3633_v54 = vmul.f32 %v8111_v37, %v8284_v44 }
 0x924   : > { %v3559_v49 = vmul.f32 %v8198_v10, %v8286_v12  ;;  %v3560_v53 = vmul.f32 %v8204_v20, %v8288_v2  ;;  %v5726_v37 = vld [vmem:[%s8877_s23 + $0xc8] sm:$0xff]  ;;  %v5751_v10 = vld [vmem:[%s8877_s23 + $0x110] sm:$0xff]  ;;  %v5748_v38 = vld [vmem:[%s8877_s23 + $0xf8] sm:$0xff] }
 0x925   : > { %3501 = vst.msk [vmem:[#allocation2 + $0x48] sm:$0xff] %vm3481_vm4, %v3480_v0  ;;  %v3479_v4 = vadd.f32 %v5677_v59, %v3464_v48  ;;  %6626 = vmatmul.mubr.msk.f32.vlgmr.msra.gmra.mxu1 %vm3481_vm4, %v3633_v54  ;;  %v8333_v39 = vld [vmem:[#allocation2 + $0x28] sm:$0xff]  ;;  %v8371_v48 = vpop.permute.xlu1 %4381  ;;  %v8373_v54 = vpop.permute.xlu0 %4376 }
 0x926   : > { %6656 = vmatmul.mubr.msk.f32.vlgmr.msra.gmra.mxu0 %vm3481_vm4, %v3559_v49  ;;  %6668 = vmatpush3.msra.mxu1 %v8189_v7  ;;  %v8314_v20 = vld [vmem:[#allocation2 + $0x20] sm:$0xff]  ;;  %v5750_v7 = vld [vmem:[%s8877_s23 + $0x108] sm:$0xff] }
 0x927   : > { %6698 = vmatpush3.msra.mxu0 %v8194_v8  ;;  %v8316_v59 = vld [vmem:[#allocation2 + $0x1f] sm:$0xff]  ;;  %v8318_v47 = vld [vmem:[#allocation2 + $0x27] sm:$0xff]  ;;  %3500 = vst.msk [vmem:[#allocation2 + $0x40] sm:$0xff] %vm3481_vm4, %v3479_v4  ;;  %6628 = vmatprep.mubr.msk.f32.mxu1 %vm3481_vm4, %v3634_v62  ;;  %v3635_v8 = vmul.f32 %v8124_v51, %v8314_v20 }
 0x928   : > { %6658 = vmatprep.mubr.msk.f32.mxu0 %vm3481_vm4, %v3560_v53  ;;  %v3561_v1 = vmul.f32 %v8206_v19, %v8316_v59  ;;  %6669 = vmatprep.subr.mxu1 %v5726_v37  ;;  %v3562_v33 = vmul.f32 %v8210_v22, %v8318_v47  ;;  %v3636_v19 = vmul.f32 %v8200_v6, %v8333_v39  ;;  %v5749_v22 = vld [vmem:[%s8877_s23 + $0x100] sm:$0xff]  ;;  %v5723_v6 = vld [vmem:[%s8877_s23 + $0xb0] sm:$0xff]  ;;  %v8369_v0 = vld [vmem:[#allocation2 + $0x38] sm:$0xff] }
 0x929   : > { %6699 = vmatprep.subr.mxu0 %v5751_v10  ;;  %6670 = vmatpush3.msra.mxu1 %v5726_v37  ;;  %v5722_v4 = vld [vmem:[%s8877_s23 + $0xa8] sm:$0xff]  ;;  %v5721_v62 = vld [vmem:[%s8877_s23 + $0xa0] sm:$0xff] }
 0x92a   : > { %6700 = vmatpush3.msra.mxu0 %v5751_v10  ;;  %6671 = vmatprep.subr.mxu1 %v5725_v35  ;;  %v8341_v61 = vld [vmem:[#allocation2 + $0x30] sm:$0xff] }
 0x92b   : > { %6701 = vmatprep.subr.mxu0 %v5750_v7  ;;  %v8343_v51 = vld [vmem:[#allocation2 + $0x2f] sm:$0xff]  ;;  %6629 = vmatmul.mubr.msk.f32.gmra.mxu1 %vm3481_vm4, %v3635_v8  ;;  %v8355_v36 = vld [vmem:[#allocation2 + $0x37] sm:$0xff]  ;;  %v3637_v50 = vmul.f32 %v8202_v16, %v8341_v61  ;;  %v8405_v8 = vpop.permute.xlu0 %4573 }
 0x92c   : > { %6659 = vmatmul.mubr.msk.f32.gmra.mxu0 %vm3481_vm4, %v3561_v1  ;;  %6672 = vmatpush3.msra.mxu1 %v5725_v35  ;;  %v3563_v46 = vmul.f32 %v8214_v21, %v8343_v51  ;;  %v3564_v49 = vmul.f32 %v8218_v9, %v8355_v36  ;;  %v3638_v21 = vmul.f32 %v8208_v18, %v8369_v0  ;;  %v5747_v9 = vld [vmem:[%s8877_s23 + $0xf0] sm:$0xff]  ;;  %v5746_v18 = vld [vmem:[%s8877_s23 + $0xe8] sm:$0xff]  ;;  %v5720_v1 = vld [vmem:[%s8877_s23 + $0x98] sm:$0xff] }
 0x92d   : > { %6702 = vmatpush3.msra.mxu0 %v5750_v7  ;;  %6631 = vmatprep.mubr.msk.f32.mxu1 %vm3481_vm4, %v3636_v19  ;;  %v3908_v35 = vld [vmem:[#allocation2 + $0x9] sm:$0xff]  ;;  %v8403_v7 = vpop.permute.xlu1 %4386 }
 0x92e   : > { %6661 = vmatprep.mubr.msk.f32.mxu0 %vm3481_vm4, %v3562_v33  ;;  %6673 = vmatprep.subr.mxu1 %v5724_v5  ;;  %v8377_v53 = vld [vmem:[#allocation2 + $0x40] sm:$0xff]  ;;  %v4177_v33 = vmul.f32 %v8226_v29, %v8286_v12  ;;  %v5719_v19 = vld [vmem:[%s8877_s23 + $0x90] sm:$0xff] }
 0x92f   : > { %6703 = vmatprep.subr.mxu0 %v5749_v22  ;;  %6674 = vmatpush3.msra.mxu1 %v5724_v5  ;;  %v8379_v16 = vld [vmem:[#allocation2 + $0x3f] sm:$0xff]  ;;  %v3639_v37 = vmul.f32 %v8212_v23, %v8377_v53  ;;  %v3965_v23 = vmul.f32 %v8216_v31, %v3908_v35  ;;  %v8425_v5 = vld [vmem:[#allocation2 + $0x11] sm:$0xff]  ;;  %v5774_v35 = vld [vmem:[%s8877_s23 + $0x148] sm:$0xff] }
 0x930   : > { %6704 = vmatpush3.msra.mxu0 %v5749_v22  ;;  %6675 = vmatprep.subr.mxu1 %v5723_v6  ;;  %v3565_v10 = vmul.f32 %v8224_v13, %v8379_v16  ;;  %v5745_v13 = vld [vmem:[%s8877_s23 + $0xe0] sm:$0xff]  ;;  %v5744_v31 = vld [vmem:[%s8877_s23 + $0xd8] sm:$0xff]  ;;  %v3966_v12 = vmul.f32 %v8220_v25, %v8425_v5 }
 0x931   : > { %6705 = vmatprep.subr.mxu0 %v5748_v38  ;;  %6632 = vmatmul.mubr.msk.f32.gmra.mxu1 %vm3481_vm4, %v3637_v50  ;;  %v8428_v22 = vpop.permute.xlu1 %4583  ;;  %v8432_v29 = vld [vmem:[#allocation2 + $0x19] sm:$0xff] }
 0x932   : > { %6662 = vmatmul.mubr.msk.f32.gmra.mxu0 %vm3481_vm4, %v3563_v46  ;;  %6676 = vmatpush3.msra.mxu1 %v5723_v6  ;;  %v8430_v6 = vpop.permute.xlu0 %4578  ;;  %v5777_v50 = vld [vmem:[%s8877_s23 + $0x160] sm:$0xff]  ;;  %v5802_v46 = vld [vmem:[%s8877_s23 + $0x1a8] sm:$0xff]  ;;  %v3967_v25 = vmul.f32 %v8222_v24, %v8432_v29 }
 0x933   : > { %6706 = vmatpush3.msra.mxu0 %v5748_v38  ;;  %6634 = vmatprep.mubr.msk.f32.mxu1 %vm3481_vm4, %v3638_v21  ;;  %v4178_v38 = vmul.f32 %v8238_v32, %v8288_v2  ;;  %v4179_v32 = vmul.f32 %v8256_v27, %v8316_v59  ;;  %v5801_v21 = vld [vmem:[%s8877_s23 + $0x1a0] sm:$0xff]  ;;  %v8464_v27 = vld [vmem:[#allocation2 + $0x29] sm:$0xff] }
 0x934   : > { %6664 = vmatprep.mubr.msk.f32.mxu0 %vm3481_vm4, %v3564_v49  ;;  %6677 = vmatprep.subr.mxu1 %v5722_v4  ;;  %v5776_v49 = vld [vmem:[%s8877_s23 + $0x158] sm:$0xff] }
 0x935   : > { %6707 = vmatprep.subr.mxu0 %v5747_v9  ;;  %6678 = vmatpush3.msra.mxu1 %v5722_v4  ;;  %v8456_v4 = vld [vmem:[#allocation2 + $0x21] sm:$0xff]  ;;  %v8460_v24 = vpop.permute.xlu1 %4588 }
 0x936   : > { %6708 = vmatpush3.msra.mxu0 %v5747_v9  ;;  %6679 = vmatprep.subr.mxu1 %v5721_v62  ;;  %v8462_v9 = vpop.permute.xlu0 %4775 }
 0x937   : > { %6709 = vmatprep.subr.mxu0 %v5746_v18  ;;  %6635 = vmatmul.mubr.msk.f32.gmra.mxu1 %vm3481_vm4, %v3639_v37  ;;  %v5775_v37 = vld [vmem:[%s8877_s23 + $0x150] sm:$0xff] }
 0x938   : > { %6665 = vmatmul.mubr.msk.f32.gmra.mxu0 %vm3481_vm4, %v3565_v10  ;;  %6680 = vmatpush3.msra.mxu1 %v5721_v62  ;;  %v3968_v62 = vmul.f32 %v8228_v26, %v8456_v4  ;;  %v5800_v10 = vld [vmem:[%s8877_s23 + $0x198] sm:$0xff]  ;;  %v3969_v26 = vmul.f32 %v8236_v14, %v8464_v27 }
 0x939   : > { %6710 = vmatpush3.msra.mxu0 %v5746_v18  ;;  %6681 = vmatprep.subr.mxu1 %v5720_v1  ;;  %v4180_v18 = vmul.f32 %v8260_v3, %v8318_v47  ;;  %v4181_v3 = vmul.f32 %v8258_v58, %v8343_v51  ;;  %v8492_v14 = vpop.permute.xlu1 %4593  ;;  %v8496_v58 = vld [vmem:[#allocation2 + $0x39] sm:$0xff] }
 0x93a   : > { %6685 = vmatprep.mubr.msk.f32.mxu1 %vm3481_vm4, %v3965_v23  ;;  %6711 = vmatprep.subr.mxu0 %v5745_v13  ;;  %v8488_v23 = vld [vmem:[#allocation2 + $0x31] sm:$0xff] }
 0x93b   : > { %6715 = vmatprep.mubr.msk.f32.mxu0 %vm3481_vm4, %v4177_v33  ;;  %6682 = vmatpush3.msra.mxu1 %v5720_v1  ;;  %v5799_v1 = vld [vmem:[%s8877_s23 + $0x190] sm:$0xff]  ;;  %v3970_v33 = vmul.f32 %v8248_v45, %v8488_v23  ;;  %v3971_v45 = vmul.f32 %v8246_v17, %v8496_v58 }
 0x93c   : > { %6712 = vmatpush3.msra.mxu0 %v5745_v13  ;;  %6683 = vmatprep.subr.mxu1 %v5719_v19  ;;  %v8494_v13 = vpop.permute.xlu0 %4780 }
 0x93d   : > { %6713 = vmatprep.subr.mxu0 %v5744_v31  ;;  %6684 = vmatpush3.msra.mxu1 %v5719_v19  ;;  %v4182_v19 = vmul.f32 %v8262_v52, %v8355_v36  ;;  %v4183_v52 = vmul.f32 %v8269_v60, %v8379_v16  ;;  %v8526_v17 = vpop.permute.xlu1 %4785 }
 0x93e   : > { %6714 = vmatpush3.msra.mxu0 %v5744_v31  ;;  %6686 = vmatmul.mubr.msk.f32.vlgmr.msra.gmra.mxu1 %vm3481_vm4, %v3966_v12  ;;  %v5773_v31 = vld [vmem:[%s8877_s23 + $0x140] sm:$0xff]  ;;  %v5798_v12 = vld [vmem:[%s8877_s23 + $0x188] sm:$0xff] }
 0x93f   : > { %6716 = vmatmul.mubr.msk.f32.vlgmr.msra.gmra.mxu0 %vm3481_vm4, %v4178_v38  ;;  %6727 = vmatprep.subr.mxu1 %v5777_v50  ;;  %v5772_v38 = vld [vmem:[%s8877_s23 + $0x138] sm:$0xff] }
 0x940   : > { %6757 = vmatprep.subr.mxu0 %v5802_v46  ;;  %6688 = vmatprep.mubr.msk.f32.mxu1 %vm3481_vm4, %v3967_v25  ;;  %v8522_v25 = vld [vmem:[#allocation2 + $0x47] sm:$0xff]  ;;  %v8528_v60 = vpop.permute.xlu0 %4598 }
 0x941   : > { %6718 = vmatprep.mubr.msk.f32.mxu0 %vm3481_vm4, %v4179_v32  ;;  %6728 = vmatpush3.msra.mxu1 %v5777_v50  ;;  %v5797_v50 = vld [vmem:[%s8877_s23 + $0x180] sm:$0xff] }
 0x942   : > { %6758 = vmatpush3.msra.mxu0 %v5802_v46  ;;  %6729 = vmatprep.subr.mxu1 %v5776_v49  ;;  %v8520_v46 = vld [vmem:[#allocation2 + $0x41] sm:$0xff] }
 0x943   : > { %6759 = vmatprep.subr.mxu0 %v5801_v21  ;;  %6730 = vmatpush3.msra.mxu1 %v5776_v49  ;;  %v3972_v32 = vmul.f32 %v8254_v57, %v8520_v46  ;;  %v4184_v49 = vmul.f32 %v8277_v55, %v8522_v25  ;;  %v4389_v57 = vmul.f32 %v8264_v56, %v8284_v44  ;;  %v5769_v56 = vld [vmem:[%s8877_s23 + $0x120] sm:$0xff]  ;;  %v5794_v44 = vld [vmem:[%s8877_s23 + $0x168] sm:$0xff] }
 0x944   : > { %6760 = vmatpush3.msra.mxu0 %v5801_v21  ;;  %6689 = vmatmul.mubr.msk.f32.gmra.mxu1 %vm3481_vm4, %v3968_v62  ;;  %v5771_v21 = vld [vmem:[%s8877_s23 + $0x130] sm:$0xff]  ;;  %v5796_v62 = vld [vmem:[%s8877_s23 + $0x178] sm:$0xff]  ;;  %v4601_v55 = vmul.f32 %v8290_v34, %v8425_v5  ;;  %v4390_v34 = vmul.f32 %v8271_v42, %v8282_v63  ;;  %v4602_v5 = vmul.f32 %v8337_v43, %v8432_v29 }
 0x945   : > { %6719 = vmatmul.mubr.msk.f32.gmra.mxu0 %vm3481_vm4, %v4180_v18  ;;  %6731 = vmatprep.subr.mxu1 %v5775_v37  ;;  %v5770_v18 = vld [vmem:[%s8877_s23 + $0x128] sm:$0xff]  ;;  %v4391_v42 = vmul.f32 %v8275_v15, %v8314_v20  ;;  %v4603_v43 = vmul.f32 %v8405_v8, %v8456_v4  ;;  %v4392_v15 = vmul.f32 %v8292_v11, %v8333_v39 }
 0x946   : > { %6761 = vmatprep.subr.mxu0 %v5800_v10  ;;  %6691 = vmatprep.mubr.msk.f32.mxu1 %vm3481_vm4, %v3969_v26  ;;  %v8555_v26 = vpop.permute.xlu0 %4790  ;;  %v4604_v8 = vmul.f32 %v8430_v6, %v8464_v27  ;;  %v4393_v11 = vmul.f32 %v8335_v41, %v8341_v61  ;;  %v4605_v6 = vmul.f32 %v8428_v22, %v8488_v23 }
 0x947   : > { %6721 = vmatprep.mubr.msk.f32.mxu0 %vm3481_vm4, %v4181_v3  ;;  %6732 = vmatpush3.msra.mxu1 %v5775_v37  ;;  %v5795_v37 = vld [vmem:[%s8877_s23 + $0x170] sm:$0xff]  ;;  %v4394_v41 = vmul.f32 %v8373_v54, %v8369_v0  ;;  %v4606_v22 = vmul.f32 %v8460_v24, %v8496_v58  ;;  %v4395_v54 = vmul.f32 %v8371_v48, %v8377_v53 }
 0x948   : > { %6762 = vmatpush3.msra.mxu0 %v5800_v10  ;;  %6733 = vmatprep.subr.mxu1 %v5774_v35  ;;  %v8553_v10 = vpop.permute.xlu1 %4987  ;;  %v5827_v3 = vld [vmem:[%s8877_s23 + $0x1f0] sm:$0xff]  ;;  %v4607_v24 = vmul.f32 %v8492_v14, %v8520_v46 }
 0x949   : > { %6763 = vmatprep.subr.mxu0 %v5799_v1  ;;  %6734 = vmatpush3.msra.mxu1 %v5774_v35  ;;  %v5852_v35 = vld [vmem:[%s8877_s23 + $0x238] sm:$0xff] }
 0x94a   : > { %6764 = vmatpush3.msra.mxu0 %v5799_v1  ;;  %6692 = vmatmul.mubr.msk.f32.gmra.mxu1 %vm3481_vm4, %v3970_v33  ;;  %v8582_v33 = vpop.permute.xlu0 %4795 }
 0x94b   : > { %6722 = vmatmul.mubr.msk.f32.gmra.mxu0 %vm3481_vm4, %v4182_v19  ;;  %6735 = vmatprep.subr.mxu1 %v5773_v31  ;;  %v5826_v19 = vld [vmem:[%s8877_s23 + $0x1e8] sm:$0xff] }
 0x94c   : > { %6765 = vmatprep.subr.mxu0 %v5798_v12  ;;  %6694 = vmatprep.mubr.msk.f32.mxu1 %vm3481_vm4, %v3971_v45  ;;  %v8580_v1 = vpop.permute.xlu1 %4992  ;;  %v5850_v45 = vld [vmem:[%s8877_s23 + $0x228] sm:$0xff] }
 0x94d   : > { %6724 = vmatprep.mubr.msk.f32.mxu0 %vm3481_vm4, %v4183_v52  ;;  %6736 = vmatpush3.msra.mxu1 %v5773_v31  ;;  %v5851_v31 = vld [vmem:[%s8877_s23 + $0x230] sm:$0xff] }
 0x94e   : > { %6766 = vmatpush3.msra.mxu0 %v5798_v12  ;;  %6737 = vmatprep.subr.mxu1 %v5772_v38  ;;  %v5825_v12 = vld [vmem:[%s8877_s23 + $0x1e0] sm:$0xff] }
 0x94f   : > { %6767 = vmatprep.subr.mxu0 %v5797_v50  ;;  %6738 = vmatpush3.msra.mxu1 %v5772_v38  ;;  %v8610_v38 = vpop.permute.xlu0 %4800 }
 0x950   : > { %6768 = vmatpush3.msra.mxu0 %v5797_v50  ;;  %6695 = vmatmul.mubr.msk.f32.gmra.mxu1 %vm3481_vm4, %v3972_v32  ;;  %v8608_v52 = vpop.permute.xlu1 %4805  ;;  %v5824_v50 = vld [vmem:[%s8877_s23 + $0x1d8] sm:$0xff]  ;;  %v5849_v32 = vld [vmem:[%s8877_s23 + $0x220] sm:$0xff] }
 0x951   : > { %6725 = vmatmul.mubr.msk.f32.gmra.mxu0 %vm3481_vm4, %v4184_v49  ;;  %6739 = vmatprep.subr.mxu1 %v5771_v21  ;;  %v5823_v49 = vld [vmem:[%s8877_s23 + $0x1d0] sm:$0xff] }
 0x952   : > { %6769 = vmatprep.subr.mxu0 %v5796_v62  ;;  %6740 = vmatpush3.msra.mxu1 %v5771_v21  ;;  %v5848_v21 = vld [vmem:[%s8877_s23 + $0x218] sm:$0xff] }
 0x953   : > { %6745 = vmatprep.mubr.msk.f32.mxu1 %vm3481_vm4, %v4389_v57  ;;  %6770 = vmatpush3.msra.mxu0 %v5796_v62  ;;  %v5822_v62 = vld [vmem:[%s8877_s23 + $0x1c8] sm:$0xff] }
 0x954   : > { %6775 = vmatprep.mubr.msk.f32.mxu0 %vm3481_vm4, %v4601_v55  ;;  %6741 = vmatprep.subr.mxu1 %v5770_v18  ;;  %v8639_v57 = vpop.permute.xlu1 %4810  ;;  %v4998_v55 = vpop.permute.xlu0 %4997 }
 0x955   : > { %6771 = vmatprep.subr.mxu0 %v5795_v37  ;;  %6742 = vmatpush3.msra.mxu1 %v5770_v18  ;;  %v5847_v18 = vld [vmem:[%s8877_s23 + $0x210] sm:$0xff] }
 0x956   : > { %6772 = vmatpush3.msra.mxu0 %v5795_v37  ;;  %6743 = vmatprep.subr.mxu1 %v5769_v56  ;;  %v8644_v37 = vld [vmem:[#allocation2 + $0x48] sm:$0xff] }
 0x957   : > { %6773 = vmatprep.subr.mxu0 %v5794_v44  ;;  %6744 = vmatpush3.msra.mxu1 %v5769_v56  ;;  %v8646_v56 = vld [vmem:[#allocation2 + $0x49] sm:$0xff]  ;;  %v4396_v48 = vmul.f32 %v8403_v7, %v8644_v37  ;;  %v4813_v7 = vmul.f32 %v8462_v9, %v8288_v2  ;;  %v4814_v9 = vmul.f32 %v8494_v13, %v8316_v59 }
 0x958   : > { %6774 = vmatpush3.msra.mxu0 %v5794_v44  ;;  %6746 = vmatmul.mubr.msk.f32.vlgmr.msra.gmra.mxu1 %vm3481_vm4, %v4390_v34  ;;  %v4608_v14 = vmul.f32 %v8528_v60, %v8646_v56  ;;  %v5821_v44 = vld [vmem:[%s8877_s23 + $0x1c0] sm:$0xff]  ;;  %v5846_v34 = vld [vmem:[%s8877_s23 + $0x208] sm:$0xff]  ;;  %v5025_v60 = vmul.f32 %v8553_v10, %v8282_v63  ;;  %v5819_v2 = vld [vmem:[%s8877_s23 + $0x1b0] sm:$0xff]  ;;  %v5026_v10 = vmul.f32 %v8580_v1, %v8314_v20 }
 0x959   : > { %6776 = vmatmul.mubr.msk.f32.vlgmr.msra.gmra.mxu0 %vm3481_vm4, %v4602_v5  ;;  %6787 = vmatprep.subr.mxu1 %v5827_v3  ;;  %v5008_v5 = vpop.permute.xlu1 %5007  ;;  %v5844_v63 = vld [vmem:[%s8877_s23 + $0x1f8] sm:$0xff]  ;;  %v5027_v59 = vmul.f32 %v4998_v55, %v8333_v39  ;;  %v4816_v13 = vmul.f32 %v8555_v26, %v8343_v51  ;;  %v5875_v39 = vld [vmem:[%s8877_s23 + $0x270] sm:$0xff]  ;;  %v4818_v26 = vmul.f32 %v8610_v38, %v8379_v16 }
 0x95a   : > { %6817 = vmatprep.subr.mxu0 %v5852_v35  ;;  %6748 = vmatprep.mubr.msk.f32.mxu1 %vm3481_vm4, %v4391_v42  ;;  %v5845_v42 = vld [vmem:[%s8877_s23 + $0x200] sm:$0xff]  ;;  %v5876_v20 = vld [vmem:[%s8877_s23 + $0x278] sm:$0xff]  ;;  %v5029_v51 = vmul.f32 %v5008_v5, %v8369_v0  ;;  %v4975_v16 = vld [vmem:[#allocation2 + $0x50] sm:$0xff] }
 0x95b   : > { %6778 = vmatprep.mubr.msk.f32.mxu0 %vm3481_vm4, %v4603_v43  ;;  %6788 = vmatpush3.msra.mxu1 %v5827_v3  ;;  %v5003_v3 = vpop.permute.xlu0 %5002  ;;  %v5877_v43 = vld [vmem:[%s8877_s23 + $0x280] sm:$0xff]  ;;  %v5187_v55 = vld [vmem:[#allocation2 + $0x51] sm:$0xff] }
 0x95c   : > { %6818 = vmatpush3.msra.mxu0 %v5852_v35  ;;  %6789 = vmatprep.subr.mxu1 %v5826_v19  ;;  %v5820_v35 = vld [vmem:[%s8877_s23 + $0x1b8] sm:$0xff]  ;;  %v5873_v0 = vld [vmem:[%s8877_s23 + $0x260] sm:$0xff] }
 0x95d   : > { %6819 = vmatprep.subr.mxu0 %v5851_v31  ;;  %6790 = vmatpush3.msra.mxu1 %v5826_v19  ;;  %v5013_v19 = vpop.permute.xlu1 %5012 }
 0x95e   : > { %6820 = vmatpush3.msra.mxu0 %v5851_v31  ;;  %6749 = vmatmul.mubr.msk.f32.gmra.mxu1 %vm3481_vm4, %v4392_v15  ;;  %v4815_v15 = vmul.f32 %v8526_v17, %v8318_v47  ;;  %v5028_v47 = vmul.f32 %v5003_v3, %v8341_v61  ;;  %v5874_v61 = vld [vmem:[%s8877_s23 + $0x268] sm:$0xff] }
 0x95f   : > { %6779 = vmatmul.mubr.msk.f32.gmra.mxu0 %vm3481_vm4, %v4604_v8  ;;  %6791 = vmatprep.subr.mxu1 %v5825_v12  ;;  %v8687_v31 = vpop.permute.xlu0 %5209  ;;  %v4817_v8 = vmul.f32 %v8582_v33, %v8355_v36  ;;  %v5030_v36 = vmul.f32 %v5013_v19, %v8377_v53  ;;  %v5872_v53 = vld [vmem:[%s8877_s23 + $0x258] sm:$0xff] }
 0x960   : > { %6821 = vmatprep.subr.mxu0 %v5850_v45  ;;  %6751 = vmatprep.mubr.msk.f32.mxu1 %vm3481_vm4, %v4393_v11 }
 0x961   : > { %6781 = vmatprep.mubr.msk.f32.mxu0 %vm3481_vm4, %v4605_v6  ;;  %6792 = vmatpush3.msra.mxu1 %v5825_v12  ;;  %v5018_v17 = vpop.permute.xlu1 %5017  ;;  %v4763_v6 = vld [vmem:[#allocation2 + $0x4f] sm:$0xff] }
 0x962   : > { %6822 = vmatpush3.msra.mxu0 %v5850_v45  ;;  %6793 = vmatprep.subr.mxu1 %v5824_v50  ;;  %v4819_v45 = vmul.f32 %v8608_v52, %v8522_v25  ;;  %v5031_v11 = vmul.f32 %v5018_v17, %v8644_v37  ;;  %v4820_v25 = vmul.f32 %v8639_v57, %v4763_v6  ;;  %v5871_v52 = vld [vmem:[%s8877_s23 + $0x250] sm:$0xff] }
 0x963   : > { %6823 = vmatprep.subr.mxu0 %v5849_v32  ;;  %6794 = vmatpush3.msra.mxu1 %v5824_v50  ;;  %v8705_v1 = vpop.permute.xlu0 %5214 }
 0x964   : > { %6824 = vmatpush3.msra.mxu0 %v5849_v32  ;;  %6752 = vmatmul.mubr.msk.f32.gmra.mxu1 %vm3481_vm4, %v4394_v41 }
 0x965   : > { %6782 = vmatmul.mubr.msk.f32.gmra.mxu0 %vm3481_vm4, %v4606_v22  ;;  %6795 = vmatprep.subr.mxu1 %v5823_v49  ;;  %v5023_v33 = vpop.permute.xlu1 %5022  ;;  %v5239_v22 = vmul.f32 %v8687_v31, %v8464_v27 }
 0x966   : > { %6825 = vmatprep.subr.mxu0 %v5848_v21  ;;  %6754 = vmatprep.mubr.msk.f32.mxu1 %vm3481_vm4, %v4395_v54  ;;  %v5032_v38 = vmul.f32 %v5023_v33, %v4975_v16 }
 0x967   : > { %6784 = vmatprep.mubr.msk.f32.mxu0 %vm3481_vm4, %v4607_v24  ;;  %6796 = vmatpush3.msra.mxu1 %v5823_v49  ;;  %v5220_v12 = vpop.permute.xlu0 %5219  ;;  %v5870_v49 = vld [vmem:[%s8877_s23 + $0x248] sm:$0xff]  ;;  %v5240_v24 = vmul.f32 %v8705_v1, %v8488_v23 }
 0x968   : > { %6826 = vmatpush3.msra.mxu0 %v5848_v21  ;;  %6797 = vmatprep.subr.mxu1 %v5822_v62  ;;  %v5869_v21 = vld [vmem:[%s8877_s23 + $0x240] sm:$0xff] }
 0x969   : > { %6827 = vmatprep.subr.mxu0 %v5847_v18  ;;  %6798 = vmatpush3.msra.mxu1 %v5822_v62  ;;  %v5200_v50 = vpop.permute.xlu1 %5199  ;;  %v5241_v62 = vmul.f32 %v5220_v12, %v8496_v58 }
 0x96a   : > { %6828 = vmatpush3.msra.mxu0 %v5847_v18  ;;  %6755 = vmatmul.mubr.msk.f32.gmra.mxu1 %vm3481_vm4, %v4396_v48  ;;  %v5237_v41 = vmul.f32 %v5200_v50, %v8432_v29 }
 0x96b   : > { %6785 = vmatmul.mubr.msk.f32.gmra.mxu0 %vm3481_vm4, %v4608_v14  ;;  %6799 = vmatprep.subr.mxu1 %v5821_v44  ;;  %v5225_v32 = vpop.permute.xlu0 %5224 }
 0x96c   : > { %6829 = vmatprep.subr.mxu0 %v5846_v34  ;;  %6800 = vmatpush3.msra.mxu1 %v5821_v44  ;;  %v5242_v57 = vmul.f32 %v5225_v32, %v8520_v46 }
 0x96d   : > { %6805 = vmatprep.mubr.msk.f32.mxu1 %vm3481_vm4, %v4813_v7  ;;  %6830 = vmatpush3.msra.mxu0 %v5846_v34  ;;  %v5205_v29 = vpop.permute.xlu1 %5204 }
 0x96e   : > { %6835 = vmatprep.mubr.msk.f32.mxu0 %vm3481_vm4, %v5025_v60  ;;  %6801 = vmatprep.subr.mxu1 %v5820_v35  ;;  %v5238_v27 = vmul.f32 %v5205_v29, %v8456_v4 }
 0x96f   : > { %6831 = vmatprep.subr.mxu0 %v5845_v42  ;;  %6802 = vmatpush3.msra.mxu1 %v5820_v35  ;;  %v5230_v54 = vpop.permute.xlu0 %5229 }
 0x970   : > { %6832 = vmatpush3.msra.mxu0 %v5845_v42  ;;  %6803 = vmatprep.subr.mxu1 %v5819_v2  ;;  %v5243_v37 = vmul.f32 %v5230_v54, %v8646_v56 }
 0x971   : > { %6833 = vmatprep.subr.mxu0 %v5844_v63  ;;  %6804 = vmatpush3.msra.mxu1 %v5819_v2 }
 0x972   : > { %6834 = vmatpush3.msra.mxu0 %v5844_v63  ;;  %6806 = vmatmul.mubr.msk.f32.vlgmr.msra.gmra.mxu1 %vm3481_vm4, %v4814_v9 }
 0x973   : > { %6836 = vmatmul.mubr.msk.f32.vlgmr.msra.gmra.mxu0 %vm3481_vm4, %v5026_v10  ;;  %6847 = vmatprep.subr.mxu0 %v5877_v43  ;;  %v5235_v18 = vpop.permute.xlu0 %5234 }
 0x974   : > { %6877 = vmatprep.subr.mxu1 %v5877_v43  ;;  %6808 = vmatprep.mubr.msk.f32.mxu1 %vm3481_vm4, %v4815_v15  ;;  %v5244_v4 = vmul.f32 %v5235_v18, %v5187_v55 }
 0x975   : > { %6838 = vmatprep.mubr.msk.f32.mxu0 %vm3481_vm4, %v5027_v59  ;;  %6848 = vmatpush3.msra.mxu0 %v5877_v43 }
 0x976   : > { %6886 = vmatpush3.msra.mxu1 %v5877_v43  ;;  %6849 = vmatprep.subr.mxu0 %v5876_v20 }
 0x977   : > { %6878 = vmatprep.subr.mxu1 %v5876_v20  ;;  %6850 = vmatpush3.msra.mxu0 %v5876_v20 }
 0x978   : > { %6887 = vmatpush3.msra.mxu1 %v5876_v20  ;;  %6839 = vmatmul.mubr.msk.f32.gmra.mxu0 %vm3481_vm4, %v5028_v47 }
 0x979   : > { %6809 = vmatmul.mubr.msk.f32.gmra.mxu1 %vm3481_vm4, %v4816_v13  ;;  %6851 = vmatprep.subr.mxu0 %v5875_v39 }
 0x97a   : > { %6879 = vmatprep.subr.mxu1 %v5875_v39  ;;  %6811 = vmatprep.mubr.msk.f32.mxu1 %vm3481_vm4, %v4817_v8 }
 0x97b   : > { %6841 = vmatprep.mubr.msk.f32.mxu0 %vm3481_vm4, %v5029_v51  ;;  %6852 = vmatpush3.msra.mxu0 %v5875_v39 }
 0x97c   : > { %6888 = vmatpush3.msra.mxu1 %v5875_v39  ;;  %6853 = vmatprep.subr.mxu0 %v5874_v61 }
 0x97d   : > { %6880 = vmatprep.subr.mxu1 %v5874_v61  ;;  %6854 = vmatpush3.msra.mxu0 %v5874_v61 }
 0x97e   : > { %6889 = vmatpush3.msra.mxu1 %v5874_v61  ;;  %6842 = vmatmul.mubr.msk.f32.gmra.mxu0 %vm3481_vm4, %v5030_v36 }
 0x97f   : > { %6812 = vmatmul.mubr.msk.f32.gmra.mxu1 %vm3481_vm4, %v4818_v26  ;;  %6855 = vmatprep.subr.mxu0 %v5873_v0 }
 0x980   : > { %6881 = vmatprep.subr.mxu1 %v5873_v0  ;;  %6814 = vmatprep.mubr.msk.f32.mxu1 %vm3481_vm4, %v4819_v45 }
 0x981   : > { %6844 = vmatprep.mubr.msk.f32.mxu0 %vm3481_vm4, %v5031_v11  ;;  %6856 = vmatpush3.msra.mxu0 %v5873_v0 }
 0x982   : > { %6890 = vmatpush3.msra.mxu1 %v5873_v0  ;;  %6857 = vmatprep.subr.mxu0 %v5872_v53 }
 0x983   : > { %6882 = vmatprep.subr.mxu1 %v5872_v53  ;;  %6858 = vmatpush3.msra.mxu0 %v5872_v53 }
 0x984   : > { %6891 = vmatpush3.msra.mxu1 %v5872_v53  ;;  %6845 = vmatmul.mubr.msk.f32.gmra.mxu0 %vm3481_vm4, %v5032_v38 }
 0x985   : > { %6815 = vmatmul.mubr.msk.f32.gmra.mxu1 %vm3481_vm4, %v4820_v25  ;;  %6859 = vmatprep.subr.mxu0 %v5871_v52 }
 0x986   : > { %6883 = vmatprep.subr.mxu1 %v5871_v52  ;;  %6860 = vmatpush3.msra.mxu0 %v5871_v52 }
 0x987   : > { %6892 = vmatpush3.msra.mxu1 %v5871_v52  ;;  %6865 = vmatprep.mubr.msk.f32.mxu0 %vm3481_vm4, %v5237_v41 }
 0x988   : > { %6868 = vmatprep.mubr.msk.f32.mxu1 %vm3481_vm4, %v5239_v22  ;;  %6861 = vmatprep.subr.mxu0 %v5870_v49 }
 0x989   : > { %6884 = vmatprep.subr.mxu1 %v5870_v49  ;;  %6862 = vmatpush3.msra.mxu0 %v5870_v49 }
 0x98a   : > { %6893 = vmatpush3.msra.mxu1 %v5870_v49  ;;  %6863 = vmatprep.subr.mxu0 %v5869_v21 }
 0x98b   : > { %6885 = vmatprep.subr.mxu1 %v5869_v21  ;;  %6864 = vmatpush3.msra.mxu0 %v5869_v21 }
 0x98c   : > { %6894 = vmatpush3.msra.mxu1 %v5869_v21  ;;  %6866 = vmatmul.mubr.msk.f32.vlgmr.msra.gmra.mxu0 %vm3481_vm4, %v5238_v27 }
 0x98d   : > { %6869 = vmatmul.mubr.msk.f32.vlgmr.msra.gmra.mxu1 %vm3481_vm4, %v5240_v24 }
 0x98e   : > { %6871 = vmatprep.mubr.msk.f32.mxu1 %vm3481_vm4, %v5241_v62 }
 0x991   : > { %6872 = vmatmul.mubr.msk.f32.gmra.mxu1 %vm3481_vm4, %v5242_v57 }
 0x992   : > { %6874 = vmatprep.mubr.msk.f32.mxu1 %vm3481_vm4, %v5243_v37 }
 0x995   : > { %6875 = vmatmul.mubr.msk.f32.gmra.mxu1 %vm3481_vm4, %v5244_v4 }
 0x9e5   : > { %v6627_v23 = vpop.f32.mrf.mxu1 }
 0x9e6   : > { %v6657_v58 = vpop.f32.mrf.mxu0 }
 0x9e7   : > { %v3740_v48 = vpop.f32.mrf.mxu1  ;;  %v3875_v24 = vadd.f32 %v6657_v58, %v6627_v23 }
 0x9e8   : > { %v3869_v14 = vpop.f32.mrf.mxu0 }
 0x9e9   : > { %v3870_v18 = vadd.f32 %v3869_v14, %v3740_v48 }
 0x9eb   : > { %v6630_v44 = vpop.f32.mrf.mxu1 }
 0x9ec   : > { %v6660_v34 = vpop.f32.mrf.mxu0 }
 0x9ed   : > { %v3750_v7 = vpop.f32.mrf.mxu1  ;;  %v3885_v62 = vadd.f32 %v6660_v34, %v6630_v44 }
 0x9ee   : > { %v3879_v5 = vpop.f32.mrf.mxu0 }
 0x9ef   : > { %v3880_v37 = vadd.f32 %v3879_v5, %v3750_v7 }
 0x9f1   : > { %v6633_v46 = vpop.f32.mrf.mxu1 }
 0x9f2   : > { %v6663_v3 = vpop.f32.mrf.mxu0 }
 0x9f3   : > { %v3760_v60 = vpop.f32.mrf.mxu1 }
 0x9f4   : > { %v3889_v35 = vpop.f32.mrf.mxu0 }
 0x9f7   : > { %v8762_v56 = vpop.f32.mrf.mxu1 }
 0x9f8   : > { %8941 = vst [vmem:[#allocation20_spill] sm:$0xff] %v8762_v56  ;;  %v6666_v42 = vpop.f32.mrf.mxu0 }
 0x9f9   : > { %v3770_v2 = vpop.f32.mrf.mxu1 }
 0x9fa   : > { %v3899_v63 = vpop.f32.mrf.mxu0 }
 0x9fb   : > { %v3900_v48 = vadd.f32 %v3899_v63, %v3770_v2 }
 0x9fe   : > { %v6687_v9 = vpop.f32.mrf.mxu1 }
 0x9ff   : > { %v6717_v10 = vpop.f32.mrf.mxu0  ;;  %v4113_v4 = vadd.f32 %v6687_v9, %v3875_v24  ;;  %v8957_v24 = vld [vmem:[#allocation7_spill] sm:$0xff] }
 0xa00   : > { %v4073_v43 = vpop.f32.mrf.mxu1 }
 0xa01   : > { %v4285_v19 = vpop.f32.mrf.mxu0  ;;  %v4325_v28 = vadd.f32 %v6717_v10, %v4113_v4 }
 0xa04   : > { %v6690_v31 = vpop.f32.mrf.mxu1 }
 0xa05   : > { %v6720_v15 = vpop.f32.mrf.mxu0 }
 0xa06   : > { %v4083_v59 = vpop.f32.mrf.mxu1 }
 0xa07   : > { %v4295_v20 = vpop.f32.mrf.mxu0 }
 0xa0a   : > { %v6693_v13 = vpop.f32.mrf.mxu1 }
 0xa0b   : > { %v6723_v47 = vpop.f32.mrf.mxu0 }
 0xa0c   : > { %v4093_v39 = vpop.f32.mrf.mxu1 }
 0xa0d   : > { %v4305_v17 = vpop.f32.mrf.mxu0 }
 0xa10   : > { %v6696_v1 = vpop.f32.mrf.mxu1 }
 0xa11   : > { %v8764_v8 = vpop.f32.mrf.mxu0 }
 0xa12   : > { %8942 = vst [vmem:[#allocation21_spill] sm:$0xff] %v8764_v8  ;;  %v4103_v51 = vpop.f32.mrf.mxu1  ;;  %v3895_v8 = vadd.f32 %v6663_v3, %v6633_v46 }
 0xa13   : > { %v8766_v61 = vpop.f32.mrf.mxu0 }
 0xa14   : > { %8943 = vst [vmem:[#allocation22_spill] sm:$0xff] %v8766_v61  ;;  %v4114_v61 = vadd.f32 %v4083_v59, %v3880_v37  ;;  %v4117_v56 = vadd.f32 %v6693_v13, %v3895_v8  ;;  %v4118_v59 = vadd.f32 %v4103_v51, %v3900_v48 }
 0xa16   : > { %v4326_v58 = vadd.f32 %v4295_v20, %v4114_v61  ;;  %v4329_v3 = vadd.f32 %v6723_v47, %v4117_v56  ;;  %v8952_v61 = vld [vmem:[#allocation14_spill] sm:$0xff] }
 0xa18   : > { %v6747_v26 = vpop.f32.mrf.mxu1 }
 0xa19   : > { %v6777_v36 = vpop.f32.mrf.mxu0  ;;  %v4537_v44 = vadd.f32 %v6747_v26, %v4325_v28  ;;  %v2937_v26 = vmul.f32 0.1, %v8952_v61  ;;  %v8966_v61 = vld [vmem:[#allocation9_spill] sm:$0xff] }
 0xa1a   : > { %v4497_v0 = vpop.f32.mrf.mxu1 }
 0xa1b   : > { %v4709_v33 = vpop.f32.mrf.mxu0  ;;  %v4749_v10 = vadd.f32 %v6777_v36, %v4537_v44  ;;  %v8954_v47 = vld [vmem:[#allocation22_spill] sm:$0xff]  ;;  %v8962_v44 = vld [vmem:[#allocation16_spill] sm:$0xff] }
 0xa1e   : > { %v6750_v12 = vpop.f32.mrf.mxu1 }
 0xa1f   : > { %v6780_v45 = vpop.f32.mrf.mxu0 }
 0xa20   : > { %v4507_v11 = vpop.f32.mrf.mxu1 }
 0xa21   : > { %v4719_v16 = vpop.f32.mrf.mxu0  ;;  %v4538_v46 = vadd.f32 %v4507_v11, %v4326_v58 }
 0xa23   : > { %v4750_v63 = vadd.f32 %v4719_v16, %v4538_v46 }
 0xa24   : > { %v6753_v53 = vpop.f32.mrf.mxu1 }
 0xa25   : > { %v6783_v6 = vpop.f32.mrf.mxu0 }
 0xa26   : > { %v4517_v38 = vpop.f32.mrf.mxu1 }
 0xa27   : > { %v8768_v25 = vpop.f32.mrf.mxu0 }
 0xa28   : > { %8944 = vst [vmem:[#allocation23_spill] sm:$0xff] %v8768_v25  ;;  %v4115_v25 = vadd.f32 %v6690_v31, %v3885_v62  ;;  %v2945_v62 = vadd.f32 %v2937_v26, %v8957_v24 }
 0xa2a   : > { %v6756_v52 = vpop.f32.mrf.mxu1  ;;  %v4327_v30 = vadd.f32 %v6720_v15, %v4115_v25 }
 0xa2b   : > { %v8770_v50 = vpop.f32.mrf.mxu0 }
 0xa2c   : > { %8945 = vst [vmem:[#allocation24_spill] sm:$0xff] %v8770_v50  ;;  %v4527_v32 = vpop.f32.mrf.mxu1  ;;  %v4112_v50 = vadd.f32 %v4073_v43, %v3870_v18  ;;  %v4539_v34 = vadd.f32 %v6750_v12, %v4327_v30  ;;  %v4541_v30 = vadd.f32 %v6753_v53, %v4329_v3 }
 0xa2d   : > { %v8772_v41 = vpop.f32.mrf.mxu0 }
 0xa2e   : > { %8946 = vst [vmem:[#allocation25_spill] sm:$0xff] %v8772_v41  ;;  %v4324_v23 = vadd.f32 %v4285_v19, %v4112_v50  ;;  %v4751_v15 = vadd.f32 %v6780_v45, %v4539_v34  ;;  %v8951_v19 = vld [vmem:[#allocation13_spill] sm:$0xff]  ;;  %v4753_v45 = vadd.f32 %v6783_v6, %v4541_v30  ;;  %v8796_v6 = vld [vmem:[%s8878_s24] ss:$0 sm:$0xff]  ;;  %v2939_v34 = vmul.f32 0.1, %v8962_v44 }
 0xa2f   : > { %v2934_v20 = vmul.f32 0.1, %v8951_v19  ;;  %v8955_v50 = vld [vmem:[#allocation5_spill] sm:$0xff]  ;;  %v8959_v37 = vld [vmem:[#allocation23_spill] sm:$0xff] }
 0xa30   : > { %v4536_v43 = vadd.f32 %v4497_v0, %v4324_v23  ;;  %v8953_v0 = vld [vmem:[#allocation21_spill] sm:$0xff]  ;;  %v2947_v26 = vadd.f32 %v2939_v34, %v8966_v61 }
 0xa32   : > { %v6807_v22 = vpop.f32.mrf.mxu1  ;;  %v4748_v2 = vadd.f32 %v4709_v33, %v4536_v43  ;;  %v8956_v33 = vld [vmem:[#allocation4_spill] sm:$0xff] }
 0xa33   : > { %v6837_v49 = vpop.f32.mrf.mxu0  ;;  %v2942_v16 = vadd.f32 %v2934_v20, %v8956_v33  ;;  %v7004_v33 = vld [vmem:[%s7210_s5 + $0x18] sm:$0xff] }
 0xa34   : > { %v4921_v21 = vpop.f32.mrf.mxu1 }
 0xa35   : > { %v8774_v29 = vpop.f32.mrf.mxu0  ;;  %v4960_v36 = vadd.f32 %v4921_v21, %v4748_v2 }
 0xa36   : > { %8947 = vst [vmem:[#allocation26_spill] sm:$0xff] %v8774_v29  ;;  %v3890_v29 = vadd.f32 %v3889_v35, %v3760_v60  ;;  %v8950_v60 = vld [vmem:[#allocation12_spill] sm:$0xff] }
 0xa37   : > { %v2935_v35 = vmul.f32 0.1, %v8950_v60  ;;  %v5415_v60 = vpop.permute.xlu1 %5414 }
 0xa38   : > { %v6840_v27 = vpop.f32.mrf.mxu0  ;;  %v4116_v7 = vadd.f32 %v4093_v39, %v3890_v29  ;;  %v4961_v39 = vadd.f32 %v6807_v22, %v4749_v10 }
 0xa39   : > { %v6810_v54 = vpop.f32.mrf.mxu1  ;;  %v2943_v29 = vadd.f32 %v2935_v35, %v8955_v50  ;;  %v8965_v35 = vld [vmem:[#allocation6_spill] sm:$0xff]  ;;  %v7003_v50 = vld [vmem:[%s7210_s5 + $0x8] sm:$0xff] }
 0xa3a   : > { %v8776_v55 = vpop.f32.mrf.mxu0  ;;  %v4328_v28 = vadd.f32 %v4305_v17, %v4116_v7  ;;  %v4963_v8 = vadd.f32 %v6810_v54, %v4751_v15  ;;  %v5173_v22 = vadd.f32 %v6837_v49, %v4961_v39  ;;  %v8964_v7 = vld [vmem:[#allocation25_spill] sm:$0xff] }
 0xa3b   : > { %v4931_v57 = vpop.f32.mrf.mxu1  ;;  %8948 = vst [vmem:[#allocation27_spill] sm:$0xff] %v8776_v55  ;;  %v8949_v55 = vld [vmem:[#allocation20_spill] sm:$0xff] }
 0xa3c   : > { %v3905_v14 = vadd.f32 %v6666_v42, %v8949_v55  ;;  %v4540_v51 = vadd.f32 %v4517_v38, %v4328_v28  ;;  %v4962_v12 = vadd.f32 %v4931_v57, %v4750_v63  ;;  %v5175_v54 = vadd.f32 %v6840_v27, %v4963_v8  ;;  %v8958_v55 = vld [vmem:[#allocation15_spill] sm:$0xff] }
 0xa3d   : > { %v2936_v18 = vmul.f32 0.1, %v8958_v55 }
 0xa3e   : > { %v8778_v40 = vpop.f32.mrf.mxu0  ;;  %v4119_v31 = vadd.f32 %v6696_v1, %v3905_v14  ;;  %v4330_v1 = vadd.f32 %v8954_v47, %v4118_v59  ;;  %v4752_v4 = vadd.f32 %v8959_v37, %v4540_v51  ;;  %v8963_v14 = vld [vmem:[#allocation24_spill] sm:$0xff] }
 0xa3f   : > { %v6813_v41 = vpop.f32.mrf.mxu1  ;;  %v2944_v19 = vadd.f32 %v2936_v18, %v8965_v35 }
 0xa40   : > { %v8781_v9 = vpop.f32.mrf.mxu0  ;;  %v4331_v56 = vadd.f32 %v8953_v0, %v4119_v31  ;;  %v4542_v25 = vadd.f32 %v4527_v32, %v4330_v1  ;;  %v4965_v38 = vadd.f32 %v6813_v41, %v4753_v45  ;;  %v8960_v32 = vld [vmem:[#allocation26_spill] sm:$0xff]  ;;  %v8967_v0 = vld [vmem:[#allocation17_spill] sm:$0xff] }
 0xa41   : > { %v4941_v5 = vpop.f32.mrf.mxu1  ;;  %v5172_v57 = vadd.f32 %v8960_v32, %v4960_v36 }
 0xa42   : > { %v4543_v11 = vadd.f32 %v6756_v52, %v4331_v56  ;;  %v8961_v23 = vld [vmem:[#allocation27_spill] sm:$0xff]  ;;  %v4754_v43 = vadd.f32 %v8964_v7, %v4542_v25  ;;  %v4964_v41 = vadd.f32 %v4941_v5, %v4752_v4  ;;  %v5177_v20 = vadd.f32 %v8778_v40, %v4965_v38  ;;  %v7007_v7 = vld [vmem:[%s7210_s5 + $0x28] sm:$0xff] }
 0xa43   : > { %v5174_v58 = vadd.f32 %v8961_v23, %v4962_v12  ;;  %v2938_v56 = vmul.f32 0.1, %v8967_v0  ;;  %v8969_v4 = vld [vmem:[#allocation19_spill] sm:$0xff]  ;;  %v8970_v23 = vld [vmem:[#allocation8_spill] sm:$0xff] }
 0xa44   : > { %v6846_v42 = vpop.f32.mrf.mxu0  ;;  %v4755_v48 = vadd.f32 %v8963_v14, %v4543_v11  ;;  %v5176_v47 = vadd.f32 %v8781_v9, %v4964_v41  ;;  %v2940_v38 = vmul.f32 0.1, %v8969_v4  ;;  %v8971_v14 = vld [vmem:[#allocation11_spill] sm:$0xff] }
 0xa45   : > { %v6816_v13 = vpop.f32.mrf.mxu1 }
 0xa46   : > { %v5163_v53 = vpop.f32.mrf.mxu0  ;;  %v4967_v28 = vadd.f32 %v6816_v13, %v4755_v48 }
 0xa47   : > { %v4951_v17 = vpop.f32.mrf.mxu1 }
 0xa48   : > { %v4966_v30 = vadd.f32 %v4951_v17, %v4754_v43  ;;  %v5179_v45 = vadd.f32 %v6846_v42, %v4967_v28  ;;  %v7010_v28 = vld [vmem:[%s7210_s5 + $0x30] sm:$0xff] }
 0xa4a   : > { %v5178_v11 = vadd.f32 %v5163_v53, %v4966_v30 }
 0xa4c   : > { %v6867_v21 = vpop.f32.mrf.mxu0 }
 0xa4d   : > { %v6870_v52 = vpop.f32.mrf.mxu1  ;;  %v5385_v49 = vadd.f32 %v6867_v21, %v5173_v22  ;;  %v7005_v21 = vld [vmem:[%s7210_s5] sm:$0xff] }
 0xa4e   : > { %v5387_v27 = vadd.f32 %v6870_v52, %v5175_v54  ;;  %v5345_v46 = vpop.f32.mrf.mxu0 }
 0xa4f   : > { %v5355_v3 = vpop.f32.mrf.mxu1  ;;  %v5401_v31 = vadd.f32 %v8796_v6, %v5385_v49  ;;  %v5384_v10 = vadd.f32 %v5345_v46, %v5172_v57 }
 0xa50   : > { %v5403_v59 = vadd.f32 %v8796_v6, %v5387_v27  ;;  %v5386_v15 = vadd.f32 %v5355_v3, %v5174_v58  ;;  %v2946_v58 = vadd.f32 %v2938_v56, %v8970_v23  ;;  %v8972_v3 = vld [vmem:[#allocation10_spill] sm:$0xff] }
 0xa51   : > { %v6873_v2 = vpop.f32.mrf.mxu1  ;;  %v5418_v63 = vmul.f32 %v5415_v60, %v5401_v31  ;;  %v5400_v5 = vadd.f32 %v8796_v6, %v5384_v10  ;;  %v2948_v31 = vadd.f32 %v2940_v38, %v8972_v3  ;;  %v7008_v10 = vld [vmem:[%s7210_s5 + $0x20] sm:$0xff] }
 0xa52   : > { %v5420_v39 = vmul.f32 %v5415_v60, %v5403_v59  ;;  %v5402_v8 = vadd.f32 %v8796_v6, %v5386_v15  ;;  %v5389_v1 = vadd.f32 %v6873_v2, %v5177_v20 }
 0xa53   : > { %v5365_v40 = vpop.f32.mrf.mxu1  ;;  %v5426_v13 = vadd.f32 %v5418_v63, %v2943_v29  ;;  %v5417_v36 = vmul.f32 %v5415_v60, %v5400_v5 }
 0xa54   : > { %v5428_v51 = vadd.f32 %v5420_v39, %v2945_v62  ;;  %v5419_v12 = vmul.f32 %v5415_v60, %v5402_v8  ;;  %v5405_v25 = vadd.f32 %v8796_v6, %v5389_v1  ;;  %v5388_v17 = vadd.f32 %v5365_v40, %v5176_v47  ;;  %v8968_v62 = vld [vmem:[#allocation18_spill] sm:$0xff] }
 0xa55   : > { %v6876_v9 = vpop.f32.mrf.mxu1  ;;  %v5434_v29 = vadd.f32 %v7003_v50, %v5426_v13  ;;  %v5425_v54 = vadd.f32 %v5417_v36, %v2942_v16  ;;  %v2941_v55 = vmul.f32 0.1, %v8968_v62  ;;  %v7006_v16 = vld [vmem:[%s7210_s5 + $0x10] sm:$0xff] }
 0xa56   : > { %v5436_v22 = vadd.f32 %v7004_v33, %v5428_v51  ;;  %v5427_v24 = vadd.f32 %v5419_v12, %v2944_v19  ;;  %v5422_v18 = vmul.f32 %v5415_v60, %v5405_v25  ;;  %v5404_v42 = vadd.f32 %v8796_v6, %v5388_v17 }
 0xa57   : > { %v5391_v53 = vadd.f32 %v6876_v9, %v5179_v45  ;;  %v5375_v37 = vpop.f32.mrf.mxu1  ;;  %5442 = vst.msk [vmem:[%s8816_s2 + $0x8] sm:$0xff] %vm885_vm0, %v5434_v29  ;;  %v5433_v52 = vadd.f32 %v7005_v21, %v5425_v54  ;;  %v2949_v48 = vadd.f32 %v2941_v55, %v8971_v14 }
 0xa58   : > { %5444 = vst.msk [vmem:[%s8816_s2 + $0x18] sm:$0xff] %vm885_vm0, %v5436_v22  ;;  %v5435_v32 = vadd.f32 %v7006_v16, %v5427_v24  ;;  %v5390_v57 = vadd.f32 %v5375_v37, %v5178_v11  ;;  %v5430_v49 = vadd.f32 %v5422_v18, %v2947_v26  ;;  %v5421_v27 = vmul.f32 %v5415_v60, %v5404_v42 }
 0xa59   : > { %v5407_v44 = vadd.f32 %v8796_v6, %v5391_v53  ;;  %5441 = vst.msk [vmem:[%s8816_s2] sm:$0xff] %vm885_vm0, %v5433_v52 }
 0xa5a   : > { %5443 = vst.msk [vmem:[%s8816_s2 + $0x10] sm:$0xff] %vm885_vm0, %v5435_v32  ;;  %v5406_v34 = vadd.f32 %v8796_v6, %v5390_v57  ;;  %v5438_v43 = vadd.f32 %v7007_v7, %v5430_v49  ;;  %v5429_v41 = vadd.f32 %v5421_v27, %v2946_v58  ;;  %v7009_v6 = vld [vmem:[%s7210_s5 + $0x38] sm:$0xff] }
 0xa5b   : > { %v5424_v46 = vmul.f32 %v5415_v60, %v5407_v44 }
 0xa5c   : > { %v5423_v59 = vmul.f32 %v5415_v60, %v5406_v34  ;;  %5446 = vst.msk [vmem:[%s8816_s2 + $0x28] sm:$0xff] %vm885_vm0, %v5438_v43  ;;  %v5437_v15 = vadd.f32 %v7008_v10, %v5429_v41 }
 0xa5d   : > { %v5432_v35 = vadd.f32 %v5424_v46, %v2949_v48 }
 0xa5e   : > { %v5431_v19 = vadd.f32 %v5423_v59, %v2948_v31  ;;  %5445 = vst.msk [vmem:[%s8816_s2 + $0x20] sm:$0xff] %vm885_vm0, %v5437_v15 }
 0xa5f   : > { %v5440_v20 = vadd.f32 %v7009_v6, %v5432_v35 }
 0xa60   : > { %v5439_v30 = vadd.f32 %v7010_v28, %v5431_v19 }
 0xa61   : > { %5448 = vst.msk [vmem:[%s8816_s2 + $0x38] sm:$0xff] %vm885_vm0, %v5440_v20 }
 0xa62   : > { %5447 = vst.msk [vmem:[%s8816_s2 + $0x30] sm:$0xff] %vm885_vm0, %v5439_v30 }
 0xa63 PF: > { %s39_s8 = sadd.s32 1, %s7017_s8  }
 0xa64   : > { %p36_p4 = scmp.ge.s32.totalorder %s39_s8, 4  }
 0xa66   :  { %38 = sbr.rel (!%p36_p4) target bundleno = 13 (0xd), region = 180 }

</bundles_post_ra>
